<compile_context>
chip_gen: v6e
topology: v6e:2x2x1
jax: 0.10.0
libtpu: 0.0.40
codegen_flags: <defaults>
</compile_context>

<pallas_src>
import functools

import jax
import jax.numpy as jnp
import numpy as np
from jax import lax
from jax.experimental import pallas as pl
from jax.experimental.pallas import tpu as pltpu

C = 256             # fixed by the module (Conv2d(256, 256, 3), SelfAttention(256))
CQ = C // 8         # 32 real query/key channels
CQP = 128           # query/key channels zero-padded to a full lane group
QKVW = C + 2 * CQP  # 512 fused projection columns: [V | Qpad | Kpad]


def dsf_kernel(p6pad_ref, add_ref, wstack_ref, wqkv_ref, bqkv_ref, gamma_ref,
               out_ref, *, bt, h, w, kt):
    n = h * w
    rows = bt * n
    kt = min(kt, n)

    # ---- 3x3 conv (pad=1): 3 accumulating matmuls, one per kx --------------
    acc = None
    for kx in range(3):
        xw = p6pad_ref[:, :, kx:kx + w, :]                    # (bt, h+2, w, C) bf16
        xcat = jnp.concatenate([xw[:, ky:ky + h] for ky in range(3)],
                               axis=-1)                       # (bt, h, w, 3C)
        part = jnp.dot(xcat.reshape(rows, 3 * C), wstack_ref[kx],
                       preferred_element_type=jnp.float32)
        acc = part if acc is None else acc + part
    conv = acc.reshape(bt, n, C)

    # ---- conv bias + GAP(p6) + GAP(p7) + p8 (pre-folded, f32) ---------------
    y = conv + add_ref[...]                                   # (bt, n, C) f32

    # ---- fused Q/K/V projection: (rows, C) @ (C, 512), lane-aligned slices --
    qkv = jnp.dot(y.astype(jnp.bfloat16).reshape(rows, C), wqkv_ref[...],
                  preferred_element_type=jnp.float32) + bqkv_ref[...]
    qkv = qkv.reshape(bt, n, QKVW)
    v_bf = qkv[:, :, :C].astype(jnp.bfloat16)                 # (bt, n, 256)
    q_bf = qkv[:, :, C:C + CQP].astype(jnp.bfloat16)          # (bt, n, 128), pad lanes = 0
    k_bf = qkv[:, :, C + CQP:].astype(jnp.bfloat16)           # (bt, n, 128), pad lanes = 0

    # ---- self-attention: key-tiled online softmax (bf16 MXU, f32 stats) -----
    # TODO(synk): for very large N also tile the query axis (extra grid dim);
    # q/k/v for the whole image currently live in VMEM (O(N*C)).
    num_kt = -(-n // kt)
    s = jnp.einsum('bnd,bmd->bnm', q_bf, k_bf[:, :kt, :],
                   preferred_element_type=jnp.float32)        # (bt, n, kt)
    m_run = jnp.max(s, axis=-1, keepdims=True)
    p = jnp.exp(s - m_run)
    l_run = jnp.sum(p, axis=-1, keepdims=True)
    acc_att = jnp.einsum('bnm,bmc->bnc', p.astype(jnp.bfloat16), v_bf[:, :kt, :],
                         preferred_element_type=jnp.float32)
    for t in range(1, num_kt):
        lo = t * kt
        hi = min(lo + kt, n)
        s = jnp.einsum('bnd,bmd->bnm', q_bf, k_bf[:, lo:hi, :],
                       preferred_element_type=jnp.float32)
        m_new = jnp.maximum(m_run, jnp.max(s, axis=-1, keepdims=True))
        a = jnp.exp(m_run - m_new)
        p = jnp.exp(s - m_new)
        l_run = a * l_run + jnp.sum(p, axis=-1, keepdims=True)
        acc_att = a * acc_att + jnp.einsum(
            'bnm,bmc->bnc', p.astype(jnp.bfloat16), v_bf[:, lo:hi, :],
            preferred_element_type=jnp.float32)
        m_run = m_new
    out_att = acc_att * pl.reciprocal(l_run, approx=True)

    out_ref[...] = gamma_ref[0] * out_att + y


def _pick_bt(b, n):
    """Images per grid step: keep >= 2 grid steps whenever the batch allows
    (v7x 2-TensorCore sharding + pipeline overlap), then grow rows = bt*n
    toward the 256-row MXU, capped at 512."""
    best = 1
    for bt in range(1, b + 1):
        if b % bt:
            continue
        if bt > 1 and b // bt < 2:
            break
        if bt * n <= 512:
            best = bt
    return best


def _vmem_limit_bytes(bt, h, w, kt):
    n = h * w
    rows = bt * n
    kt = min(kt, n)
    est = 0
    est += 2 * bt * (h + 2) * (w + 2) * C * 2      # p6pad, bf16, double-buffered
    est += 2 * bt * C * 4                          # folded add tensor
    est += 2 * 9 * C * C * 2                       # conv weight stack, bf16
    est += 2 * C * QKVW * 2                        # fused qkv weight, bf16
    est += 2 * bt * n * C * 4                      # output tile, f32
    est += rows * 3 * C * 2                        # conv operand (xcat), bf16
    est += 3 * rows * C * 4                        # conv acc / y / attention acc, f32
    est += rows * QKVW * 4                         # qkv result, f32
    est += 3 * bt * n * kt * 4                     # energy / p tiles, f32
    # 2x slack for compiler temporaries; keep at least a 32 MiB scope.
    return int(min(max(2 * est, 32 * 2**20), 100 * 2**20))


def dsf_forward(p6, p7, p8, params, *, kt_attn=512, out_layout="NCHW"):
    """p6: (B, C, H, W), p7: (B, C, H7, W7), p8: (B, C, 1, 1)  (NCHW, f32)."""
    B, Cc, H, W = p6.shape
    assert Cc == C, "DSF is fixed at 256 channels"
    N = H * W
    BT = _pick_bt(B, N)
    KT = min(kt_attn, N)

    p6_nhwc = jnp.transpose(p6, (0, 2, 3, 1))                          # (B, H, W, C)
    # TODO(synk): the zero-pad could move in-kernel (DMA unpadded p6 into a
    # zeroed VMEM scratch) to drop this extra wrapper-side HBM pass.
    p6pad = jnp.pad(p6_nhwc.astype(jnp.bfloat16),
                    ((0, 0), (1, 1), (1, 1), (0, 0)))                  # (B, H+2, W+2, C)

    # conv bias + GAP(p6) + GAP(p7) + p8 folded into one f32 (B, 1, C) tensor.
    gap6 = jnp.mean(p6_nhwc, axis=(1, 2))                              # (B, C) f32
    gap7 = jnp.mean(p7, axis=(2, 3))                                   # (B, C) f32
    add = (gap6 + gap7 + p8.reshape(B, Cc) + params["conv_b"][None, :])[:, None, :]

    # conv taps regrouped per kx: (3, 3*C, C), rows ordered [ky=0 | ky=1 | ky=2]
    wstack = jnp.transpose(params["conv_w"], (1, 0, 2, 3)) \
                .reshape(3, 3 * Cc, Cc).astype(jnp.bfloat16)
    # fused projection, lane-aligned: columns [V(0:256) | Qpad(256:384) | Kpad(384:512)]
    zpad_w = jnp.zeros((Cc, CQP - CQ), jnp.float32)
    wqkv = jnp.concatenate([params["wv"], params["wq"], zpad_w,
                            params["wk"], zpad_w], axis=1).astype(jnp.bfloat16)
    zpad_b = jnp.zeros((CQP - CQ,), jnp.float32)
    bqkv = jnp.concatenate([params["bv"], params["bq"], zpad_b,
                            params["bk"], zpad_b])[None, :]            # (1, 512) f32

    kernel = functools.partial(dsf_kernel, bt=BT, h=H, w=W, kt=KT)
    out_nc = pl.pallas_call(
        kernel,
        out_shape=jax.ShapeDtypeStruct((B, N, Cc), jnp.float32),
        grid=(B // BT,),
        in_specs=[
            pl.BlockSpec((BT, H + 2, W + 2, Cc), lambda b: (b, 0, 0, 0)),  # p6 (padded, bf16)
            pl.BlockSpec((BT, 1, Cc), lambda b: (b, 0, 0)),                # folded adds
            # TODO(synk): wstack/wqkv/bqkv are grid-invariant; single-buffer them
            # (pipeline_mode=pl.Buffered(1)) once confirmed supported, to shave VMEM.
            pl.BlockSpec((3, 3 * Cc, Cc), lambda b: (0, 0, 0)),            # conv taps
            pl.BlockSpec((Cc, QKVW), lambda b: (0, 0)),                    # [Wv|Wq|Wk]
            pl.BlockSpec((1, QKVW), lambda b: (0, 0)),                     # [bv|bq|bk]
            pl.BlockSpec(memory_space=pltpu.MemorySpace.SMEM),             # gamma
        ],
        out_specs=pl.BlockSpec((BT, N, Cc), lambda b: (b, 0, 0)),
        compiler_params=pltpu.CompilerParams(
            dimension_semantics=("parallel",),
            vmem_limit_bytes=_vmem_limit_bytes(BT, H, W, KT)),
    )(p6pad, add, wstack, wqkv, bqkv, params["gamma"])

    if out_layout == "BNC":   # lane-dense layout; avoids the NCHW transpose pass
        return out_nc
    return jnp.transpose(out_nc, (0, 2, 1)).reshape(B, Cc, H, W)


def dsf_reference(p6, p7, p8, params):
    """Pure-JAX reference mirroring the PyTorch forward (NCHW)."""
    conv = lax.conv_general_dilated(
        p6, params["conv_w"], window_strides=(1, 1), padding="SAME",
        dimension_numbers=("NCHW", "HWIO", "NCHW"),
        precision=lax.Precision.HIGHEST)
    conv = conv + params["conv_b"][None, :, None, None]
    gap6 = jnp.mean(p6, axis=(2, 3), keepdims=True)
    gap7 = jnp.mean(p7, axis=(2, 3), keepdims=True)
    x = conv + gap6 + gap7 + p8
    B, Cc, H, W = x.shape
    N = H * W
    y = x.reshape(B, Cc, N).transpose(0, 2, 1)                     # (B, N, C)
    hp = lax.Precision.HIGHEST
    q = jnp.einsum("bnc,cd->bnd", y, params["wq"], precision=hp) + params["bq"]
    k = jnp.einsum("bnc,cd->bnd", y, params["wk"], precision=hp) + params["bk"]
    v = jnp.einsum("bnc,cd->bnd", y, params["wv"], precision=hp) + params["bv"]
    energy = jnp.einsum("bnd,bmd->bnm", q, k, precision=hp)
    attn = jax.nn.softmax(energy, axis=-1)
    out = jnp.einsum("bnm,bmc->bnc", attn, v, precision=hp)
    out = params["gamma"][0] * out + y
    return out.transpose(0, 2, 1).reshape(B, Cc, H, W)


def make_params(key):
    ks = jax.random.split(key, 9)
    return {
        # conv_p6: Conv2d(256, 256, 3, 1, 1); stored HWIO (transpose of torch OIHW)
        "conv_w": jax.random.normal(ks[0], (3, 3, C, C), jnp.float32) * 0.02,
        "conv_b": jax.random.normal(ks[1], (C,), jnp.float32) * 0.02,
        # SelfAttention 1x1 convs, stored (C_in, C_out) == torch weight transposed
        "wq": jax.random.normal(ks[2], (C, CQ), jnp.float32) * 0.0625,
        "bq": jax.random.normal(ks[3], (CQ,), jnp.float32) * 0.02,
        "wk": jax.random.normal(ks[4], (C, CQ), jnp.float32) * 0.0625,
        "bk": jax.random.normal(ks[5], (CQ,), jnp.float32) * 0.02,
        "wv": jax.random.normal(ks[6], (C, C), jnp.float32) * 0.0625,
        "bv": jax.random.normal(ks[7], (C,), jnp.float32) * 0.02,
        # torch inits gamma to 0; use a nonzero value so the attention path is exercised
        "gamma": jnp.array([0.1], jnp.float32),
    }


if __name__ == "__main__":
    key = jax.random.PRNGKey(0)
    k1, k2, k3, kp = jax.random.split(key, 4)
    params = make_params(kp)

    # --- test 1: module-typical small p6 (single attention key tile) --------
    B, H, W = 2, 8, 8
    H7, W7 = 4, 4
    p6 = jax.random.normal(k1, (B, C, H, W), jnp.float32)
    p7 = jax.random.normal(k2, (B, C, H7, W7), jnp.float32)
    p8 = jax.random.normal(k3, (B, C, 1, 1), jnp.float32)   # broadcast-added, like PyTorch
    out = jax.block_until_ready(dsf_forward(p6, p7, p8, params))
    ref = jax.block_until_ready(dsf_reference(p6, p7, p8, params))
    assert out.shape == (B, C, H, W)
    np.testing.assert_allclose(np.asarray(out), np.asarray(ref), rtol=5e-2, atol=5e-2)

    # --- test 2: exercise the key-tiled online-softmax path (num_kt > 1) ----
    H2 = W2 = 16
    p6b = jax.random.normal(jax.random.PRNGKey(7), (B, C, H2, W2), jnp.float32)
    out2 = jax.block_until_ready(dsf_forward(p6b, p7, p8, params, kt_attn=128))
    ref2 = jax.block_until_ready(dsf_reference(p6b, p7, p8, params))
    np.testing.assert_allclose(np.asarray(out2), np.asarray(ref2), rtol=5e-2, atol=5e-2)

    print("KERNEL_OK")
</pallas_src>

<mosaic_0001>
module attributes {stable_mosaic.version = 11 : i64} {
  func.func @dsf_kernel(%arg0: i32, %arg1: memref<1x10x10x256xbf16, #tpu.memory_space<vmem>>, %arg2: memref<1x1x256xf32, #tpu.memory_space<vmem>>, %arg3: memref<3x768x256xbf16, #tpu.memory_space<vmem>>, %arg4: memref<256x512xbf16, #tpu.memory_space<vmem>>, %arg5: memref<1x512xf32, #tpu.memory_space<vmem>>, %arg6: memref<1xf32, #tpu.memory_space<smem>>, %arg7: memref<1x64x256xf32, #tpu.memory_space<vmem>>) attributes {dimension_semantics = [#tpu.dimension_semantics<parallel>], iteration_bounds = array<i64: 2>, scalar_prefetch = 0 : i64, scratch_operands = 0 : i64, tpu.core_type = #tpu.core_type<tc>, window_params = [{transform_indices = @transform_0, window_bounds = array<i64: 1, 10, 10, 256>}, {transform_indices = @transform_1, window_bounds = array<i64: 1, 1, 256>}, {pipeline_mode = #tpu.pipeline_mode<synchronous>, transform_indices = @transform_2, window_bounds = array<i64: 3, 768, 256>}, {pipeline_mode = #tpu.pipeline_mode<synchronous>, transform_indices = @transform_3, window_bounds = array<i64: 256, 512>}, {pipeline_mode = #tpu.pipeline_mode<synchronous>, transform_indices = @transform_4, window_bounds = array<i64: 1, 512>}, {transform_indices = @transform_5, window_bounds = array<i64: 1>}, {transform_indices = @transform_6, window_bounds = array<i64: 1, 64, 256>}]} {
    %c0 = arith.constant 0 : index
    %c0_0 = arith.constant 0 : index
    %c0_1 = arith.constant 0 : index
    %c0_2 = arith.constant 0 : index
    %0 = vector.load %arg1[%c0, %c0_0, %c0_1, %c0_2] : memref<1x10x10x256xbf16, #tpu.memory_space<vmem>>, vector<1x10x8x256xbf16>
    %1 = vector.extract_strided_slice %0 {offsets = [0, 0, 0, 0], sizes = [1, 8, 8, 256], strides = [1, 1, 1, 1]} : vector<1x10x8x256xbf16> to vector<1x8x8x256xbf16>
    %2 = vector.extract_strided_slice %0 {offsets = [0, 1, 0, 0], sizes = [1, 8, 8, 256], strides = [1, 1, 1, 1]} : vector<1x10x8x256xbf16> to vector<1x8x8x256xbf16>
    %3 = vector.extract_strided_slice %0 {offsets = [0, 2, 0, 0], sizes = [1, 8, 8, 256], strides = [1, 1, 1, 1]} : vector<1x10x8x256xbf16> to vector<1x8x8x256xbf16>
    %4 = tpu.concatenate %1, %2, %3 in 3 : vector<1x8x8x256xbf16>, vector<1x8x8x256xbf16>, vector<1x8x8x256xbf16> -> vector<1x8x8x768xbf16>
    %5 = vector.shape_cast %4 : vector<1x8x8x768xbf16> to vector<64x768xbf16>
    %c0_3 = arith.constant 0 : index
    %c0_4 = arith.constant 0 : index
    %c0_5 = arith.constant 0 : index
    %6 = vector.load %arg3[%c0_3, %c0_4, %c0_5] : memref<3x768x256xbf16, #tpu.memory_space<vmem>>, vector<1x768x256xbf16>
    %7 = vector.shape_cast %6 : vector<1x768x256xbf16> to vector<768x256xbf16>
    %cst = arith.constant dense<0.000000e+00> : vector<64x256xf32>
    %8 = tpu.matmul %5, %7, %cst {dimension_numbers = #tpu.dot_dimension_numbers<[1], [0], [0], [1], [0, 0, 1, 1], [], []>} : vector<64x768xbf16>, vector<768x256xbf16>, vector<64x256xf32> -> vector<64x256xf32>
    %c0_6 = arith.constant 0 : index
    %c0_7 = arith.constant 0 : index
    %c1 = arith.constant 1 : index
    %c0_8 = arith.constant 0 : index
    %9 = vector.load %arg1[%c0_6, %c0_7, %c1, %c0_8] : memref<1x10x10x256xbf16, #tpu.memory_space<vmem>>, vector<1x10x8x256xbf16>
    %10 = vector.extract_strided_slice %9 {offsets = [0, 0, 0, 0], sizes = [1, 8, 8, 256], strides = [1, 1, 1, 1]} : vector<1x10x8x256xbf16> to vector<1x8x8x256xbf16>
    %11 = vector.extract_strided_slice %9 {offsets = [0, 1, 0, 0], sizes = [1, 8, 8, 256], strides = [1, 1, 1, 1]} : vector<1x10x8x256xbf16> to vector<1x8x8x256xbf16>
    %12 = vector.extract_strided_slice %9 {offsets = [0, 2, 0, 0], sizes = [1, 8, 8, 256], strides = [1, 1, 1, 1]} : vector<1x10x8x256xbf16> to vector<1x8x8x256xbf16>
    %13 = tpu.concatenate %10, %11, %12 in 3 : vector<1x8x8x256xbf16>, vector<1x8x8x256xbf16>, vector<1x8x8x256xbf16> -> vector<1x8x8x768xbf16>
    %14 = vector.shape_cast %13 : vector<1x8x8x768xbf16> to vector<64x768xbf16>
    %c1_9 = arith.constant 1 : index
    %c0_10 = arith.constant 0 : index
    %c0_11 = arith.constant 0 : index
    %15 = vector.load %arg3[%c1_9, %c0_10, %c0_11] : memref<3x768x256xbf16, #tpu.memory_space<vmem>>, vector<1x768x256xbf16>
    %16 = vector.shape_cast %15 : vector<1x768x256xbf16> to vector<768x256xbf16>
    %cst_12 = arith.constant dense<0.000000e+00> : vector<64x256xf32>
    %17 = tpu.matmul %14, %16, %cst_12 {dimension_numbers = #tpu.dot_dimension_numbers<[1], [0], [0], [1], [0, 0, 1, 1], [], []>} : vector<64x768xbf16>, vector<768x256xbf16>, vector<64x256xf32> -> vector<64x256xf32>
    %18 = arith.addf %8, %17 : vector<64x256xf32>
    %c0_13 = arith.constant 0 : index
    %c0_14 = arith.constant 0 : index
    %c2 = arith.constant 2 : index
    %c0_15 = arith.constant 0 : index
    %19 = vector.load %arg1[%c0_13, %c0_14, %c2, %c0_15] : memref<1x10x10x256xbf16, #tpu.memory_space<vmem>>, vector<1x10x8x256xbf16>
    %20 = vector.extract_strided_slice %19 {offsets = [0, 0, 0, 0], sizes = [1, 8, 8, 256], strides = [1, 1, 1, 1]} : vector<1x10x8x256xbf16> to vector<1x8x8x256xbf16>
    %21 = vector.extract_strided_slice %19 {offsets = [0, 1, 0, 0], sizes = [1, 8, 8, 256], strides = [1, 1, 1, 1]} : vector<1x10x8x256xbf16> to vector<1x8x8x256xbf16>
    %22 = vector.extract_strided_slice %19 {offsets = [0, 2, 0, 0], sizes = [1, 8, 8, 256], strides = [1, 1, 1, 1]} : vector<1x10x8x256xbf16> to vector<1x8x8x256xbf16>
    %23 = tpu.concatenate %20, %21, %22 in 3 : vector<1x8x8x256xbf16>, vector<1x8x8x256xbf16>, vector<1x8x8x256xbf16> -> vector<1x8x8x768xbf16>
    %24 = vector.shape_cast %23 : vector<1x8x8x768xbf16> to vector<64x768xbf16>
    %c2_16 = arith.constant 2 : index
    %c0_17 = arith.constant 0 : index
    %c0_18 = arith.constant 0 : index
    %25 = vector.load %arg3[%c2_16, %c0_17, %c0_18] : memref<3x768x256xbf16, #tpu.memory_space<vmem>>, vector<1x768x256xbf16>
    %26 = vector.shape_cast %25 : vector<1x768x256xbf16> to vector<768x256xbf16>
    %cst_19 = arith.constant dense<0.000000e+00> : vector<64x256xf32>
    %27 = tpu.matmul %24, %26, %cst_19 {dimension_numbers = #tpu.dot_dimension_numbers<[1], [0], [0], [1], [0, 0, 1, 1], [], []>} : vector<64x768xbf16>, vector<768x256xbf16>, vector<64x256xf32> -> vector<64x256xf32>
    %28 = arith.addf %18, %27 : vector<64x256xf32>
    %29 = vector.shape_cast %28 : vector<64x256xf32> to vector<1x64x256xf32>
    %c0_20 = arith.constant 0 : index
    %c0_21 = arith.constant 0 : index
    %c0_22 = arith.constant 0 : index
    %30 = vector.load %arg2[%c0_20, %c0_21, %c0_22] : memref<1x1x256xf32, #tpu.memory_space<vmem>>, vector<1x1x256xf32>
    %31 = vector.broadcast %30 : vector<1x1x256xf32> to vector<1x64x256xf32>
    %32 = arith.addf %29, %31 : vector<1x64x256xf32>
    %33 = arith.truncf %32 : vector<1x64x256xf32> to vector<1x64x256xbf16>
    %34 = vector.shape_cast %33 : vector<1x64x256xbf16> to vector<64x256xbf16>
    %c0_23 = arith.constant 0 : index
    %c0_24 = arith.constant 0 : index
    %35 = vector.load %arg4[%c0_23, %c0_24] : memref<256x512xbf16, #tpu.memory_space<vmem>>, vector<256x512xbf16>
    %cst_25 = arith.constant dense<0.000000e+00> : vector<64x512xf32>
    %36 = tpu.matmul %34, %35, %cst_25 {dimension_numbers = #tpu.dot_dimension_numbers<[1], [0], [0], [1], [0, 0, 1, 1], [], []>} : vector<64x256xbf16>, vector<256x512xbf16>, vector<64x512xf32> -> vector<64x512xf32>
    %c0_26 = arith.constant 0 : index
    %c0_27 = arith.constant 0 : index
    %37 = vector.load %arg5[%c0_26, %c0_27] : memref<1x512xf32, #tpu.memory_space<vmem>>, vector<1x512xf32>
    %38 = vector.broadcast %37 : vector<1x512xf32> to vector<64x512xf32>
    %39 = arith.addf %36, %38 : vector<64x512xf32>
    %40 = vector.shape_cast %39 : vector<64x512xf32> to vector<1x64x512xf32>
    %41 = vector.extract_strided_slice %40 {offsets = [0, 0, 0], sizes = [1, 64, 256], strides = [1, 1, 1]} : vector<1x64x512xf32> to vector<1x64x256xf32>
    %42 = arith.truncf %41 : vector<1x64x256xf32> to vector<1x64x256xbf16>
    %43 = vector.extract_strided_slice %40 {offsets = [0, 0, 256], sizes = [1, 64, 128], strides = [1, 1, 1]} : vector<1x64x512xf32> to vector<1x64x128xf32>
    %44 = arith.truncf %43 : vector<1x64x128xf32> to vector<1x64x128xbf16>
    %45 = vector.extract_strided_slice %40 {offsets = [0, 0, 384], sizes = [1, 64, 128], strides = [1, 1, 1]} : vector<1x64x512xf32> to vector<1x64x128xf32>
    %46 = arith.truncf %45 : vector<1x64x128xf32> to vector<1x64x128xbf16>
    "tpu.trace_start"() <{level = 10 : i32, message = "bnd,bmd->bnm"}> : () -> ()
    %cst_28 = arith.constant dense<0.000000e+00> : vector<1x64x64xf32>
    %47 = tpu.matmul %44, %46, %cst_28 {dimension_numbers = #tpu.dot_dimension_numbers<[2], [2], [1], [1], [0, 0, 0, 1, 1, 1], [0], [0]>} : vector<1x64x128xbf16>, vector<1x64x128xbf16>, vector<1x64x64xf32> -> vector<1x64x64xf32>
    "tpu.trace_stop"() : () -> ()
    %cst_29 = arith.constant dense<0xFF800000> : vector<1x64xf32>
    %48 = vector.multi_reduction <maximumf>, %47, %cst_29 [2] : vector<1x64x64xf32> to vector<1x64xf32>
    %49 = vector.shape_cast %48 : vector<1x64xf32> to vector<1x64x1xf32>
    %50 = vector.broadcast %49 : vector<1x64x1xf32> to vector<1x64x64xf32>
    %51 = arith.subf %47, %50 : vector<1x64x64xf32>
    %52 = math.exp %51 : vector<1x64x64xf32>
    %cst_30 = arith.constant dense<0.000000e+00> : vector<1x64xf32>
    %53 = vector.multi_reduction <add>, %52, %cst_30 [2] : vector<1x64x64xf32> to vector<1x64xf32>
    %54 = vector.shape_cast %53 : vector<1x64xf32> to vector<1x64x1xf32>
    %55 = arith.truncf %52 : vector<1x64x64xf32> to vector<1x64x64xbf16>
    "tpu.trace_start"() <{level = 10 : i32, message = "bnm,bmc->bnc"}> : () -> ()
    %cst_31 = arith.constant dense<0.000000e+00> : vector<1x64x256xf32>
    %56 = tpu.matmul %55, %42, %cst_31 {dimension_numbers = #tpu.dot_dimension_numbers<[2], [1], [1], [2], [0, 0, 0, 1, 1, 2], [0], [0]>} : vector<1x64x64xbf16>, vector<1x64x256xbf16>, vector<1x64x256xf32> -> vector<1x64x256xf32>
    "tpu.trace_stop"() : () -> ()
    %57 = tpu.reciprocal %54 {approx = true} : vector<1x64x1xf32> -> vector<1x64x1xf32>
    %58 = vector.broadcast %57 : vector<1x64x1xf32> to vector<1x64x256xf32>
    %59 = arith.mulf %56, %58 : vector<1x64x256xf32>
    %c0_32 = arith.constant 0 : index
    %60 = memref.load %arg6[%c0_32] : memref<1xf32, #tpu.memory_space<smem>>
    %61 = vector.broadcast %60 : f32 to vector<1x64x256xf32>
    %62 = arith.mulf %61, %59 : vector<1x64x256xf32>
    %63 = arith.addf %62, %32 : vector<1x64x256xf32>
    %c0_33 = arith.constant 0 : index
    %c0_34 = arith.constant 0 : index
    %c0_35 = arith.constant 0 : index
    %64 = vector.load %arg7[%c0_33, %c0_34, %c0_35] : memref<1x64x256xf32, #tpu.memory_space<vmem>>, vector<1x64x256xf32>
    tpu.vector_store %arg7[%c0_33, %c0_34, %c0_35], %63 {strides = array<i32>} : memref<1x64x256xf32, #tpu.memory_space<vmem>>, vector<1x64x256xf32>,
    return
  }
  func.func @transform_0(%arg0: i32) -> (i32, i32, i32, i32) {
    %c0_i32 = arith.constant 0 : i32
    %c0_i32_0 = arith.constant 0 : i32
    %c0_i32_1 = arith.constant 0 : i32
    %c0_i32_2 = arith.constant 0 : i32
    return %arg0, %c0_i32, %c0_i32_0, %c0_i32_1 : i32, i32, i32, i32
  }
  func.func @transform_1(%arg0: i32) -> (i32, i32, i32) {
    %c0_i32 = arith.constant 0 : i32
    %c0_i32_0 = arith.constant 0 : i32
    %c0_i32_1 = arith.constant 0 : i32
    return %arg0, %c0_i32, %c0_i32_0 : i32, i32, i32
  }
  func.func @transform_2(%arg0: i32) -> (i32, i32, i32) {
    %c0_i32 = arith.constant 0 : i32
    %c0_i32_0 = arith.constant 0 : i32
    %c0_i32_1 = arith.constant 0 : i32
    %c0_i32_2 = arith.constant 0 : i32
    return %c0_i32, %c0_i32_0, %c0_i32_1 : i32, i32, i32
  }
  func.func @transform_3(%arg0: i32) -> (i32, i32) {
    %c0_i32 = arith.constant 0 : i32
    %c0_i32_0 = arith.constant 0 : i32
    %c0_i32_1 = arith.constant 0 : i32
    return %c0_i32, %c0_i32_0 : i32, i32
  }
  func.func @transform_4(%arg0: i32) -> (i32, i32) {
    %c0_i32 = arith.constant 0 : i32
    %c0_i32_0 = arith.constant 0 : i32
    %c0_i32_1 = arith.constant 0 : i32
    return %c0_i32, %c0_i32_0 : i32, i32
  }
  func.func @transform_5(%arg0: i32) -> i32 {
    %c0_i32 = arith.constant 0 : i32
    %c0_i32_0 = arith.constant 0 : i32
    return %c0_i32 : i32
  }
  func.func @transform_6(%arg0: i32) -> (i32, i32, i32) {
    %c0_i32 = arith.constant 0 : i32
    %c0_i32_0 = arith.constant 0 : i32
    %c0_i32_1 = arith.constant 0 : i32
    return %arg0, %c0_i32, %c0_i32_0 : i32, i32, i32
  }
}

</mosaic_0001>

<bundles_post_ra>
// kernel: tpu_custom_call.1
= control target key start
LH: loop header
LB: loop body
LE: loop exit
PB: predicated region body
PF: predicated region fallthrough
CT: control target
= control target key end

     0   :  { %s6574_s0 = inlined_call_operand.vmem [shape: bf16[2,10,10,256], index: 0, kind: input, shape index: {}]   ;;  %s6575_s1 = inlined_call_operand.hbm [shape: f32[2,1,256], index: 1, kind: input, shape index: {}]   ;;  %s6576_s2 = inlined_call_operand.hbm [shape: bf16[3,768,256], index: 2, kind: input, shape index: {}]   ;;  %s6577_s3 = inlined_call_operand.hbm [shape: bf16[256,512], index: 3, kind: input, shape index: {}]   ;;  %s6578_s4 = inlined_call_operand.hbm [shape: f32[1,512], index: 4, kind: input, shape index: {}]   ;;  %s6579_s5 = inlined_call_operand.<no memory space> [shape: f32[1], index: 5, kind: input, shape index: {}]   ;;  %s6580_s6 = inlined_call_operand.hbm [shape: f32[2,64,256], index: 6, kind: output, shape index: {}]  }
   0x1   :  { %11 = sst [smem:[#allocation2]] %s6579_s5 }
   0x2   :  { %12 = vsyncpa [#allocation4], 0 }
   0x3   :  { %14 = vsyncpa [#allocation4 + $0x1], 0 }
   0x4   :  { %15 = vsyncpa [#allocation7], 0 }
   0x5   :  { %16 = vsyncpa [#allocation10], 0 }
   0x6   :  { %17 = vsyncpa [#allocation5], 0 }
   0x7   :  { %19 = vsyncpa [#allocation5 + $0x1], 0  ;;  %s5621_s23 = smov 0   ;;  %s5623_s24 = smov 0  }
   0x8   :  { %s5625_s25 = smov 0   ;;  %s5627_s26 = smov 0  }
   0x9 LB: > { %s5642_s5 = sadd.s32 4294967295, %s5569_s26   ;;  %s4252_s27 = sadd.s32 4294967294, %s5569_s26   ;;  %s5569_s26 = sphi %s5627_s26, %s6644_s26   ;;  %s5565_s25 = sphi %s5625_s25, %s6643_s25   ;;  %s5561_s24 = sphi %s5623_s24, %s6642_s24   ;;  %s5557_s23 = sphi %s5621_s23, %s6641_s23  }
   0xa   : > { %p71_p0 = scmp.ne.s32.totalorder %s5561_s24, %s5557_s23  ;;  %p6581_p1 = scmp.eq.s32.totalorder %s5642_s5, 0 }
   0xb   : > { %p185_p3 = scmp.eq.s32.totalorder %s4252_s27, 1  ;;  %p4253_p5 = scmp.ge.s32.totalorder %s5569_s26, 1 }
   0xc   : > { %p5651_p4 = por %p6581_p1, %p71_p0  ;;  %p192_p7 = scmp.lt.s32.totalorder %s5569_s26, 3 }
   0xd   : > { %p5656_p6 = por %p185_p3, %p71_p0  ;;  %s5571_s7 = smov [#allocation6]  }
   0xe   : > { %s6585_s28 = scalar_select %p5651_p4, 1, 0 }
   0xf   : > { %s6586_s29 = scalar_select %p5656_p6, 1, 0 }
  0x10   : > { %p5661_p8 = pnand %p4253_p5, %p192_p7  ;;  %s204_s8 = sshll.u32 %s5571_s7, 4  ;;  %s205_s8 = int_to_ptr.vmem [resolvable:$true] %s204_s8 }
  0x11   : > { %s5572_s10 = smov [#allocation8]   ;;  %s5402_s12 = scalar_lea.vmem %s205_s8, 36864 }
  0x12   : > { %s6587_s30 = scalar_select %p5661_p8, 1, 0 }
  0x13   : > { %p4736_p9 = pneg %p5661_p8  ;;  %s217_s11 = sshll.u32 %s5572_s10, 4  ;;  %s218_s11 = int_to_ptr.vmem [resolvable:$true] %s217_s11 }
  0x14   : > { %p5403_p13 = scmp.ne.s32.totalorder %s205_s8, %s5402_s12  ;;  %p5410_p5 = scmp.lt.s32.totalorder %s205_s8, %s205_s8 }
  0x15   : > { %p5670_p11 = pnand %p4736_p9, %p6581_p1  ;;  %p5411_p7 = scmp.lt.s32.totalorder %s5402_s12, %s5402_s12 }
  0x17   : > { %p5393_p12 = pneg %p5670_p11  ;;  %p5412_p10 = por %p5411_p7, %p5410_p5 }
  0x19   : > { %p5405_p0 = pnand %p5403_p13, %p5393_p12 }
  0x1b   : > { %p5406_p3 = pneg %p5405_p0 }
  0x1d   : > { %p5413_p9 = pnand %p5412_p10, %p5406_p3 }
  0x1f   : > { %5416 = shalt.err (!%p5413_p9)
}
  0x20   : > { %s5573_s13 = smov 128   ;;  %s5574_s14 = smov 8  }
  0x21   : > { %4739 = dma.hbm_to_vmem [thread:$0]  (!%p5670_p11), %s6576_s2, 36864, %s205_s8, [#allocation7], %s5573_s13, %s5573_s13, %s5574_s14  }
  0x22   : > { %s5428_s17 = scalar_lea.vmem %s218_s11, 8192  ;;  %p5436_p2 = scmp.lt.s32.totalorder %s218_s11, %s218_s11 }
  0x23   : > { %p5429_p1 = scmp.ne.s32.totalorder %s218_s11, %s5428_s17  ;;  %p5437_p6 = scmp.lt.s32.totalorder %s5428_s17, %s5428_s17 }
  0x25   : > { %p5431_p13 = pnand %p5429_p1, %p5393_p12  ;;  %p5438_p5 = por %p5437_p6, %p5436_p2 }
  0x27   : > { %p5432_p0 = pneg %p5431_p13 }
  0x29   : > { %p5439_p10 = pnand %p5438_p5, %p5432_p0 }
  0x2b   : > { %5442 = shalt.err (!%p5439_p10)
}
  0x2c   : > { %s5575_s18 = smov 256   ;;  %s5576_s19 = smov 16  }
  0x2d   : > { %4742 = dma.hbm_to_vmem [thread:$0]  (!%p5670_p11), %s6577_s3, 8192, %s218_s11, [#allocation7], %s5575_s18, %s5575_s18, %s5576_s19  }
  0x2e   : > { %s5577_s22 = smov [#allocation9]   ;;  %s5693_s7 = sadd.s32 1, %s5569_s26  }
  0x2f   : > { %s231_s27 = sshll.u32 %s5577_s22, 4  ;;  %s232_s27 = int_to_ptr.vmem [resolvable:$true] %s231_s27 }
  0x30   : > { %s5454_s8 = scalar_lea.vmem %s232_s27, 64  ;;  %p5462_p3 = scmp.lt.s32.totalorder %s232_s27, %s232_s27 }
  0x31   : > { %p5455_p1 = scmp.ne.s32.totalorder %s232_s27, %s5454_s8  ;;  %p5463_p7 = scmp.lt.s32.totalorder %s5454_s8, %s5454_s8 }
  0x33   : > { %p5457_p2 = pnand %p5455_p1, %p5393_p12  ;;  %p5464_p9 = por %p5463_p7, %p5462_p3 }
  0x35   : > { %p5458_p6 = pneg %p5457_p2 }
  0x37   : > { %p5465_p13 = pnand %p5464_p9, %p5458_p6 }
  0x39   : > { %5468 = shalt.err (!%p5465_p13)
}
  0x3a   : > { %4745 = dma.hbm_to_vmem [thread:$0]  (!%p5670_p11), %s6578_s4, 64, %s232_s27, [#allocation10]  }
  0x3b   : > { %s55_s12 = ssub.s32 %s5569_s26, %s5693_s7  ;;  %s58_s13 = sadd.s32 1, %s5565_s25 }
  0x3c   : > { %p56_p12 = scmp.eq.s32.totalorder %s55_s12, 0  ;;  %p65_p0 = scmp.ne.s32.totalorder %s5565_s25, %s5561_s24 }
  0x3d   : > { %p66_p5 = scmp.eq.s32.totalorder %s5569_s26, 0  ;;  %p4757_p10 = scmp.lt.s32.totalorder %s5569_s26, 2 }
  0x3e   : > { %s5711_s9 = scalar_select %p56_p12, %s5565_s25, %s58_s13  }
  0x3f   : > { %p67_p1 = por %p66_p5, %p65_p0  ;;  %p6589_p2 = scmp.eq.s32.totalorder %s5642_s5, 1 }
  0x40   : > { %s253_s15 = sand.u32 1, %s5565_s25   ;;  %s4693_s16 = sshll.u32 %s5569_s26, 5 }
  0x41   : > { %p5715_p6 = por %p6589_p2, %p65_p0  ;;  %s4258_s17 = sshll.u32 %s253_s15, 1 }
  0x42   : > { %s5724_s20 = scalar_lea.hbm %s6575_s1, %s4693_s16  ;;  %s257_s21 = scalar_lea.vmem [#allocation3], %s4258_s17 }
  0x43   : > { %s6590_s14 = scalar_select %p5715_p6, 1, 0 }
  0x44   : > { %s265_s22 = sshll.u32 %s257_s21, 4  ;;  %p5726_p11 = pnand %p4757_p10, %p67_p1  ;;  %s266_s22 = int_to_ptr.vmem [resolvable:$true] %s265_s22 }
  0x45   : > { %s254_s8 = scalar_lea.sflag [#allocation4], %s253_s15  ;;  %s5469_s10 = scalar_lea.hbm %s5724_s20, 32 }
  0x46   : > { %p5470_p3 = scmp.ne.s32.totalorder %s5724_s20, %s5469_s10  ;;  %p5471_p7 = pneg %p5726_p11 }
  0x47   : > { %s5474_s13 = scalar_lea.hbm %s6575_s1, 64  ;;  %p5475_p12 = scmp.lt.s32.totalorder %s5724_s20, %s6575_s1 }
  0x48   : > { %p5472_p9 = pnand %p5471_p7, %p5470_p3  ;;  %p5476_p0 = scmp.lt.s32.totalorder %s5474_s13, %s5469_s10 }
  0x4a   : > { %p5473_p13 = pneg %p5472_p9  ;;  %p5477_p5 = por %p5476_p0, %p5475_p12 }
  0x4c   : > { %p5478_p10 = pnand %p5477_p5, %p5473_p13 }
  0x4e   : > { %5481 = shalt.err (!%p5478_p10)
}
  0x4f   : > { %s5482_s18 = scalar_lea.vmem %s266_s22, 32  ;;  %s5578_s15 = smov [#allocation3]  }
  0x50   : > { %p5483_p1 = scmp.ne.s32.totalorder %s266_s22, %s5482_s18  ;;  %s5487_s19 = sshll.u32 %s5578_s15, 4  ;;  %s5488_s19 = int_to_ptr.vmem [resolvable:$false] %s5487_s19 }
  0x51   : > { %s5489_s21 = scalar_lea.vmem %s5488_s19, 64  ;;  %p5490_p3 = scmp.lt.s32.totalorder %s266_s22, %s5488_s19 }
  0x52   : > { %p5485_p2 = pnand %p5483_p1, %p5471_p7  ;;  %p5491_p9 = scmp.lt.s32.totalorder %s5489_s21, %s5482_s18 }
  0x54   : > { %p5486_p6 = pneg %p5485_p2  ;;  %p5492_p4 = por %p5491_p9, %p5490_p3 }
  0x56   : > { %p5493_p8 = pnand %p5492_p4, %p5486_p6 }
  0x58   : > { %5496 = shalt.err (!%p5493_p8)
}
  0x59   : > { %4749 = dma.hbm_to_vmem [thread:$0]  (!%p5726_p11), %s5724_s20, 32, %s266_s22, %s254_s8  }
  0x5a   : > { %p6592_p13 = scmp.ne.s32.totalorder %s6587_s30, 0 }
  0x5c   : > { %274 = sbr.rel (%p6592_p13) target bundleno = 1496 (0x5d8), region = 44 }
  0x61   : > { %s5747_s10 = sand.u32 1, %s5561_s24   ;;  %p6593_p7 = scmp.ne.s32.totalorder %s6585_s28, 0 }
  0x62   : > { %s4262_s11 = sshll.u32 %s5747_s10, 1  ;;  %s277_s12 = scalar_lea.sflag [#allocation4], %s5747_s10 }
  0x63   : > { %s5751_s13 = scalar_lea.vmem [#allocation3], %s4262_s11 }
  0x64   : > { %5540 = dma.done.wait (%p6593_p7), %s277_s12, 32  }
  0x65   : > { %5542 = vsyncadd (%p6593_p7), %s277_s12, 4294967264  ;;  %p6594_p4 = scmp.eq.s32.totalorder %s5642_s5, 0 }
  0x67   : > { %5544 = dma.done.wait (%p6594_p4), [#allocation7], 45056   ;;  %p6595_p8 = pmov %p6594_p4 }
  0x68   : > { %p6596_p6 = pmov %p6594_p4 }
  0x69   : > { %5546 = vsyncadd (%p6595_p8), [#allocation7], 4294922240 }
  0x6a   : > { %5548 = dma.done.wait (%p6596_p6), [#allocation10], 64   ;;  %p6597_p11 = pmov %p6594_p4 }
  0x6b   : > { %v4804_v0 = vld [vmem:[#allocation6 + $0x374] ss:$8 sps:$4 sm:$0xff]   ;;  %v4808_v2 = vld [vmem:[#allocation6 + $0x370] ss:$8 sps:$4 sm:$0xff]   ;;  %v4810_v4 = vld [vmem:[#allocation6 + $0x364] ss:$8 sps:$4 sm:$0xff]  }
  0x6c   : > { %5550 = vsyncadd (%p6597_p11), [#allocation10], 4294967232  ;;  %v4806_v1 = vld [vmem:[#allocation6 + $0x474] ss:$8 sps:$4 sm:$0xff]   ;;  %1304 = vmatprep.subr.bf16.mxu0 %v4804_v0  ;;  %v4809_v3 = vld [vmem:[#allocation6 + $0x470] ss:$8 sps:$4 sm:$0xff]  }
  0x6d   : > { %1377 = vmatprep.subr.bf16.mxu1 %v4806_v1  ;;  %1305 = vmatpush1.bf16.msra.mxu0 %v4808_v2  ;;  %v4812_v5 = vld [vmem:[#allocation6 + $0x464] ss:$8 sps:$4 sm:$0xff]   ;;  %v4814_v6 = vld [vmem:[#allocation6 + $0x360] ss:$8 sps:$4 sm:$0xff]   ;;  %v4816_v8 = vld [vmem:[#allocation6 + $0x354] ss:$8 sps:$4 sm:$0xff]  }
  0x6e   : > { %1378 = vmatpush1.bf16.msra.mxu1 %v4809_v3  ;;  %1306 = vmatprep.subr.bf16.mxu0 %v4810_v4  ;;  %v4815_v7 = vld [vmem:[#allocation6 + $0x460] ss:$8 sps:$4 sm:$0xff]   ;;  %v4818_v9 = vld [vmem:[#allocation6 + $0x454] ss:$8 sps:$4 sm:$0xff]   ;;  %v4820_v10 = vld [vmem:[#allocation6 + $0x350] ss:$8 sps:$4 sm:$0xff]  }
  0x6f   : > { %1379 = vmatprep.subr.bf16.mxu1 %v4812_v5  ;;  %v4821_v11 = vld [vmem:[#allocation6 + $0x450] ss:$8 sps:$4 sm:$0xff]   ;;  %v4822_v12 = vld [vmem:[#allocation6 + $0x344] ss:$8 sps:$4 sm:$0xff]   ;;  %v4826_v14 = vld [vmem:[#allocation6 + $0x340] ss:$8 sps:$4 sm:$0xff]  }
  0x70   : > { %v4824_v13 = vld [vmem:[#allocation6 + $0x444] ss:$8 sps:$4 sm:$0xff]   ;;  %v4827_v15 = vld [vmem:[#allocation6 + $0x440] ss:$8 sps:$4 sm:$0xff]   ;;  %v4828_v16 = vld [vmem:[#allocation6 + $0x334] ss:$8 sps:$4 sm:$0xff]  }
  0x71   : > { %1307 = vmatpush1.bf16.msra.mxu0 %v4814_v6  ;;  %v4830_v17 = vld [vmem:[#allocation6 + $0x434] ss:$8 sps:$4 sm:$0xff]   ;;  %v4832_v18 = vld [vmem:[#allocation6 + $0x330] ss:$8 sps:$4 sm:$0xff]   ;;  %v4834_v20 = vld [vmem:[#allocation6 + $0x324] ss:$8 sps:$4 sm:$0xff]  }
  0x72   : > { %1380 = vmatpush1.bf16.msra.mxu1 %v4815_v7  ;;  %1308 = vmatprep.subr.bf16.mxu0 %v4816_v8  ;;  %v4833_v19 = vld [vmem:[#allocation6 + $0x430] ss:$8 sps:$4 sm:$0xff]   ;;  %v4836_v21 = vld [vmem:[#allocation6 + $0x424] ss:$8 sps:$4 sm:$0xff]   ;;  %v4838_v22 = vld [vmem:[#allocation6 + $0x320] ss:$8 sps:$4 sm:$0xff]  }
  0x73   : > { %1381 = vmatprep.subr.bf16.mxu1 %v4818_v9  ;;  %v4839_v23 = vld [vmem:[#allocation6 + $0x420] ss:$8 sps:$4 sm:$0xff]   ;;  %v4840_v24 = vld [vmem:[#allocation6 + $0x314] ss:$8 sps:$4 sm:$0xff]   ;;  %v4844_v26 = vld [vmem:[#allocation6 + $0x310] ss:$8 sps:$4 sm:$0xff]  }
  0x74   : > { %v4842_v25 = vld [vmem:[#allocation6 + $0x414] ss:$8 sps:$4 sm:$0xff]   ;;  %v4845_v27 = vld [vmem:[#allocation6 + $0x410] ss:$8 sps:$4 sm:$0xff]   ;;  %v4846_v28 = vld [vmem:[#allocation6 + $0x304] ss:$8 sps:$4 sm:$0xff]  }
  0x75   : > { %1309 = vmatpush1.bf16.msra.mxu0 %v4820_v10  ;;  %v4848_v29 = vld [vmem:[#allocation6 + $0x404] ss:$8 sps:$4 sm:$0xff]   ;;  %v4850_v30 = vld [vmem:[#allocation6 + $0x300] ss:$8 sps:$4 sm:$0xff]   ;;  %p326_p12 = scmp.lt.s32.totalorder %s5642_s5, 1  ;;  %vm2308_vm3 = vcmask 1042432  }
  0x76   : > { %1382 = vmatpush1.bf16.msra.mxu1 %v4821_v11  ;;  %1310 = vmatprep.subr.bf16.mxu0 %v4822_v12  ;;  %v4851_v31 = vld [vmem:[#allocation6 + $0x400] ss:$8 sps:$4 sm:$0xff]   ;;  %v4852_v32 = vld [vmem:[#allocation6 + $0x3f4] ss:$8 sps:$4 sm:$0xff]   ;;  %v4856_v34 = vld [vmem:[#allocation6 + $0x3f0] ss:$8 sps:$4 sm:$0xff]  }
  0x77   : > { %1383 = vmatprep.subr.bf16.mxu1 %v4824_v13  ;;  %v4854_v33 = vld [vmem:[#allocation6 + $0x4f4] ss:$8 sps:$4 sm:$0xff]   ;;  %v4857_v35 = vld [vmem:[#allocation6 + $0x4f0] ss:$8 sps:$4 sm:$0xff]   ;;  %s327_s28 = scalar_select %p326_p12, %s5642_s5, 1  ;;  %vm2309_vm4 = vcmask 1046532  }
  0x78   : > { %v4858_v36 = vld [vmem:[#allocation6 + $0x3e4] ss:$8 sps:$4 sm:$0xff]   ;;  %v4862_v38 = vld [vmem:[#allocation6 + $0x3e0] ss:$8 sps:$4 sm:$0xff]   ;;  %v4864_v40 = vld [vmem:[#allocation6 + $0x3d4] ss:$8 sps:$4 sm:$0xff]  }
  0x79   : > { %1311 = vmatpush1.bf16.msra.mxu0 %v4826_v14  ;;  %v4860_v37 = vld [vmem:[#allocation6 + $0x4e4] ss:$8 sps:$4 sm:$0xff]   ;;  %s4719_s30 = smul.u32 160, %s327_s28  ;;  %v4863_v39 = vld [vmem:[#allocation6 + $0x4e0] ss:$8 sps:$4 sm:$0xff]   ;;  %vm5963_vm5 = vmor %vm2308_vm3, %vm2309_vm4  ;;  %vm3888_vm6 = vcmask 523264  }
  0x7a   : > { %1384 = vmatpush1.bf16.msra.mxu1 %v4827_v15  ;;  %1312 = vmatprep.subr.bf16.mxu0 %v4828_v16  ;;  %v4866_v41 = vld [vmem:[#allocation6 + $0x4d4] ss:$8 sps:$4 sm:$0xff]   ;;  %v4868_v42 = vld [vmem:[#allocation6 + $0x3d0] ss:$8 sps:$4 sm:$0xff]   ;;  %v4870_v44 = vld [vmem:[#allocation6 + $0x3c4] ss:$8 sps:$4 sm:$0xff]  }
  0x7b   : > { %1385 = vmatprep.subr.bf16.mxu1 %v4830_v17  ;;  %v4869_v43 = vld [vmem:[#allocation6 + $0x4d0] ss:$8 sps:$4 sm:$0xff]   ;;  %s5770_s27 = scalar_lea.vmem %s6574_s0, %s4719_s30  ;;  %vm528_vm0 = vsmask.f32 3328  ;;  %v4872_v45 = vld [vmem:[#allocation6 + $0x4c4] ss:$8 sps:$4 sm:$0xff]  }
  0x7c   : > { %vm529_vm1 = vsmask.f32 7440  ;;  %v4874_v46 = vld [vmem:[#allocation6 + $0x3c0] ss:$8 sps:$4 sm:$0xff]   ;;  %v4876_v49 = vld [vmem:[#allocation6 + $0x3b4] ss:$8 sps:$4 sm:$0xff]  }
  0x7d   : > { %1313 = vmatpush1.bf16.msra.mxu0 %v4832_v18  ;;  %v4875_v47 = vld [vmem:[#allocation6 + $0x4c0] ss:$8 sps:$4 sm:$0xff]   ;;  %v5776_v50 = vld [vmem:[%s5770_s27 + $0x10] sm:$0xff]  ;;  %v469_v52 = vld [vmem:[%s5770_s27 + $0x18] sm:$0x11]  ;;  %s4074_s8 = sld [smem:[#allocation2]] }
  0x7e   : > { %1386 = vmatpush1.bf16.msra.mxu1 %v4833_v19  ;;  %1314 = vmatprep.subr.bf16.mxu0 %v4834_v20  ;;  %v5773_v48 = vld [vmem:[%s5770_s27] sm:$0xff]  ;;  %v468_v51 = vld [vmem:[%s5770_s27 + $0x8] sm:$0x11]  ;;  %v546_v56 = vshrl.u32 %v5776_v50, 16  ;;  %v549_v57 = vshll.u32 %v5776_v50, 16  ;;  %v555_v61 = vshll.u32 %v469_v52, 16  ;;  %vm5792_vm2 = vmor %vm528_vm0, %vm529_vm1 }
  0x7f   : > { %1387 = vmatprep.subr.bf16.mxu1 %v4836_v21  ;;  %v532_v53 = vshrl.u32 %v5773_v48, 16  ;;  %v535_v54 = vshll.u32 %v5773_v48, 16  ;;  %v541_v55 = vshll.u32 %v468_v51, 16  ;;  %v5785_v58 = vld [vmem:[%s5770_s27 + $0x20] sm:$0xff]  ;;  %v470_v62 = vld [vmem:[%s5770_s27 + $0x28] sm:$0x11]  ;;  %v4382_v16 = vcombine.low %v5773_v48, %v5776_v50 }
  0x80   : > { %v4878_v59 = vld [vmem:[#allocation6 + $0x4b4] ss:$8 sps:$4 sm:$0xff]   ;;  %v4880_v63 = vld [vmem:[#allocation6 + $0x3b0] ss:$8 sps:$4 sm:$0xff]   ;;  %v548_v1 = vrot.slane %v546_v56, 4  ;;  %v551_v2 = vrot.slane %v549_v57, 5 }
  0x81   : > { %1315 = vmatpush1.bf16.msra.mxu0 %v4838_v22  ;;  %v534_v60 = vrot.slane %v532_v53, 4  ;;  %v537_v0 = vrot.slane %v535_v54, 5  ;;  %v4881_v3 = vld [vmem:[#allocation6 + $0x4b0] ss:$8 sps:$4 sm:$0xff]   ;;  %v560_v4 = vshrl.u32 %v5785_v58, 16  ;;  %v563_v5 = vshll.u32 %v5785_v58, 16 }
  0x82   : > { %1388 = vmatpush1.bf16.msra.mxu1 %v4839_v23  ;;  %1316 = vmatprep.subr.bf16.mxu0 %v4840_v24  ;;  %v569_v6 = vshll.u32 %v470_v62, 16  ;;  %v4882_v7 = vld [vmem:[#allocation6 + $0x3a4] ss:$8 sps:$4 sm:$0xff]   ;;  %v543_v9 = vrot.slane %v541_v55, 5  ;;  %v552_v10 = vor.u32 %v551_v2, %v548_v1  ;;  %v557_v11 = vrot.slane %v555_v61, 5  ;;  %s4266_s16 = sshll.u32 %s5747_s10, 7 }
  0x83   : > { %1389 = vmatprep.subr.bf16.mxu1 %v4842_v25  ;;  %v538_v8 = vor.u32 %v537_v0, %v534_v60  ;;  %v4884_v12 = vld [vmem:[#allocation6 + $0x4a4] ss:$8 sps:$4 sm:$0xff]   ;;  %v562_v14 = vrot.slane %v560_v4, 4  ;;  %v565_v15 = vrot.slane %v563_v5, 5  ;;  %v4886_v19 = vld [vmem:[#allocation6 + $0x3a0] ss:$8 sps:$4 sm:$0xff]  }
  0x84   : > { %v553_v18 = vrot.slane %v552_v10, 4  ;;  %v571_v21 = vrot.slane %v569_v6, 5  ;;  %v4887_v22 = vld [vmem:[#allocation6 + $0x4a0] ss:$8 sps:$4 sm:$0xff]   ;;  %v4888_v25 = vld [vmem:[#allocation6 + $0x394] ss:$8 sps:$4 sm:$0xff]  }
  0x85   : > { %1317 = vmatpush1.bf16.msra.mxu0 %v4844_v26  ;;  %v539_v17 = vrot.slane %v538_v8, 4  ;;  %v566_v20 = vor.u32 %v565_v15, %v562_v14  ;;  %v4890_v26 = vld [vmem:[#allocation6 + $0x494] ss:$8 sps:$4 sm:$0xff]   ;;  %v4912_v53 = vld [vmem:[#allocation6 + $0x550] ss:$8 sps:$4 sm:$0xff]   ;;  %s6477_s17 = scalar_lea.vmem [#allocation11], %s4266_s16 }
  0x86   : > { %1390 = vmatpush1.bf16.msra.mxu1 %v4845_v27  ;;  %1318 = vmatprep.subr.bf16.mxu0 %v4846_v28  ;;  %v558_v24 = vsel %vm5792_vm2, %v553_v18, %v557_v11  ;;  %v4914_v51 = vld [vmem:[#allocation6 + $0x554] ss:$8 sps:$4 sm:$0xff]   ;;  %v4915_v54 = vld [vmem:[#allocation6 + $0x50] ss:$8 sps:$4 sm:$0xff]   ;;  %v4920_v55 = vld [vmem:[#allocation6 + $0x544] ss:$8 sps:$4 sm:$0xff]  }
  0x87   : > { %1391 = vmatprep.subr.bf16.mxu1 %v4848_v29  ;;  %v544_v23 = vsel %vm5792_vm2, %v539_v17, %v543_v9  ;;  %v567_v28 = vrot.slane %v566_v20, 4  ;;  %v4892_v29 = vld [vmem:[#allocation6 + $0x390] ss:$8 sps:$4 sm:$0xff]   ;;  %v4917_v52 = vld [vmem:[#allocation6 + $0x54] ss:$8 sps:$4 sm:$0xff]   ;;  %s4694_s18 = sshll.u32 %s5642_s5, 11 }
  0x88   : > { %v4269_v27 = vcombine.high %v544_v23, %v558_v24  ;;  %v5813_v56 = vld [vmem:[%s5770_s27 + $0x30] sm:$0xff]  ;;  %v471_v57 = vld [vmem:[%s5770_s27 + $0x38] sm:$0x11]  ;;  %v4918_v8 = vld [vmem:[#allocation6 + $0x540] ss:$8 sps:$4 sm:$0xff]   ;;  %s4138_s15 = sshll.u32 %s6477_s17, 4  ;;  %s6526_s11 = scalar_lea.hbm %s6580_s6, %s4694_s18  ;;  %s6528_s15 = int_to_ptr.vmem [resolvable:$true] %s4138_s15 }
  0x89   : > { %1319 = vmatpush1.bf16.msra.mxu0 %v4850_v30  ;;  %v5804_v30 = vsel %vm5792_vm2, %v567_v28, %v571_v21  ;;  %v574_v60 = vshrl.u32 %v5813_v56, 16  ;;  %v577_v61 = vshll.u32 %v5813_v56, 16  ;;  %v583_v62 = vshll.u32 %v471_v57, 16  ;;  %v4923_v1 = vld [vmem:[#allocation6 + $0x44] ss:$8 sps:$4 sm:$0xff]   ;;  %s4125_s5 = scalar_lea.sflag [#allocation5], %s5747_s10 }
  0x8a   : > { %1392 = vmatpush1.bf16.msra.mxu1 %v4851_v31  ;;  %1320 = vmatprep.subr.bf16.mxu0 %v4852_v32  ;;  %v4893_v31 = vld [vmem:[#allocation6 + $0x490] ss:$8 sps:$4 sm:$0xff]   ;;  %v4271_v32 = vcombine.high %v558_v24, %v5804_v30  ;;  %v5826_v4 = vcombine.low %v5785_v58, %v5813_v56  ;;  %v4926_v17 = vld [vmem:[#allocation6 + $0x534] ss:$8 sps:$4 sm:$0xff]   ;;  %v5035_v13 = vld [vmem:[#allocation6 + $0x220] ss:$8 sps:$4 sm:$0xff]  }
  0x8b   : > { %1393 = vmatprep.subr.bf16.mxu1 %v4854_v33  ;;  %1336 = vmatprep.mubr.bf16.mxu0 %v4269_v27  ;;  %v4894_v33 = vld [vmem:[#allocation6 + $0x384] ss:$8 sps:$4 sm:$0xff]   ;;  %v576_v5 = vrot.slane %v574_v60, 4  ;;  %v579_v6 = vrot.slane %v577_v61, 5  ;;  %v585_v15 = vrot.slane %v583_v62, 5  ;;  %v5837_v27 = vld [vmem:[%s5770_s27 + $0x60] sm:$0xff] }
  0x8c   : > { %1409 = vmatprep.mubr.bf16.mxu1 %v4271_v32  ;;  %v4929_v18 = vld [vmem:[#allocation6 + $0x34] ss:$8 sps:$4 sm:$0xff]   ;;  %v4924_v21 = vld [vmem:[#allocation6 + $0x530] ss:$8 sps:$4 sm:$0xff]   ;;  %s5497_s12 = scalar_lea.vmem %s6528_s15, 2048  ;;  %p6638_p5 = scmp.ne.s32.totalorder %s6590_s14, 0 }
  0x8d   : > { %1321 = vmatpush2.bf16.msra.mxu0 %v4856_v34  ;;  %v4896_v34 = vld [vmem:[#allocation6 + $0x484] ss:$8 sps:$4 sm:$0xff]   ;;  %v580_v14 = vor.u32 %v579_v6, %v576_v5  ;;  %v4941_v57 = vld [vmem:[#allocation6 + $0x14] ss:$8 sps:$4 sm:$0xff]   ;;  %p5498_p0 = scmp.ne.s32.totalorder %s6528_s15, %s5497_s12 }
  0x8e   : > { %1394 = vmatpush2.bf16.msra.mxu1 %v4857_v35  ;;  %1322 = vmatprep.subr.bf16.mxu0 %v4858_v36  ;;  %v4898_v35 = vld [vmem:[#allocation6 + $0x380] ss:$8 sps:$4 sm:$0xff]   ;;  %v475_v6 = vld [vmem:[%s5770_s27 + $0x78] sm:$0x11] }
  0x8f   : > { %1395 = vmatprep.subr.bf16.mxu1 %v4860_v37  ;;  %v4899_v36 = vld [vmem:[#allocation6 + $0x480] ss:$8 sps:$4 sm:$0xff]   ;;  %v4902_v37 = vld [vmem:[#allocation6 + $0x574] ss:$8 sps:$4 sm:$0xff]   ;;  %p5499_p10 = pnand %p5498_p0, %p6638_p5 }
  0x91   : > { %1323 = vmatpush2.bf16.msra.mxu0 %v4862_v38  ;;  %v4905_v38 = vld [vmem:[#allocation6 + $0x74] ss:$8 sps:$4 sm:$0xff]   ;;  %p5500_p1 = pneg %p5499_p10 }
  0x92   : > { %1396 = vmatpush2.bf16.msra.mxu1 %v4863_v39  ;;  %1324 = vmatprep.subr.bf16.mxu0 %v4864_v40  ;;  %v4268_v39 = vcombine.low %v544_v23, %v558_v24  ;;  %v4270_v40 = vcombine.low %v558_v24, %v5804_v30  ;;  %v581_v23 = vrot.slane %v580_v14, 4  ;;  %v639_v14 = vshll.u32 %v475_v6, 16  ;;  %v4954_v6 = vld [vmem:[#allocation6 + $0x5e0] ss:$8 sps:$4 sm:$0xff]  }
  0x93   : > { %1397 = vmatprep.subr.bf16.mxu1 %v4866_v41  ;;  %v4900_v41 = vld [vmem:[#allocation6 + $0x570] ss:$8 sps:$4 sm:$0xff]  }
  0x94   : > { %v586_v28 = vsel %vm5792_vm2, %v581_v23, %v585_v15  ;;  %v476_v15 = vld [vmem:[%s5770_s27 + $0x88] sm:$0x11] }
  0x95   : > { %1325 = vmatpush2.bf16.msra.mxu0 %v4868_v42  ;;  %v4903_v42 = vld [vmem:[#allocation6 + $0x70] ss:$8 sps:$4 sm:$0xff]  }
  0x96   : > { %1398 = vmatpush2.bf16.msra.mxu1 %v4869_v43  ;;  %1326 = vmatprep.subr.bf16.mxu0 %v4870_v44  ;;  %v4385_v43 = vcombine.high %v5776_v50, %v5785_v58  ;;  %v4384_v44 = vcombine.low %v5776_v50, %v5785_v58 }
  0x97   : > { %1399 = vmatprep.subr.bf16.mxu1 %v4872_v45  ;;  %v4908_v45 = vld [vmem:[#allocation6 + $0x564] ss:$8 sps:$4 sm:$0xff]  }
  0x99   : > { %1327 = vmatpush2.bf16.msra.mxu0 %v4874_v46  ;;  %v4911_v46 = vld [vmem:[#allocation6 + $0x64] ss:$8 sps:$4 sm:$0xff]  }
  0x9a   : > { %1400 = vmatpush2.bf16.msra.mxu1 %v4875_v47  ;;  %1328 = vmatprep.subr.bf16.mxu0 %v4876_v49  ;;  %v4906_v47 = vld [vmem:[#allocation6 + $0x560] ss:$8 sps:$4 sm:$0xff]  }
  0x9b   : > { %1401 = vmatprep.subr.bf16.mxu1 %v4878_v59  ;;  %v4909_v49 = vld [vmem:[#allocation6 + $0x60] ss:$8 sps:$4 sm:$0xff]  }
  0x9c   : > { %v5817_v59 = vld [vmem:[%s5770_s27 + $0x40] sm:$0xff] }
  0x9d   : > { %1329 = vmatpush2.bf16.msra.mxu0 %v4880_v63  ;;  %v472_v63 = vld [vmem:[%s5770_s27 + $0x48] sm:$0x11]  ;;  %v588_v0 = vshrl.u32 %v5817_v59, 16  ;;  %v591_v2 = vshll.u32 %v5817_v59, 16  ;;  %v4389_v10 = vcombine.high %v5813_v56, %v5817_v59  ;;  %v4388_v11 = vcombine.low %v5813_v56, %v5817_v59 }
  0x9e   : > { %1402 = vmatpush2.bf16.msra.mxu1 %v4881_v3  ;;  %1330 = vmatprep.subr.bf16.mxu0 %v4882_v7  ;;  %v597_v3 = vshll.u32 %v472_v63, 16  ;;  %v4936_v63 = vld [vmem:[#allocation6 + $0x510] ss:$8 sps:$4 sm:$0xff]  }
  0x9f   : > { %1403 = vmatprep.subr.bf16.mxu1 %v4884_v12  ;;  %v590_v7 = vrot.slane %v588_v0, 4  ;;  %v593_v9 = vrot.slane %v591_v2, 5  ;;  %v4921_v12 = vld [vmem:[#allocation6 + $0x40] ss:$8 sps:$4 sm:$0xff]   ;;  %v4939_v0 = vld [vmem:[#allocation6 + $0x10] ss:$8 sps:$4 sm:$0xff]  }
  0xa0   : > { %v599_v20 = vrot.slane %v597_v3, 5  ;;  %v5865_v3 = vld [vmem:[%s5770_s27 + $0x70] sm:$0xff] }
  0xa1   : > { %1331 = vmatpush2.bf16.msra.mxu0 %v4886_v19  ;;  %v594_v19 = vor.u32 %v593_v9, %v590_v7  ;;  %v630_v7 = vshrl.u32 %v5865_v3, 16  ;;  %v5871_v9 = vld [vmem:[%s5770_s27 + $0x80] sm:$0xff] }
  0xa2   : > { %1404 = vmatpush2.bf16.msra.mxu1 %v4887_v22  ;;  %1332 = vmatprep.subr.bf16.mxu0 %v4888_v25  ;;  %v4927_v22 = vld [vmem:[#allocation6 + $0x30] ss:$8 sps:$4 sm:$0xff]  }
  0xa3   : > { %1405 = vmatprep.subr.bf16.mxu1 %v4890_v26  ;;  %v595_v24 = vrot.slane %v594_v19, 4  ;;  %v5833_v25 = vld [vmem:[%s5770_s27 + $0x50] sm:$0xff]  ;;  %v473_v26 = vld [vmem:[%s5770_s27 + $0x58] sm:$0x11]  ;;  %v632_v23 = vrot.slane %v630_v7, 4 }
  0xa4   : > { %v611_v32 = vshll.u32 %v473_v26, 16  ;;  %v4393_v61 = vcombine.high %v5833_v25, %v5837_v27  ;;  %v4392_v62 = vcombine.low %v5833_v25, %v5837_v27  ;;  %v4944_v19 = vld [vmem:[#allocation6 + $0x504] ss:$8 sps:$4 sm:$0xff]  }
  0xa5   : > { %1333 = vmatpush2.bf16.msra.mxu0 %v4892_v29  ;;  %v602_v29 = vshrl.u32 %v5833_v25, 16 }
  0xa6   : > { %1406 = vmatpush2.bf16.msra.mxu1 %v4893_v31  ;;  %1334 = vmatprep.subr.bf16.mxu0 %v4894_v33  ;;  %v605_v31 = vshll.u32 %v5833_v25, 16  ;;  %v474_v33 = vld [vmem:[%s5770_s27 + $0x68] sm:$0x11] }
  0xa7   : > { %1407 = vmatprep.subr.bf16.mxu1 %v4896_v34  ;;  %v4932_v34 = vld [vmem:[#allocation6 + $0x524] ss:$8 sps:$4 sm:$0xff]  }
  0xa9   : > { %1335 = vmatpush2.bf16.msra.mxu0 %v4898_v35  ;;  %v4935_v35 = vld [vmem:[#allocation6 + $0x24] ss:$8 sps:$4 sm:$0xff]  }
  0xaa   : > { %1408 = vmatpush2.bf16.msra.mxu1 %v4899_v36  ;;  %1450 = vmatprep.subr.bf16.mxu0 %v4902_v37  ;;  %v5845_v36 = vcombine.high %v5804_v30, %v586_v28  ;;  %v600_v37 = vsel %vm5792_vm2, %v595_v24, %v599_v20  ;;  %v4947_v20 = vld [vmem:[#allocation6 + $0x4] ss:$8 sps:$4 sm:$0xff]  }
  0xab   : > { %2039 = vmatprep.subr.bf16.mxu1 %v4905_v38  ;;  %v616_v38 = vshrl.u32 %v5837_v27, 16 }
  0xac   : > { %1337 = vmatmul.mubr.bf16.vlgmr.msra.gmra.mxu0 %v4268_v39  ;;  %v4930_v39 = vld [vmem:[#allocation6 + $0x520] ss:$8 sps:$4 sm:$0xff]  }
  0xad   : > { %1410 = vmatmul.mubr.bf16.vlgmr.msra.gmra.mxu1 %v4270_v40  ;;  %1451 = vmatpush1.bf16.msra.mxu0 %v4900_v41  ;;  %v4275_v40 = vcombine.high %v586_v28, %v600_v37  ;;  %v5851_v41 = vcombine.low %v5804_v30, %v586_v28  ;;  %v5857_v30 = vcombine.low %v5817_v59, %v5833_v25 }
  0xae   : > { %2040 = vmatpush1.bf16.msra.mxu1 %v4903_v42  ;;  %1452 = vmatprep.subr.bf16.mxu0 %v4908_v45  ;;  %v604_v42 = vrot.slane %v602_v29, 4  ;;  %v607_v45 = vrot.slane %v605_v31, 5  ;;  %v4942_v31 = vld [vmem:[#allocation6 + $0x500] ss:$8 sps:$4 sm:$0xff]  }
  0xaf   : > { %2041 = vmatprep.subr.bf16.mxu1 %v4911_v46  ;;  %v4933_v46 = vld [vmem:[#allocation6 + $0x20] ss:$8 sps:$4 sm:$0xff]   ;;  %1346 = vmatprep.mubr.bf16.mxu0 %v5845_v36 }
  0xb0   : > { %1419 = vmatprep.mubr.bf16.mxu1 %v4275_v40 }
  0xb1   : > { %1453 = vmatpush1.bf16.msra.mxu0 %v4906_v47  ;;  %v4274_v47 = vcombine.low %v586_v28, %v600_v37 }
  0xb2   : > { %2042 = vmatpush1.bf16.msra.mxu1 %v4909_v49  ;;  %1454 = vmatprep.subr.bf16.mxu0 %v4914_v51  ;;  %v618_v49 = vrot.slane %v616_v38, 4  ;;  %v619_v51 = vshll.u32 %v5837_v27, 16  ;;  %v4950_v38 = vld [vmem:[#allocation6 + $0x5f4] ss:$8 sps:$4 sm:$0xff]  }
  0xb3   : > { %2043 = vmatprep.subr.bf16.mxu1 %v4917_v52  ;;  %v625_v52 = vshll.u32 %v474_v33, 16  ;;  %v653_v33 = vshll.u32 %v476_v15, 16  ;;  %v4383_v15 = vcombine.high %v5773_v48, %v5776_v50  ;;  %v5116_v50 = vld [vmem:[#allocation6 + $0x650] ss:$8 sps:$4 sm:$0xff]  }
  0xb4   : > { %v621_v60 = vrot.slane %v619_v51, 5  ;;  %1347 = vmatmul.mubr.bf16.gmra.mxu0 %v5851_v41  ;;  %v4396_v51 = vcombine.low %v5865_v3, %v5871_v9 }
  0xb5   : > { %1455 = vmatpush1.bf16.msra.mxu0 %v4912_v53  ;;  %v4938_v53 = vld [vmem:[#allocation6 + $0x514] ss:$8 sps:$4 sm:$0xff]   ;;  %v627_v2 = vrot.slane %v625_v52, 5  ;;  %1420 = vmatmul.mubr.bf16.gmra.mxu1 %v4274_v47 }
  0xb6   : > { %2044 = vmatpush1.bf16.msra.mxu1 %v4915_v54  ;;  %1456 = vmatprep.subr.bf16.mxu0 %v4920_v55  ;;  %v608_v54 = vor.u32 %v607_v45, %v604_v42  ;;  %v613_v55 = vrot.slane %v611_v32, 5  ;;  %v622_v5 = vor.u32 %v621_v60, %v618_v49  ;;  %v641_v45 = vrot.slane %v639_v14, 5  ;;  %v4965_v14 = vld [vmem:[#allocation6 + $0xd4] ss:$8 sps:$4 sm:$0xff]  }
  0xb7   : > { %2045 = vmatprep.subr.bf16.mxu1 %v4923_v1  ;;  %v655_v49 = vrot.slane %v653_v33, 5  ;;  %v5912_v33 = vld [vmem:[%s5770_s27 + $0x90] sm:$0xff] }
  0xb8   : > { %v609_v1 = vrot.slane %v608_v54, 4 }
  0xb9   : > { %1457 = vmatpush1.bf16.msra.mxu0 %v4918_v8  ;;  %v633_v8 = vshll.u32 %v5865_v3, 16 }
  0xba   : > { %2046 = vmatpush1.bf16.msra.mxu1 %v4921_v12  ;;  %1458 = vmatprep.subr.bf16.mxu0 %v4926_v17  ;;  %v614_v12 = vsel %vm5792_vm2, %v609_v1, %v613_v55  ;;  %v644_v17 = vshrl.u32 %v5871_v9, 16  ;;  %v4951_v55 = vld [vmem:[#allocation6 + $0xf0] ss:$8 sps:$4 sm:$0xff]  }
  0xbb   : > { %2047 = vmatprep.subr.bf16.mxu1 %v4929_v18  ;;  %v647_v18 = vshll.u32 %v5871_v9, 16  ;;  %v5880_v24 = vcombine.low %v600_v37, %v614_v12  ;;  %v635_v26 = vrot.slane %v633_v8, 5  ;;  %v4957_v8 = vld [vmem:[#allocation6 + $0xe0] ss:$8 sps:$4 sm:$0xff]  }
  0xbc   : > { %v646_v28 = vrot.slane %v644_v17, 4  ;;  %v4960_v17 = vld [vmem:[#allocation6 + $0x5d0] ss:$8 sps:$4 sm:$0xff]  }
  0xbd   : > { %1459 = vmatpush1.bf16.msra.mxu0 %v4924_v21  ;;  %v5878_v21 = vcombine.high %v600_v37, %v614_v12  ;;  %v649_v29 = vrot.slane %v647_v18, 5  ;;  %v4945_v37 = vld [vmem:[#allocation6] ss:$8 sps:$4 sm:$0xff]   ;;  %v636_v42 = vor.u32 %v635_v26, %v632_v23  ;;  %v4963_v18 = vld [vmem:[#allocation6 + $0xd0] ss:$8 sps:$4 sm:$0xff]  }
  0xbe   : > { %2048 = vmatpush1.bf16.msra.mxu1 %v4927_v22  ;;  %1460 = vmatprep.subr.bf16.mxu0 %v4932_v34  ;;  %v623_v22 = vrot.slane %v622_v5, 4  ;;  %v5887_v34 = vcombine.low %v5837_v27, %v5865_v3  ;;  %v4969_v23 = vld [vmem:[#allocation6 + $0xc0] ss:$8 sps:$4 sm:$0xff]   ;;  %v4974_v26 = vld [vmem:[#allocation6 + $0x5b4] ss:$8 sps:$4 sm:$0xff]  }
  0xbf   : > { %2049 = vmatprep.subr.bf16.mxu1 %v4935_v35  ;;  %1356 = vmatprep.mubr.bf16.mxu0 %v5878_v21  ;;  %v4397_v35 = vcombine.high %v5865_v3, %v5871_v9  ;;  %v650_v47 = vor.u32 %v649_v29, %v646_v28  ;;  %v637_v52 = vrot.slane %v636_v42, 4  ;;  %v4977_v28 = vld [vmem:[#allocation6 + $0xb4] ss:$8 sps:$4 sm:$0xff]   ;;  %v4972_v29 = vld [vmem:[#allocation6 + $0x5b0] ss:$8 sps:$4 sm:$0xff]  }
  0xc0   : > { %v628_v32 = vsel %vm5792_vm2, %v623_v22, %v627_v2  ;;  %1357 = vmatmul.mubr.bf16.gmra.mxu0 %v5880_v24  ;;  %v4966_v22 = vld [vmem:[#allocation6 + $0x5c0] ss:$8 sps:$4 sm:$0xff]   ;;  %v4986_v42 = vld [vmem:[#allocation6 + $0x594] ss:$8 sps:$4 sm:$0xff]  }
  0xc1   : > { %1461 = vmatpush1.bf16.msra.mxu0 %v4930_v39  ;;  %v4279_v39 = vcombine.high %v614_v12, %v628_v32  ;;  %v4278_v40 = vcombine.low %v614_v12, %v628_v32  ;;  %v651_v54 = vrot.slane %v650_v47, 4  ;;  %v642_v60 = vsel %vm5792_vm2, %v637_v52, %v641_v45  ;;  %v4962_v12 = vld [vmem:[#allocation6 + $0x5d4] ss:$8 sps:$4 sm:$0xff]   ;;  %v4987_v47 = vld [vmem:[#allocation6 + $0x90] ss:$8 sps:$4 sm:$0xff]  }
  0xc2   : > { %2050 = vmatpush1.bf16.msra.mxu1 %v4933_v46  ;;  %1462 = vmatprep.subr.bf16.mxu0 %v4938_v53  ;;  %v4953_v46 = vld [vmem:[#allocation6 + $0xf4] ss:$8 sps:$4 sm:$0xff]   ;;  %v4948_v53 = vld [vmem:[#allocation6 + $0x5f0] ss:$8 sps:$4 sm:$0xff]   ;;  %v5903_v5 = vcombine.low %v628_v32, %v642_v60  ;;  %v4995_v52 = vld [vmem:[#allocation6 + $0x84] ss:$8 sps:$4 sm:$0xff]  }
  0xc3   : > { %2051 = vmatprep.subr.bf16.mxu1 %v4941_v57  ;;  %1429 = vmatprep.mubr.bf16.mxu1 %v4279_v39  ;;  %v4956_v57 = vld [vmem:[#allocation6 + $0x5e4] ss:$8 sps:$4 sm:$0xff]   ;;  %v5900_v1 = vsel %vm5792_vm2, %v651_v54, %v655_v49  ;;  %v4978_v39 = vld [vmem:[#allocation6 + $0x5a0] ss:$8 sps:$4 sm:$0xff]   ;;  %v4989_v45 = vld [vmem:[#allocation6 + $0x94] ss:$8 sps:$4 sm:$0xff]  }
  0xc4   : > { %1430 = vmatmul.mubr.bf16.gmra.mxu1 %v4278_v40  ;;  %v4283_v2 = vcombine.high %v642_v60, %v5900_v1  ;;  %v4282_v7 = vcombine.low %v642_v60, %v5900_v1  ;;  %v4981_v40 = vld [vmem:[#allocation6 + $0xa0] ss:$8 sps:$4 sm:$0xff]   ;;  %v4992_v49 = vld [vmem:[#allocation6 + $0x584] ss:$8 sps:$4 sm:$0xff]  }
  0xc5   : > { %1463 = vmatpush1.bf16.msra.mxu0 %v4936_v63  ;;  %v4959_v63 = vld [vmem:[#allocation6 + $0xe4] ss:$8 sps:$4 sm:$0xff]   ;;  %v4993_v54 = vld [vmem:[#allocation6 + $0x80] ss:$8 sps:$4 sm:$0xff]  }
  0xc6   : > { %2052 = vmatpush1.bf16.msra.mxu1 %v4939_v0  ;;  %1464 = vmatprep.subr.bf16.mxu0 %v4944_v19  ;;  %v5896_v0 = vcombine.high %v628_v32, %v642_v60  ;;  %v4968_v19 = vld [vmem:[#allocation6 + $0x5c4] ss:$8 sps:$4 sm:$0xff]   ;;  %v4997_v60 = vld [vmem:[#allocation6 + $0x170] ss:$8 sps:$4 sm:$0xff]  }
  0xc7   : > { %2053 = vmatprep.subr.bf16.mxu1 %v4947_v20  ;;  %1439 = vmatprep.mubr.bf16.mxu1 %v4283_v2  ;;  %v4971_v20 = vld [vmem:[#allocation6 + $0xc4] ss:$8 sps:$4 sm:$0xff]   ;;  %v661_v2 = vshll.u32 %v5912_v33, 16 }
  0xc8   : > { %1366 = vmatprep.mubr.bf16.mxu0 %v5896_v0  ;;  %v4983_v32 = vld [vmem:[#allocation6 + $0xa4] ss:$8 sps:$4 sm:$0xff]  }
  0xc9   : > { %1465 = vmatpush1.bf16.msra.mxu0 %v4942_v31  ;;  %v4980_v31 = vld [vmem:[#allocation6 + $0x5a4] ss:$8 sps:$4 sm:$0xff]  }
  0xca   : > { %2054 = vmatpush1.bf16.msra.mxu1 %v4945_v37  ;;  %1466 = vmatprep.subr.bf16.mxu0 %v4950_v38  ;;  %v4399_v37 = vcombine.high %v5871_v9, %v5912_v33  ;;  %v4398_v38 = vcombine.low %v5871_v9, %v5912_v33  ;;  %v5164_v9 = vld [vmem:[#allocation6 + $0x6e0] ss:$8 sps:$4 sm:$0xff]  }
  0xcb   : > { %2055 = vmatprep.subr.bf16.mxu1 %v4953_v46  ;;  %1367 = vmatmul.mubr.bf16.gmra.mxu0 %v5903_v5  ;;  %v4984_v46 = vld [vmem:[#allocation6 + $0x590] ss:$8 sps:$4 sm:$0xff]  }
  0xcc   : > { %1440 = vmatmul.mubr.bf16.gmra.mxu1 %v4282_v7  ;;  %1482 = vmatprep.mubr.bf16.mxu0 %v5845_v36  ;;  %v4975_v36 = vld [vmem:[#allocation6 + $0xb0] ss:$8 sps:$4 sm:$0xff]   ;;  %v5006_v7 = vld [vmem:[#allocation6 + $0x164] ss:$8 sps:$4 sm:$0xff]  }
  0xcd   : > { %1467 = vmatpush2.bf16.msra.mxu0 %v4948_v53  ;;  %2071 = vmatprep.mubr.bf16.mxu1 %v4383_v15  ;;  %v4990_v53 = vld [vmem:[#allocation6 + $0x580] ss:$8 sps:$4 sm:$0xff]  }
  0xce   : > { %2056 = vmatpush2.bf16.msra.mxu1 %v4951_v55  ;;  %1468 = vmatprep.subr.bf16.mxu0 %v4956_v57  ;;  %v4999_v55 = vld [vmem:[#allocation6 + $0x174] ss:$8 sps:$4 sm:$0xff]   ;;  %v5007_v15 = vld [vmem:[#allocation6 + $0x260] ss:$8 sps:$4 sm:$0xff]  }
  0xcf   : > { %2057 = vmatprep.subr.bf16.mxu1 %v4959_v63  ;;  %v5002_v57 = vld [vmem:[#allocation6 + $0x274] ss:$8 sps:$4 sm:$0xff]   ;;  %v658_v63 = vshrl.u32 %v5912_v33, 16  ;;  %v5167_v33 = vld [vmem:[#allocation6 + $0x7e0] ss:$8 sps:$4 sm:$0xff]  }
  0xd1   : > { %1469 = vmatpush2.bf16.msra.mxu0 %v4954_v6  ;;  %v5000_v6 = vld [vmem:[#allocation6 + $0x270] ss:$8 sps:$4 sm:$0xff]  }
  0xd2   : > { %2058 = vmatpush2.bf16.msra.mxu1 %v4957_v8  ;;  %1470 = vmatprep.subr.bf16.mxu0 %v4962_v12  ;;  %v5009_v8 = vld [vmem:[#allocation6 + $0x264] ss:$8 sps:$4 sm:$0xff]   ;;  %v5004_v12 = vld [vmem:[#allocation6 + $0x160] ss:$8 sps:$4 sm:$0xff]  }
  0xd3   : > { %2059 = vmatprep.subr.bf16.mxu1 %v4965_v14  ;;  %v5922_v14 = vcombine.high %v5785_v58, %v5813_v56  ;;  %v5119_v58 = vld [vmem:[#allocation6 + $0x750] ss:$8 sps:$4 sm:$0xff]   ;;  %v5138_v56 = vld [vmem:[#allocation6 + $0x624] ss:$8 sps:$4 sm:$0xff]  }
  0xd5   : > { %1471 = vmatpush2.bf16.msra.mxu0 %v4960_v17  ;;  %v660_v17 = vrot.slane %v658_v63, 4  ;;  %v5051_v63 = vld [vmem:[#allocation6 + $0x204] ss:$8 sps:$4 sm:$0xff]  }
  0xd6   : > { %2060 = vmatpush2.bf16.msra.mxu1 %v4963_v18  ;;  %1472 = vmatprep.subr.bf16.mxu0 %v4968_v19  ;;  %v663_v18 = vrot.slane %v661_v2, 5  ;;  %v5012_v19 = vld [vmem:[#allocation6 + $0x154] ss:$8 sps:$4 sm:$0xff]   ;;  %v5046_v2 = vld [vmem:[#allocation6 + $0x100] ss:$8 sps:$4 sm:$0xff]  }
  0xd7   : > { %2061 = vmatprep.subr.bf16.mxu1 %v4971_v20  ;;  %v5929_v20 = vld [vmem:[%s5770_s27 + $0x98] sm:$0x11] }
  0xd8   : > { %v667_v48 = vshll.u32 %v5929_v20, 16 }
  0xd9   : > { %1473 = vmatpush2.bf16.msra.mxu0 %v4966_v22  ;;  %v5015_v22 = vld [vmem:[#allocation6 + $0x254] ss:$8 sps:$4 sm:$0xff]  }
  0xda   : > { %2062 = vmatpush2.bf16.msra.mxu1 %v4969_v23  ;;  %1474 = vmatprep.subr.bf16.mxu0 %v4974_v26  ;;  %v664_v23 = vor.u32 %v663_v18, %v660_v17  ;;  %v5020_v26 = vld [vmem:[#allocation6 + $0x144] ss:$8 sps:$4 sm:$0xff]   ;;  %v5058_v18 = vld [vmem:[#allocation6 + $0x1e0] ss:$8 sps:$4 sm:$0xff]  }
  0xdb   : > { %2063 = vmatprep.subr.bf16.mxu1 %v4977_v28  ;;  %v5023_v28 = vld [vmem:[#allocation6 + $0x244] ss:$8 sps:$4 sm:$0xff]  }
  0xdc   : > { %v5063_v17 = vld [vmem:[#allocation6 + $0x2e4] ss:$8 sps:$4 sm:$0xff]  }
  0xdd   : > { %1475 = vmatpush2.bf16.msra.mxu0 %v4972_v29  ;;  %v5936_v29 = vcombine.high %v5817_v59, %v5833_v25  ;;  %v5141_v59 = vld [vmem:[#allocation6 + $0x724] ss:$8 sps:$4 sm:$0xff]   ;;  %v5144_v25 = vld [vmem:[#allocation6 + $0x610] ss:$8 sps:$4 sm:$0xff]  }
  0xde   : > { %2064 = vmatpush2.bf16.msra.mxu1 %v4975_v36  ;;  %1476 = vmatprep.subr.bf16.mxu0 %v4980_v31  ;;  %v665_v36 = vrot.slane %v664_v23, 4  ;;  %v669_v31 = vrot.slane %v667_v48, 5  ;;  %v5064_v23 = vld [vmem:[#allocation6 + $0x1d0] ss:$8 sps:$4 sm:$0xff]   ;;  %v5075_v48 = vld [vmem:[#allocation6 + $0x2c4] ss:$8 sps:$4 sm:$0xff]  }
  0xdf   : > { %2065 = vmatprep.subr.bf16.mxu1 %v4983_v32  ;;  %v5021_v32 = vld [vmem:[#allocation6 + $0x240] ss:$8 sps:$4 sm:$0xff]  }
  0xe1   : > { %1477 = vmatpush2.bf16.msra.mxu0 %v4978_v39  ;;  %v5026_v39 = vld [vmem:[#allocation6 + $0x134] ss:$8 sps:$4 sm:$0xff]  }
  0xe2   : > { %2066 = vmatpush2.bf16.msra.mxu1 %v4981_v40  ;;  %1478 = vmatprep.subr.bf16.mxu0 %v4986_v42  ;;  %v5029_v40 = vld [vmem:[#allocation6 + $0x234] ss:$8 sps:$4 sm:$0xff]   ;;  %v5024_v42 = vld [vmem:[#allocation6 + $0x130] ss:$8 sps:$4 sm:$0xff]  }
  0xe3   : > { %2067 = vmatprep.subr.bf16.mxu1 %v4989_v45  ;;  %v5027_v45 = vld [vmem:[#allocation6 + $0x230] ss:$8 sps:$4 sm:$0xff]  }
  0xe5   : > { %1479 = vmatpush2.bf16.msra.mxu0 %v4984_v46  ;;  %v5034_v46 = vld [vmem:[#allocation6 + $0x124] ss:$8 sps:$4 sm:$0xff]  }
  0xe6   : > { %2068 = vmatpush2.bf16.msra.mxu1 %v4987_v47  ;;  %1480 = vmatprep.subr.bf16.mxu0 %v4992_v49  ;;  %v5037_v47 = vld [vmem:[#allocation6 + $0x224] ss:$8 sps:$4 sm:$0xff]  }
  0xe7   : > { %2069 = vmatprep.subr.bf16.mxu1 %v4995_v52  ;;  %v5947_v52 = vcombine.high %v5837_v27, %v5865_v3  ;;  %v5147_v27 = vld [vmem:[#allocation6 + $0x710] ss:$8 sps:$4 sm:$0xff]   ;;  %v5166_v3 = vld [vmem:[#allocation6 + $0x6e4] ss:$8 sps:$4 sm:$0xff]  }
  0xe9   : > { %1481 = vmatpush2.bf16.msra.mxu0 %v4990_v53  ;;  %v5040_v53 = vld [vmem:[#allocation6 + $0x114] ss:$8 sps:$4 sm:$0xff]  }
  0xea   : > { %2070 = vmatpush2.bf16.msra.mxu1 %v4993_v54  ;;  %2112 = vmatprep.subr.bf16.mxu0 %v4999_v55  ;;  %v5043_v54 = vld [vmem:[#allocation6 + $0x214] ss:$8 sps:$4 sm:$0xff]  }
  0xeb   : > { %2185 = vmatprep.subr.bf16.mxu1 %v5002_v57  ;;  %v5038_v57 = vld [vmem:[#allocation6 + $0x110] ss:$8 sps:$4 sm:$0xff]  }
  0xec   : > { %1483 = vmatmul.mubr.bf16.vlgmr.msra.gmra.mxu0 %v5851_v41  ;;  %v5010_v41 = vld [vmem:[#allocation6 + $0x150] ss:$8 sps:$4 sm:$0xff]  }
  0xed   : > { %2072 = vmatmul.mubr.bf16.vlgmr.msra.gmra.mxu1 %v4382_v16  ;;  %2113 = vmatpush1.bf16.msra.mxu0 %v4997_v60  ;;  %v5013_v16 = vld [vmem:[#allocation6 + $0x250] ss:$8 sps:$4 sm:$0xff]  }
  0xee   : > { %2186 = vmatpush1.bf16.msra.mxu1 %v5000_v6  ;;  %2114 = vmatprep.subr.bf16.mxu0 %v5006_v7  ;;  %v5041_v60 = vld [vmem:[#allocation6 + $0x210] ss:$8 sps:$4 sm:$0xff]   ;;  %v5049_v6 = vld [vmem:[#allocation6 + $0x200] ss:$8 sps:$4 sm:$0xff]   ;;  %v5054_v7 = vld [vmem:[#allocation6 + $0x1f4] ss:$8 sps:$4 sm:$0xff]  }
  0xef   : > { %2187 = vmatprep.subr.bf16.mxu1 %v5009_v8  ;;  %1492 = vmatprep.mubr.bf16.mxu0 %v5878_v21  ;;  %v5018_v21 = vld [vmem:[#allocation6 + $0x140] ss:$8 sps:$4 sm:$0xff]   ;;  %v5057_v8 = vld [vmem:[#allocation6 + $0x2f4] ss:$8 sps:$4 sm:$0xff]  }
  0xf0   : > { %2081 = vmatprep.mubr.bf16.mxu1 %v5922_v14 }
  0xf1   : > { %2115 = vmatpush1.bf16.msra.mxu0 %v5004_v12  ;;  %v5055_v12 = vld [vmem:[#allocation6 + $0x2f0] ss:$8 sps:$4 sm:$0xff]  }
  0xf2   : > { %2188 = vmatpush1.bf16.msra.mxu1 %v5007_v15  ;;  %2116 = vmatprep.subr.bf16.mxu0 %v5012_v19  ;;  %v5060_v15 = vld [vmem:[#allocation6 + $0x1e4] ss:$8 sps:$4 sm:$0xff]   ;;  %v5061_v19 = vld [vmem:[#allocation6 + $0x2e0] ss:$8 sps:$4 sm:$0xff]  }
  0xf3   : > { %2189 = vmatprep.subr.bf16.mxu1 %v5015_v22  ;;  %v5066_v22 = vld [vmem:[#allocation6 + $0x1d4] ss:$8 sps:$4 sm:$0xff]  }
  0xf4   : > { %1493 = vmatmul.mubr.bf16.gmra.mxu0 %v5880_v24  ;;  %v670_v24 = vsel %vm5792_vm2, %v665_v36, %v669_v31  ;;  %v5076_v36 = vld [vmem:[#allocation6 + $0x1b0] ss:$8 sps:$4 sm:$0xff]  }
  0xf5   : > { %2082 = vmatmul.mubr.bf16.gmra.mxu1 %v5826_v4  ;;  %2117 = vmatpush1.bf16.msra.mxu0 %v5010_v41  ;;  %v4285_v49 = vcombine.high %v5900_v1, %v670_v24  ;;  %v4284_v55 = vcombine.low %v5900_v1, %v670_v24  ;;  %v5052_v1 = vld [vmem:[#allocation6 + $0x1f0] ss:$8 sps:$4 sm:$0xff]   ;;  %v5069_v41 = vld [vmem:[#allocation6 + $0x2d4] ss:$8 sps:$4 sm:$0xff]  }
  0xf6   : > { %2190 = vmatpush1.bf16.msra.mxu1 %v5013_v16  ;;  %2118 = vmatprep.subr.bf16.mxu0 %v5020_v26  ;;  %v5070_v16 = vld [vmem:[#allocation6 + $0x1c0] ss:$8 sps:$4 sm:$0xff]   ;;  %v5079_v31 = vld [vmem:[#allocation6 + $0x2b0] ss:$8 sps:$4 sm:$0xff]  }
  0xf7   : > { %2191 = vmatprep.subr.bf16.mxu1 %v5023_v28  ;;  %1502 = vmatprep.mubr.bf16.mxu0 %v5896_v0  ;;  %v5032_v0 = vld [vmem:[#allocation6 + $0x120] ss:$8 sps:$4 sm:$0xff]   ;;  %v5078_v28 = vld [vmem:[#allocation6 + $0x1b4] ss:$8 sps:$4 sm:$0xff]  }
  0xf8   : > { %2091 = vmatprep.mubr.bf16.mxu1 %v5936_v29  ;;  %v5073_v26 = vld [vmem:[#allocation6 + $0x2c0] ss:$8 sps:$4 sm:$0xff]  }
  0xf9   : > { %2119 = vmatpush1.bf16.msra.mxu0 %v5018_v21  ;;  %v5081_v21 = vld [vmem:[#allocation6 + $0x2b4] ss:$8 sps:$4 sm:$0xff]  }
  0xfa   : > { %2192 = vmatpush1.bf16.msra.mxu1 %v5021_v32  ;;  %2120 = vmatprep.subr.bf16.mxu0 %v5026_v39  ;;  %v5084_v32 = vld [vmem:[#allocation6 + $0x1a4] ss:$8 sps:$4 sm:$0xff]  }
  0xfb   : > { %2193 = vmatprep.subr.bf16.mxu1 %v5029_v40  ;;  %v5087_v39 = vld [vmem:[#allocation6 + $0x2a4] ss:$8 sps:$4 sm:$0xff]   ;;  %v5082_v40 = vld [vmem:[#allocation6 + $0x1a0] ss:$8 sps:$4 sm:$0xff]  }
  0xfc   : > { %1503 = vmatmul.mubr.bf16.gmra.mxu0 %v5903_v5  ;;  %v5048_v5 = vld [vmem:[#allocation6 + $0x104] ss:$8 sps:$4 sm:$0xff]  }
  0xfd   : > { %2092 = vmatmul.mubr.bf16.gmra.mxu1 %v5857_v30  ;;  %2121 = vmatpush1.bf16.msra.mxu0 %v5024_v42  ;;  %v5382_v42 = vld [vmem:[%s5770_s27 + $0x8] sm:$0x11] }
  0xfe   : > { %2194 = vmatpush1.bf16.msra.mxu1 %v5027_v45  ;;  %2122 = vmatprep.subr.bf16.mxu0 %v5034_v46  ;;  %v2313_v24 = vrot.slane %v5382_v42, 5  ;;  %v5085_v45 = vld [vmem:[#allocation6 + $0x2a0] ss:$8 sps:$4 sm:$0xff]   ;;  %v5090_v46 = vld [vmem:[#allocation6 + $0x194] ss:$8 sps:$4 sm:$0xff]  }
  0xff   : > { %2195 = vmatprep.subr.bf16.mxu1 %v5037_v47  ;;  %1512 = vmatprep.mubr.bf16.mxu0 %v4285_v49  ;;  %v5093_v47 = vld [vmem:[#allocation6 + $0x294] ss:$8 sps:$4 sm:$0xff]  }
 0x100   : > { %2101 = vmatprep.mubr.bf16.mxu1 %v5947_v52  ;;  %v5383_v49 = vld [vmem:[%s5770_s27 + $0x18] sm:$0x11] }
 0x101   : > { %2123 = vmatpush1.bf16.msra.mxu0 %v5032_v0  ;;  %v2317_v0 = vrot.slane %v5383_v49, 5  ;;  %v5135_v42 = vld [vmem:[#allocation6 + $0x734] ss:$8 sps:$4 sm:$0xff]   ;;  %v5385_v49 = vld [vmem:[%s5770_s27 + $0x88] sm:$0x11] }
 0x102   : > { %2196 = vmatpush1.bf16.msra.mxu1 %v5035_v13  ;;  %2124 = vmatprep.subr.bf16.mxu0 %v5040_v53  ;;  %v5384_v13 = vld [vmem:[%s5770_s27 + $0x28] sm:$0x11] }
 0x103   : > { %2197 = vmatprep.subr.bf16.mxu1 %v5043_v54  ;;  %v2321_v53 = vrot.slane %v5384_v13, 5  ;;  %v5088_v54 = vld [vmem:[#allocation6 + $0x190] ss:$8 sps:$4 sm:$0xff]  }
 0x104   : > { %1513 = vmatmul.mubr.bf16.gmra.mxu0 %v4284_v55  ;;  %v5091_v55 = vld [vmem:[#allocation6 + $0x290] ss:$8 sps:$4 sm:$0xff]  }
 0x105   : > { %2102 = vmatmul.mubr.bf16.gmra.mxu1 %v5887_v34  ;;  %2125 = vmatpush1.bf16.msra.mxu0 %v5038_v57  ;;  %v5096_v57 = vld [vmem:[#allocation6 + $0x184] ss:$8 sps:$4 sm:$0xff]  }
 0x106   : > { %2198 = vmatpush1.bf16.msra.mxu1 %v5041_v60  ;;  %2126 = vmatprep.subr.bf16.mxu0 %v5048_v5  ;;  %v2258_v60 = vld [vmem:[%s5770_s27] sm:$0xee]  ;;  %v2259_v5 = vld [vmem:[%s5770_s27 + $0x10] sm:$0xee] }
 0x107   : > { %2199 = vmatprep.subr.bf16.mxu1 %v5051_v63  ;;  %2144 = vmatprep.mubr.bf16.mxu0 %v4385_v43  ;;  %v5067_v43 = vld [vmem:[#allocation6 + $0x2d0] ss:$8 sps:$4 sm:$0xff]   ;;  %v5226_v63 = vld [vmem:[#allocation6 + $0x814] ss:$8 sps:$4 sm:$0xff]  }
 0x108   : > { %2217 = vmatprep.mubr.bf16.mxu1 %v5922_v14  ;;  %v5072_v14 = vld [vmem:[#allocation6 + $0x1c4] ss:$8 sps:$4 sm:$0xff]  }
 0x109   : > { %2127 = vmatpush1.bf16.msra.mxu0 %v5046_v2  ;;  %v4496_v2 = vrot.slane %v2258_v60, 9  ;;  %v2267_v13 = vld [vmem:[%s5770_s27 + $0x90] sm:$0xee]  ;;  %v5155_v60 = vld [vmem:[#allocation6 + $0x700] ss:$8 sps:$4 sm:$0xff]  }
 0x10a   : > { %2200 = vmatpush1.bf16.msra.mxu1 %v5049_v6  ;;  %2128 = vmatprep.subr.bf16.mxu0 %v5054_v7  ;;  %v2260_v6 = vld [vmem:[%s5770_s27 + $0x20] sm:$0xee]  ;;  %v5099_v7 = vld [vmem:[#allocation6 + $0x284] ss:$8 sps:$4 sm:$0xff]  }
 0x10b   : > { %2201 = vmatprep.subr.bf16.mxu1 %v5057_v8  ;;  %v4497_v8 = vrot.slane %v2259_v5, 9  ;;  %v5163_v5 = vld [vmem:[#allocation6 + $0x7f4] ss:$8 sps:$4 sm:$0xff]  }
 0x10d   : > { %2129 = vmatpush2.bf16.msra.mxu0 %v5052_v1  ;;  %v4498_v1 = vrot.slane %v2260_v6, 9  ;;  %v5161_v6 = vld [vmem:[#allocation6 + $0x7f0] ss:$8 sps:$4 sm:$0xff]  }
 0x10e   : > { %2202 = vmatpush2.bf16.msra.mxu1 %v5055_v12  ;;  %2130 = vmatprep.subr.bf16.mxu0 %v5060_v15  ;;  %v5970_v12 = vsel %vm5963_vm5, %v4496_v2, %v2313_v24  ;;  %v5094_v15 = vld [vmem:[#allocation6 + $0x180] ss:$8 sps:$4 sm:$0xff]   ;;  %v5130_v24 = vld [vmem:[#allocation6 + $0x630] ss:$8 sps:$4 sm:$0xff]  }
 0x10f   : > { %2203 = vmatprep.subr.bf16.mxu1 %v5063_v17  ;;  %v5974_v17 = vsel %vm5963_vm5, %v4497_v8, %v2317_v0  ;;  %v2345_v0 = vrot.slane %v5385_v49, 5  ;;  %v5158_v2 = vld [vmem:[#allocation6 + $0x6f0] ss:$8 sps:$4 sm:$0xff]   ;;  %v2264_v49 = vld [vmem:[%s5770_s27 + $0x60] sm:$0xee] }
 0x110   : > { %v5170_v8 = vld [vmem:[#allocation6 + $0x6d0] ss:$8 sps:$4 sm:$0xff]  }
 0x111   : > { %2131 = vmatpush2.bf16.msra.mxu0 %v5058_v18  ;;  %v5978_v18 = vsel %vm5963_vm5, %v4498_v1, %v2321_v53  ;;  %v4505_v53 = vrot.slane %v2267_v13, 9  ;;  %v5173_v1 = vld [vmem:[#allocation6 + $0x7d0] ss:$8 sps:$4 sm:$0xff]  }
 0x112   : > { %2204 = vmatpush2.bf16.msra.mxu1 %v5061_v19  ;;  %2132 = vmatprep.subr.bf16.mxu0 %v5066_v22  ;;  %v5097_v19 = vld [vmem:[#allocation6 + $0x280] ss:$8 sps:$4 sm:$0xff]   ;;  %v5104_v22 = vld [vmem:[#allocation6 + $0x674] ss:$8 sps:$4 sm:$0xff]  }
 0x113   : > { %2205 = vmatprep.subr.bf16.mxu1 %v5069_v41  ;;  %v4506_v41 = vcombine.low %v5970_v12, %v5974_v17 }
 0x115   : > { %2133 = vmatpush2.bf16.msra.mxu0 %v5064_v23  ;;  %v4507_v23 = vcombine.high %v5970_v12, %v5974_v17 }
 0x116   : > { %2206 = vmatpush2.bf16.msra.mxu1 %v5067_v43  ;;  %2134 = vmatprep.subr.bf16.mxu0 %v5072_v14  ;;  %v4509_v43 = vcombine.high %v5974_v17, %v5978_v18  ;;  %v5107_v14 = vld [vmem:[#allocation6 + $0x774] ss:$8 sps:$4 sm:$0xff]  }
 0x117   : > { %2207 = vmatprep.subr.bf16.mxu1 %v5075_v48  ;;  %v4508_v48 = vcombine.low %v5974_v17, %v5978_v18 }
 0x119   : > { %2135 = vmatpush2.bf16.msra.mxu0 %v5070_v16  ;;  %v5102_v16 = vld [vmem:[#allocation6 + $0x670] ss:$8 sps:$4 sm:$0xff]  }
 0x11a   : > { %2208 = vmatpush2.bf16.msra.mxu1 %v5073_v26  ;;  %2136 = vmatprep.subr.bf16.mxu0 %v5078_v28  ;;  %v5105_v26 = vld [vmem:[#allocation6 + $0x770] ss:$8 sps:$4 sm:$0xff]   ;;  %v5110_v28 = vld [vmem:[#allocation6 + $0x664] ss:$8 sps:$4 sm:$0xff]  }
 0x11b   : > { %2209 = vmatprep.subr.bf16.mxu1 %v5081_v21  ;;  %v5113_v21 = vld [vmem:[#allocation6 + $0x764] ss:$8 sps:$4 sm:$0xff]  }
 0x11d   : > { %2137 = vmatpush2.bf16.msra.mxu0 %v5076_v36  ;;  %v5108_v36 = vld [vmem:[#allocation6 + $0x660] ss:$8 sps:$4 sm:$0xff]  }
 0x11e   : > { %2210 = vmatpush2.bf16.msra.mxu1 %v5079_v31  ;;  %2138 = vmatprep.subr.bf16.mxu0 %v5084_v32  ;;  %v5111_v31 = vld [vmem:[#allocation6 + $0x760] ss:$8 sps:$4 sm:$0xff]   ;;  %v5118_v32 = vld [vmem:[#allocation6 + $0x654] ss:$8 sps:$4 sm:$0xff]  }
 0x11f   : > { %2211 = vmatprep.subr.bf16.mxu1 %v5087_v39  ;;  %v5121_v39 = vld [vmem:[#allocation6 + $0x754] ss:$8 sps:$4 sm:$0xff]  }
 0x121   : > { %2139 = vmatpush2.bf16.msra.mxu0 %v5082_v40  ;;  %v5122_v40 = vld [vmem:[#allocation6 + $0x640] ss:$8 sps:$4 sm:$0xff]  }
 0x122   : > { %2212 = vmatpush2.bf16.msra.mxu1 %v5085_v45  ;;  %2140 = vmatprep.subr.bf16.mxu0 %v5090_v46  ;;  %v5133_v45 = vld [vmem:[#allocation6 + $0x730] ss:$8 sps:$4 sm:$0xff]   ;;  %v5139_v46 = vld [vmem:[#allocation6 + $0x720] ss:$8 sps:$4 sm:$0xff]  }
 0x123   : > { %2213 = vmatprep.subr.bf16.mxu1 %v5093_v47  ;;  %v5149_v47 = vld [vmem:[#allocation6 + $0x714] ss:$8 sps:$4 sm:$0xff]  }
 0x125   : > { %2141 = vmatpush2.bf16.msra.mxu0 %v5088_v54  ;;  %v2349_v54 = vrot.slane %v5929_v20, 5 }
 0x126   : > { %2214 = vmatpush2.bf16.msra.mxu1 %v5091_v55  ;;  %2142 = vmatprep.subr.bf16.mxu0 %v5096_v57  ;;  %v5152_v57 = vld [vmem:[#allocation6 + $0x600] ss:$8 sps:$4 sm:$0xff]  }
 0x127   : > { %2215 = vmatprep.subr.bf16.mxu1 %v5099_v7  ;;  %v6020_v55 = vsel %vm5963_vm5, %v4505_v53, %v2349_v54  ;;  %v5175_v7 = vld [vmem:[#allocation6 + $0x7d4] ss:$8 sps:$4 sm:$0xff]   ;;  %v5211_v53 = vld [vmem:[#allocation6 + $0x864] ss:$8 sps:$4 sm:$0xff]  }
 0x129   : > { %2143 = vmatpush2.bf16.msra.mxu0 %v5094_v15  ;;  %v5178_v15 = vld [vmem:[#allocation6 + $0x6c4] ss:$8 sps:$4 sm:$0xff]  }
 0x12a   : > { %2216 = vmatpush2.bf16.msra.mxu1 %v5097_v19  ;;  %2984 = vmatprep.subr.bf16.mxu0 %v5104_v22  ;;  %v5181_v19 = vld [vmem:[#allocation6 + $0x7c4] ss:$8 sps:$4 sm:$0xff]   ;;  %v5176_v22 = vld [vmem:[#allocation6 + $0x6c0] ss:$8 sps:$4 sm:$0xff]  }
 0x12b   : > { %3057 = vmatprep.subr.bf16.mxu1 %v5107_v14  ;;  %v5187_v14 = vld [vmem:[#allocation6 + $0x7b4] ss:$8 sps:$4 sm:$0xff]  }
 0x12c   : > { %2145 = vmatmul.mubr.bf16.vlgmr.msra.gmra.mxu0 %v4384_v44  ;;  %v5124_v44 = vld [vmem:[#allocation6 + $0x644] ss:$8 sps:$4 sm:$0xff]  }
 0x12d   : > { %2218 = vmatmul.mubr.bf16.vlgmr.msra.gmra.mxu1 %v5826_v4  ;;  %2985 = vmatpush1.bf16.msra.mxu0 %v5102_v16  ;;  %v5127_v4 = vld [vmem:[#allocation6 + $0x744] ss:$8 sps:$4 sm:$0xff]   ;;  %v5182_v16 = vld [vmem:[#allocation6 + $0x6b0] ss:$8 sps:$4 sm:$0xff]  }
 0x12e   : > { %3058 = vmatpush1.bf16.msra.mxu1 %v5105_v26  ;;  %2986 = vmatprep.subr.bf16.mxu0 %v5110_v28  ;;  %v5185_v26 = vld [vmem:[#allocation6 + $0x7b0] ss:$8 sps:$4 sm:$0xff]   ;;  %v5190_v28 = vld [vmem:[#allocation6 + $0x6a4] ss:$8 sps:$4 sm:$0xff]  }
 0x12f   : > { %3059 = vmatprep.subr.bf16.mxu1 %v5113_v21  ;;  %2154 = vmatprep.mubr.bf16.mxu0 %v4389_v10  ;;  %v5125_v10 = vld [vmem:[#allocation6 + $0x740] ss:$8 sps:$4 sm:$0xff]   ;;  %v5193_v21 = vld [vmem:[#allocation6 + $0x7a4] ss:$8 sps:$4 sm:$0xff]  }
 0x130   : > { %2227 = vmatprep.mubr.bf16.mxu1 %v5936_v29  ;;  %v5132_v29 = vld [vmem:[#allocation6 + $0x634] ss:$8 sps:$4 sm:$0xff]  }
 0x131   : > { %2987 = vmatpush1.bf16.msra.mxu0 %v5108_v36  ;;  %v5188_v36 = vld [vmem:[#allocation6 + $0x6a0] ss:$8 sps:$4 sm:$0xff]  }
 0x132   : > { %3060 = vmatpush1.bf16.msra.mxu1 %v5111_v31  ;;  %2988 = vmatprep.subr.bf16.mxu0 %v5118_v32  ;;  %v5191_v31 = vld [vmem:[#allocation6 + $0x7a0] ss:$8 sps:$4 sm:$0xff]   ;;  %v5196_v32 = vld [vmem:[#allocation6 + $0x694] ss:$8 sps:$4 sm:$0xff]  }
 0x133   : > { %3061 = vmatprep.subr.bf16.mxu1 %v5121_v39  ;;  %v5199_v39 = vld [vmem:[#allocation6 + $0x794] ss:$8 sps:$4 sm:$0xff]  }
 0x134   : > { %2155 = vmatmul.mubr.bf16.gmra.mxu0 %v4388_v11  ;;  %v2266_v11 = vld [vmem:[%s5770_s27 + $0x80] sm:$0xee] }
 0x135   : > { %2228 = vmatmul.mubr.bf16.gmra.mxu1 %v5857_v30  ;;  %2989 = vmatpush1.bf16.msra.mxu0 %v5116_v50  ;;  %v5136_v30 = vld [vmem:[#allocation6 + $0x620] ss:$8 sps:$4 sm:$0xff]   ;;  %v2261_v50 = vld [vmem:[%s5770_s27 + $0x30] sm:$0xee] }
 0x136   : > { %3062 = vmatpush1.bf16.msra.mxu1 %v5119_v58  ;;  %2990 = vmatprep.subr.bf16.mxu0 %v5124_v44  ;;  %v2262_v58 = vld [vmem:[%s5770_s27 + $0x40] sm:$0xee]  ;;  %v5194_v44 = vld [vmem:[#allocation6 + $0x690] ss:$8 sps:$4 sm:$0xff]  }
 0x137   : > { %3063 = vmatprep.subr.bf16.mxu1 %v5127_v4  ;;  %2164 = vmatprep.mubr.bf16.mxu0 %v4393_v61  ;;  %v5146_v61 = vld [vmem:[#allocation6 + $0x614] ss:$8 sps:$4 sm:$0xff]   ;;  %v5197_v4 = vld [vmem:[#allocation6 + $0x790] ss:$8 sps:$4 sm:$0xff]  }
 0x138   : > { %2237 = vmatprep.mubr.bf16.mxu1 %v5947_v52  ;;  %v4504_v52 = vrot.slane %v2266_v11, 9  ;;  %v5200_v11 = vld [vmem:[#allocation6 + $0x680] ss:$8 sps:$4 sm:$0xff]  }
 0x139   : > { %2991 = vmatpush1.bf16.msra.mxu0 %v5122_v40  ;;  %v5202_v40 = vld [vmem:[#allocation6 + $0x684] ss:$8 sps:$4 sm:$0xff]  }
 0x13a   : > { %3064 = vmatpush1.bf16.msra.mxu1 %v5125_v10  ;;  %2992 = vmatprep.subr.bf16.mxu0 %v5132_v29  ;;  %v6024_v20 = vsel %vm5963_vm5, %v4504_v52, %v2345_v0  ;;  %v5205_v10 = vld [vmem:[#allocation6 + $0x784] ss:$8 sps:$4 sm:$0xff]   ;;  %v4499_v29 = vrot.slane %v2261_v50, 9  ;;  %v5206_v0 = vld [vmem:[#allocation6 + $0x870] ss:$8 sps:$4 sm:$0xff]  }
 0x13b   : > { %3065 = vmatprep.subr.bf16.mxu1 %v5135_v42  ;;  %v5386_v42 = vld [vmem:[%s5770_s27 + $0x38] sm:$0x11]  ;;  %v2263_v52 = vld [vmem:[%s5770_s27 + $0x50] sm:$0xee] }
 0x13c   : > { %2165 = vmatmul.mubr.bf16.gmra.mxu0 %v4392_v62  ;;  %v5154_v62 = vld [vmem:[#allocation6 + $0x604] ss:$8 sps:$4 sm:$0xff]   ;;  %v5218_v50 = vld [vmem:[#allocation6 + $0x830] ss:$8 sps:$4 sm:$0xff]  }
 0x13d   : > { %2238 = vmatmul.mubr.bf16.gmra.mxu1 %v5887_v34  ;;  %2993 = vmatpush1.bf16.msra.mxu0 %v5130_v24  ;;  %v5157_v34 = vld [vmem:[#allocation6 + $0x704] ss:$8 sps:$4 sm:$0xff]   ;;  %v2325_v24 = vrot.slane %v5386_v42, 5 }
 0x13e   : > { %3066 = vmatpush1.bf16.msra.mxu1 %v5133_v45  ;;  %2994 = vmatprep.subr.bf16.mxu0 %v5138_v56  ;;  %v4500_v45 = vrot.slane %v2262_v58, 9  ;;  %v5387_v56 = vld [vmem:[%s5770_s27 + $0x48] sm:$0x11] }
 0x13f   : > { %3067 = vmatprep.subr.bf16.mxu1 %v5141_v59  ;;  %2174 = vmatprep.mubr.bf16.mxu0 %v4397_v35  ;;  %v4522_v35 = vcombine.low %v6024_v20, %v6020_v55  ;;  %v2329_v59 = vrot.slane %v5387_v56, 5 }
 0x140   : > { %2247 = vmatprep.mubr.bf16.mxu1 %v4399_v37  ;;  %v5160_v37 = vld [vmem:[#allocation6 + $0x6f4] ss:$8 sps:$4 sm:$0xff]  }
 0x141   : > { %2995 = vmatpush1.bf16.msra.mxu0 %v5136_v30  ;;  %v5203_v30 = vld [vmem:[#allocation6 + $0x780] ss:$8 sps:$4 sm:$0xff]  }
 0x142   : > { %3068 = vmatpush1.bf16.msra.mxu1 %v5139_v46  ;;  %2996 = vmatprep.subr.bf16.mxu0 %v5146_v61  ;;  %v5208_v46 = vld [vmem:[#allocation6 + $0x874] ss:$8 sps:$4 sm:$0xff]   ;;  %v2326_v61 = vsel %vm5963_vm5, %v4499_v29, %v2325_v24 }
 0x143   : > { %3069 = vmatprep.subr.bf16.mxu1 %v5149_v47  ;;  %v2330_v47 = vsel %vm5963_vm5, %v4500_v45, %v2329_v59  ;;  %v6051_v13 = vcombine.high %v5978_v18, %v2326_v61  ;;  %v5224_v45 = vld [vmem:[#allocation6 + $0x810] ss:$8 sps:$4 sm:$0xff]  }
 0x144   : > { %2175 = vmatmul.mubr.bf16.gmra.mxu0 %v4396_v51  ;;  %v5169_v51 = vld [vmem:[#allocation6 + $0x7e4] ss:$8 sps:$4 sm:$0xff]   ;;  %v4513_v54 = vcombine.high %v2326_v61, %v2330_v47 }
 0x145   : > { %2248 = vmatmul.mubr.bf16.gmra.mxu1 %v4398_v38  ;;  %2997 = vmatpush1.bf16.msra.mxu0 %v5144_v25  ;;  %v5172_v38 = vld [vmem:[#allocation6 + $0x6d4] ss:$8 sps:$4 sm:$0xff]   ;;  %v4501_v25 = vrot.slane %v2263_v52, 9  ;;  %v5227_v52 = vld [vmem:[#allocation6 + $0x800] ss:$8 sps:$4 sm:$0xff]  }
 0x146   : > { %3070 = vmatpush1.bf16.msra.mxu1 %v5147_v27  ;;  %2998 = vmatprep.subr.bf16.mxu0 %v5154_v62  ;;  %v5388_v27 = vld [vmem:[%s5770_s27 + $0x58] sm:$0x11] }
 0x147   : > { %3071 = vmatprep.subr.bf16.mxu1 %v5157_v34  ;;  %3016 = vmatprep.mubr.bf16.mxu0 %v4507_v23  ;;  %v5179_v23 = vld [vmem:[#allocation6 + $0x7c0] ss:$8 sps:$4 sm:$0xff]   ;;  %v2333_v62 = vrot.slane %v5388_v27, 5  ;;  %v4502_v34 = vrot.slane %v2264_v49, 9 }
 0x148   : > { %3089 = vmatprep.mubr.bf16.mxu1 %v4509_v43  ;;  %v5184_v43 = vld [vmem:[#allocation6 + $0x6b4] ss:$8 sps:$4 sm:$0xff]  }
 0x149   : > { %2999 = vmatpush1.bf16.msra.mxu0 %v5152_v57  ;;  %v5389_v57 = vld [vmem:[%s5770_s27 + $0x68] sm:$0x11] }
 0x14a   : > { %3072 = vmatpush1.bf16.msra.mxu1 %v5155_v60  ;;  %3000 = vmatprep.subr.bf16.mxu0 %v5160_v37  ;;  %v2337_v60 = vrot.slane %v5389_v57, 5 }
 0x14b   : > { %3073 = vmatprep.subr.bf16.mxu1 %v5163_v5 }
 0x14c   : > { %v2338_v17 = vsel %vm5963_vm5, %v4502_v34, %v2337_v60  ;;  %v5230_v34 = vld [vmem:[#allocation6 + $0x8f0] ss:$8 sps:$4 sm:$0xff]  }
 0x14d   : > { %3001 = vmatpush2.bf16.msra.mxu0 %v5158_v2 }
 0x14e   : > { %3074 = vmatpush2.bf16.msra.mxu1 %v5161_v6  ;;  %3002 = vmatprep.subr.bf16.mxu0 %v5166_v3  ;;  %v5209_v6 = vld [vmem:[#allocation6 + $0x860] ss:$8 sps:$4 sm:$0xff]  }
 0x14f   : > { %3075 = vmatprep.subr.bf16.mxu1 %v5169_v51 }
 0x151   : > { %3003 = vmatpush2.bf16.msra.mxu0 %v5164_v9  ;;  %v5214_v9 = vld [vmem:[#allocation6 + $0x854] ss:$8 sps:$4 sm:$0xff]  }
 0x152   : > { %3076 = vmatpush2.bf16.msra.mxu1 %v5167_v33  ;;  %3004 = vmatprep.subr.bf16.mxu0 %v5172_v38  ;;  %v2334_v33 = vsel %vm5963_vm5, %v4501_v25, %v2333_v62 }
 0x153   : > { %3077 = vmatprep.subr.bf16.mxu1 %v5175_v7  ;;  %v6072_v7 = vcombine.low %v5978_v18, %v2326_v61  ;;  %v5215_v18 = vld [vmem:[#allocation6 + $0x840] ss:$8 sps:$4 sm:$0xff]  }
 0x155   : > { %3005 = vmatpush2.bf16.msra.mxu0 %v5170_v8  ;;  %v4512_v8 = vcombine.low %v2326_v61, %v2330_v47 }
 0x156   : > { %3078 = vmatpush2.bf16.msra.mxu1 %v5173_v1  ;;  %3006 = vmatprep.subr.bf16.mxu0 %v5178_v15  ;;  %v5212_v15 = vld [vmem:[#allocation6 + $0x850] ss:$8 sps:$4 sm:$0xff]  }
 0x157   : > { %3079 = vmatprep.subr.bf16.mxu1 %v5181_v19  ;;  %v6076_v19 = vcombine.high %v2330_v47, %v2334_v33 }
 0x159   : > { %3007 = vmatpush2.bf16.msra.mxu0 %v5176_v22 }
 0x15a   : > { %3080 = vmatpush2.bf16.msra.mxu1 %v5179_v23  ;;  %3008 = vmatprep.subr.bf16.mxu0 %v5184_v43  ;;  %v5217_v43 = vld [vmem:[#allocation6 + $0x844] ss:$8 sps:$4 sm:$0xff]  }
 0x15b   : > { %3081 = vmatprep.subr.bf16.mxu1 %v5187_v14  ;;  %v4517_v14 = vcombine.high %v2334_v33, %v2338_v17 }
 0x15d   : > { %3009 = vmatpush2.bf16.msra.mxu0 %v5182_v16 }
 0x15e   : > { %3082 = vmatpush2.bf16.msra.mxu1 %v5185_v26  ;;  %3010 = vmatprep.subr.bf16.mxu0 %v5190_v28  ;;  %v5390_v26 = vld [vmem:[%s5770_s27 + $0x78] sm:$0x11] }
 0x15f   : > { %3083 = vmatprep.subr.bf16.mxu1 %v5193_v21  ;;  %v2341_v28 = vrot.slane %v5390_v26, 5 }
 0x161   : > { %3011 = vmatpush2.bf16.msra.mxu0 %v5188_v36  ;;  %v5220_v36 = vld [vmem:[#allocation6 + $0x834] ss:$8 sps:$4 sm:$0xff]  }
 0x162   : > { %3084 = vmatpush2.bf16.msra.mxu1 %v5191_v31  ;;  %3012 = vmatprep.subr.bf16.mxu0 %v5196_v32  ;;  %v6085_v32 = vcombine.low %v2330_v47, %v2334_v33 }
 0x163   : > { %3085 = vmatprep.subr.bf16.mxu1 %v5199_v39  ;;  %v4516_v39 = vcombine.low %v2334_v33, %v2338_v17 }
 0x165   : > { %3013 = vmatpush2.bf16.msra.mxu0 %v5194_v44  ;;  %v5223_v44 = vld [vmem:[#allocation6 + $0x824] ss:$8 sps:$4 sm:$0xff]  }
 0x166   : > { %3086 = vmatpush2.bf16.msra.mxu1 %v5197_v4  ;;  %3014 = vmatprep.subr.bf16.mxu0 %v5202_v40  ;;  %v5221_v40 = vld [vmem:[#allocation6 + $0x820] ss:$8 sps:$4 sm:$0xff]  }
 0x167   : > { %3087 = vmatprep.subr.bf16.mxu1 %v5205_v10 }
 0x169   : > { %3015 = vmatpush2.bf16.msra.mxu0 %v5200_v11  ;;  %v5229_v11 = vld [vmem:[#allocation6 + $0x804] ss:$8 sps:$4 sm:$0xff]  }
 0x16a   : > { %3088 = vmatpush2.bf16.msra.mxu1 %v5203_v30  ;;  %3130 = vmatprep.subr.bf16.mxu0 %v5208_v46 }
 0x16c   : > { %v1338_v37 = vpop.f32.mrf.mxu0  ;;  %3017 = vmatmul.mubr.bf16.vlgmr.msra.gmra.mxu0 %v4506_v41  ;;  %v2265_v41 = vld [vmem:[%s5770_s27 + $0x70] sm:$0xee] }
 0x16d   : > { %v1411_v5 = vpop.f32.mrf.mxu1  ;;  %3090 = vmatmul.mubr.bf16.vlgmr.msra.gmra.mxu1 %v4508_v48  ;;  %3131 = vmatpush1.bf16.msra.mxu0 %v5206_v0  ;;  %v4503_v16 = vrot.slane %v2265_v41, 9 }
 0x16e   : > { %v6061_v2 = vadd.f32 %v1411_v5, %v1338_v37  ;;  %3026 = vmatprep.mubr.bf16.mxu0 %v6051_v13  ;;  %v1340_v3 = vpop.f32.mrf.mxu0  ;;  %3132 = vmatprep.subr.bf16.mxu0 %v5211_v53  ;;  %v5232_v53 = vld [vmem:[#allocation6 + $0x8f4] ss:$8 sps:$4 sm:$0xff]   ;;  %v5235_v37 = vld [vmem:[#allocation6 + $0x8e4] ss:$8 sps:$4 sm:$0xff]  }
 0x16f   : > { %v1413_v51 = vpop.f32.mrf.mxu1  ;;  %3099 = vmatprep.mubr.bf16.mxu1 %v4513_v54  ;;  %v2342_v31 = vsel %vm5963_vm5, %v4503_v16, %v2341_v28 }
 0x170   : > { %v6066_v12 = vadd.f32 %v1413_v51, %v1340_v3  ;;  %v1342_v48 = vpop.f32.mrf.mxu0  ;;  %v6087_v58 = vcombine.high %v2338_v17, %v2342_v31  ;;  %v4521_v4 = vcombine.high %v2342_v31, %v6024_v20  ;;  %v6092_v42 = vcombine.low %v2338_v17, %v2342_v31  ;;  %v5238_v17 = vld [vmem:[#allocation6 + $0x8d4] ss:$8 sps:$4 sm:$0xff]  }
 0x171   : > { %v1415_v38 = vpop.f32.mrf.mxu1  ;;  %3133 = vmatpush1.bf16.msra.mxu0 %v5209_v6  ;;  %v4520_v24 = vcombine.low %v2342_v31, %v6024_v20 }
 0x172   : > { %v6074_v1 = vadd.f32 %v1415_v38, %v1342_v48  ;;  %v1344_v22 = vpop.f32.mrf.mxu0  ;;  %3134 = vmatprep.subr.bf16.mxu0 %v5214_v9 }
 0x173   : > { %v1417_v23 = vpop.f32.mrf.mxu1 }
 0x174   : > { %v6079_v21 = vadd.f32 %v1417_v23, %v1344_v22  ;;  %3027 = vmatmul.mubr.bf16.gmra.mxu0 %v6072_v7  ;;  %v1348_v10 = vpop.f32.mrf.mxu0 }
 0x175   : > { %3100 = vmatmul.mubr.bf16.gmra.mxu1 %v4512_v8  ;;  %3135 = vmatpush1.bf16.msra.mxu0 %v5212_v15  ;;  %v1421_v29 = vpop.f32.mrf.mxu1  ;;  %v5236_v15 = vld [vmem:[#allocation6 + $0x8d0] ss:$8 sps:$4 sm:$0xff]  }
 0x176   : > { %3036 = vmatprep.mubr.bf16.mxu0 %v6076_v19  ;;  %3136 = vmatprep.subr.bf16.mxu0 %v5217_v43  ;;  %v6095_v56 = vadd.f32 %v1421_v29, %v1348_v10  ;;  %v1350_v59 = vpop.f32.mrf.mxu0  ;;  %v5241_v43 = vld [vmem:[#allocation6 + $0x8c4] ss:$8 sps:$4 sm:$0xff]   ;;  %v5250_v10 = vld [vmem:[#allocation6 + $0x894] ss:$8 sps:$4 sm:$0xff]   ;;  %v5248_v29 = vld [vmem:[#allocation6 + $0x890] ss:$8 sps:$4 sm:$0xff]  }
 0x177   : > { %3109 = vmatprep.mubr.bf16.mxu1 %v4517_v14  ;;  %v1423_v30 = vpop.f32.mrf.mxu1 }
 0x178   : > { %v6097_v46 = vadd.f32 %v1423_v30, %v1350_v59  ;;  %v1352_v61 = vpop.f32.mrf.mxu0 }
 0x179   : > { %3137 = vmatpush1.bf16.msra.mxu0 %v5215_v18  ;;  %v1425_v47 = vpop.f32.mrf.mxu1  ;;  %v5239_v18 = vld [vmem:[#allocation6 + $0x8c0] ss:$8 sps:$4 sm:$0xff]  }
 0x17a   : > { %3138 = vmatprep.subr.bf16.mxu0 %v5220_v36  ;;  %v6100_v49 = vadd.f32 %v1425_v47, %v1352_v61  ;;  %v1354_v0 = vpop.f32.mrf.mxu0 }
 0x17b   : > { %v1427_v54 = vpop.f32.mrf.mxu1 }
 0x17c   : > { %3037 = vmatmul.mubr.bf16.gmra.mxu0 %v6085_v32  ;;  %v6103_v25 = vadd.f32 %v1427_v54, %v1354_v0 }
 0x17d   : > { %3110 = vmatmul.mubr.bf16.gmra.mxu1 %v4516_v39  ;;  %3139 = vmatpush1.bf16.msra.mxu0 %v5218_v50  ;;  %v5244_v39 = vld [vmem:[#allocation6 + $0x8b4] ss:$8 sps:$4 sm:$0xff]  }
 0x17e   : > { %3046 = vmatprep.mubr.bf16.mxu0 %v6087_v58  ;;  %3140 = vmatprep.subr.bf16.mxu0 %v5223_v44 }
 0x17f   : > { %3119 = vmatprep.mubr.bf16.mxu1 %v4521_v4  ;;  %v5242_v4 = vld [vmem:[#allocation6 + $0x8b0] ss:$8 sps:$4 sm:$0xff]  }
 0x180   : > { %v1358_v27 = vpop.f32.mrf.mxu0 }
 0x181   : > { %3141 = vmatpush1.bf16.msra.mxu0 %v5221_v40  ;;  %v5247_v40 = vld [vmem:[#allocation6 + $0x8a4] ss:$8 sps:$4 sm:$0xff]  }
 0x182   : > { %3142 = vmatprep.subr.bf16.mxu0 %v5226_v63  ;;  %v1360_v60 = vpop.f32.mrf.mxu0  ;;  %v5245_v63 = vld [vmem:[#allocation6 + $0x8a0] ss:$8 sps:$4 sm:$0xff]  }
 0x184   : > { %3047 = vmatmul.mubr.bf16.gmra.mxu0 %v6092_v42  ;;  %v1431_v62 = vpop.f32.mrf.mxu1  ;;  %v1362_v3 = vpop.f32.mrf.mxu0 }
 0x185   : > { %3120 = vmatmul.mubr.bf16.gmra.mxu1 %v4520_v24  ;;  %3143 = vmatpush1.bf16.msra.mxu0 %v5224_v45  ;;  %v6105_v57 = vadd.f32 %v1431_v62, %v1358_v27  ;;  %v5253_v24 = vld [vmem:[#allocation6 + $0x884] ss:$8 sps:$4 sm:$0xff]   ;;  %v5251_v45 = vld [vmem:[#allocation6 + $0x880] ss:$8 sps:$4 sm:$0xff]  }
 0x186   : > { %3162 = vmatprep.mubr.bf16.mxu0 %v6051_v13  ;;  %3144 = vmatprep.subr.bf16.mxu0 %v5229_v11  ;;  %v1433_v5 = vpop.f32.mrf.mxu1  ;;  %v5233_v13 = vld [vmem:[#allocation6 + $0x8e0] ss:$8 sps:$4 sm:$0xff]   ;;  %v1364_v33 = vpop.f32.mrf.mxu0 }
 0x187   : > { %v6107_v6 = vadd.f32 %v1433_v5, %v1360_v60  ;;  %v5257_v5 = vld [vmem:[#allocation8 + $0xe8] ss:$16 sps:$4 sm:$0xff]  }
 0x188   : > { %v1435_v51 = vpop.f32.mrf.mxu1 }
 0x189   : > { %3145 = vmatpush1.bf16.msra.mxu0 %v5227_v52  ;;  %v6109_v9 = vadd.f32 %v1435_v51, %v1362_v3  ;;  %v5259_v51 = vld [vmem:[#allocation8 + $0xec] ss:$16 sps:$4 sm:$0xff]  }
 0x18a   : > { %3146 = vmatprep.subr.bf16.mxu0 %v5232_v53  ;;  %v1437_v41 = vpop.f32.mrf.mxu1 }
 0x18b   : > { %v6111_v48 = vadd.f32 %v1437_v41, %v1364_v33  ;;  %v1368_v38 = vpop.f32.mrf.mxu0  ;;  %v5265_v33 = vld [vmem:[#allocation8 + $0xcc] ss:$16 sps:$4 sm:$0xff]   ;;  %v5260_v41 = vld [vmem:[#allocation8 + $0xc0] ss:$16 sps:$4 sm:$0xff]  }
 0x18c   : > { %v1441_v8 = vpop.f32.mrf.mxu1 }
 0x18d   : > { %3147 = vmatpush2.bf16.msra.mxu0 %v5230_v34  ;;  %v6113_v22 = vadd.f32 %v1441_v8, %v1368_v38  ;;  %v1370_v23 = vpop.f32.mrf.mxu0 }
 0x18e   : > { %3148 = vmatprep.subr.bf16.mxu0 %v5235_v37  ;;  %v1443_v14 = vpop.f32.mrf.mxu1  ;;  %v5256_v37 = vld [vmem:[#allocation8 + $0xe4] ss:$16 sps:$4 sm:$0xff]  }
 0x18f   : > { %v6115_v16 = vadd.f32 %v1443_v14, %v1370_v23  ;;  %v1372_v26 = vpop.f32.mrf.mxu0  ;;  %3661 = vmatprep.subr.bf16.mxu1 %v5256_v37  ;;  %v5286_v37 = vld [vmem:[#allocation8 + $0x44] ss:$16 sps:$4 sm:$0xff]  }
 0x190   : > { %v1445_v28 = vpop.f32.mrf.mxu1 }
 0x191   : > { %3149 = vmatpush2.bf16.msra.mxu0 %v5233_v13  ;;  %v6117_v36 = vadd.f32 %v1445_v28, %v1372_v26  ;;  %v1374_v31 = vpop.f32.mrf.mxu0  ;;  %v5262_v13 = vld [vmem:[#allocation8 + $0xc4] ss:$16 sps:$4 sm:$0xff]   ;;  %v4523_v26 = vcombine.high %v6024_v20, %v6020_v55  ;;  %v5295_v20 = vld [vmem:[#allocation8 + $0x2c] ss:$16 sps:$4 sm:$0xff]  }
 0x192   : > { %3150 = vmatprep.subr.bf16.mxu0 %v5238_v17  ;;  %v1447_v50 = vpop.f32.mrf.mxu1 }
 0x193   : > { %v6119_v44 = vadd.f32 %v1447_v50, %v1374_v31  ;;  %v5269_v50 = vld [vmem:[#allocation8 + $0xa8] ss:$16 sps:$4 sm:$0xff]  }
 0x195   : > { %3151 = vmatpush2.bf16.msra.mxu0 %v5236_v15  ;;  %v5268_v15 = vld [vmem:[#allocation8 + $0xa4] ss:$16 sps:$4 sm:$0xff]  }
 0x196   : > { %3152 = vmatprep.subr.bf16.mxu0 %v5241_v43 }
 0x199   : > { %3153 = vmatpush2.bf16.msra.mxu0 %v5239_v18 }
 0x19a   : > { %3154 = vmatprep.subr.bf16.mxu0 %v5244_v39 }
 0x19d   : > { %3155 = vmatpush2.bf16.msra.mxu0 %v5242_v4  ;;  %v5274_v4 = vld [vmem:[#allocation8 + $0x84] ss:$16 sps:$4 sm:$0xff]  }
 0x19e   : > { %3156 = vmatprep.subr.bf16.mxu0 %v5247_v40 }
 0x1a1   : > { %3157 = vmatpush2.bf16.msra.mxu0 %v5245_v63  ;;  %v5277_v63 = vld [vmem:[#allocation8 + $0x8c] ss:$16 sps:$4 sm:$0xff]  }
 0x1a2   : > { %3158 = vmatprep.subr.bf16.mxu0 %v5250_v10 }
 0x1a5   : > { %3159 = vmatpush2.bf16.msra.mxu0 %v5248_v29 }
 0x1a6   : > { %3160 = vmatprep.subr.bf16.mxu0 %v5253_v24 }
 0x1a9   : > { %3161 = vmatpush2.bf16.msra.mxu0 %v5251_v45 }
 0x1aa   : > { %3734 = vmatprep.subr.bf16.mxu0 %v5259_v51 }
 0x1ac   : > { %v1484_v59 = vpop.f32.mrf.mxu0  ;;  %3163 = vmatmul.mubr.bf16.vlgmr.msra.gmra.mxu0 %v6072_v7 }
 0x1ad   : > { %v2073_v11 = vpop.f32.mrf.mxu1  ;;  %v1485_v30 = vadd.f32 %v1484_v59, %v6061_v2  ;;  %3172 = vmatprep.mubr.bf16.mxu0 %v6076_v19  ;;  %v5254_v19 = vld [vmem:[#allocation8 + $0xe0] ss:$16 sps:$4 sm:$0xff]   ;;  %3735 = vmatpush1.bf16.msra.mxu0 %v5257_v5 }
 0x1ae   : > { %v1486_v61 = vpop.f32.mrf.mxu0  ;;  %3662 = vmatpush1.bf16.msra.mxu1 %v5254_v19  ;;  %3736 = vmatprep.subr.bf16.mxu0 %v5265_v33  ;;  %v5281_v19 = vld [vmem:[#allocation8 + $0x68] ss:$16 sps:$4 sm:$0xff]  }
 0x1af   : > { %v2075_v47 = vpop.f32.mrf.mxu1  ;;  %v1487_v52 = vadd.f32 %v1486_v61, %v6066_v12  ;;  %v6125_v0 = vadd.f32 %v2073_v11, %v1485_v30  ;;  %3663 = vmatprep.subr.bf16.mxu1 %v5262_v13  ;;  %v5275_v11 = vld [vmem:[#allocation8 + $0x88] ss:$16 sps:$4 sm:$0xff]   ;;  %v5280_v30 = vld [vmem:[#allocation8 + $0x64] ss:$16 sps:$4 sm:$0xff]  }
 0x1b0   : > { %v1488_v53 = vpop.f32.mrf.mxu0 }
 0x1b1   : > { %v2077_v54 = vpop.f32.mrf.mxu1  ;;  %v1489_v27 = vadd.f32 %v1488_v53, %v6074_v1  ;;  %v6128_v62 = vadd.f32 %v2075_v47, %v1487_v52  ;;  %v5283_v47 = vld [vmem:[#allocation8 + $0x6c] ss:$16 sps:$4 sm:$0xff]  }
 0x1b2   : > { %v1490_v34 = vpop.f32.mrf.mxu0  ;;  %3664 = vmatpush1.bf16.msra.mxu1 %v5260_v41 }
 0x1b3   : > { %v6130_v60 = vpop.f32.mrf.mxu1  ;;  %v6133_v7 = vadd.f32 %v1490_v34, %v6079_v21  ;;  %v6135_v2 = vadd.f32 %v2077_v54, %v1489_v27  ;;  %3665 = vmatprep.subr.bf16.mxu1 %v5268_v15  ;;  %v5278_v27 = vld [vmem:[#allocation8 + $0x60] ss:$16 sps:$4 sm:$0xff]  }
 0x1b4   : > { %v1494_v12 = vpop.f32.mrf.mxu0  ;;  %3173 = vmatmul.mubr.bf16.gmra.mxu0 %v6085_v32  ;;  %v5263_v32 = vld [vmem:[#allocation8 + $0xc8] ss:$16 sps:$4 sm:$0xff]  }
 0x1b5   : > { %v2083_v3 = vpop.f32.mrf.mxu1  ;;  %v1495_v1 = vadd.f32 %v1494_v12, %v6095_v56  ;;  %3182 = vmatprep.mubr.bf16.mxu0 %v6087_v58  ;;  %v5271_v56 = vld [vmem:[#allocation8 + $0xac] ss:$16 sps:$4 sm:$0xff]   ;;  %3737 = vmatpush1.bf16.msra.mxu0 %v5263_v32  ;;  %v5290_v32 = vld [vmem:[#allocation8 + $0x20] ss:$16 sps:$4 sm:$0xff]  }
 0x1b6   : > { %v1496_v17 = vpop.f32.mrf.mxu0  ;;  %3738 = vmatprep.subr.bf16.mxu0 %v5271_v56  ;;  %v5289_v12 = vld [vmem:[#allocation8 + $0x4c] ss:$16 sps:$4 sm:$0xff]  }
 0x1b7   : > { %v2085_v21 = vpop.f32.mrf.mxu1  ;;  %v1497_v38 = vadd.f32 %v1496_v17, %v6097_v46  ;;  %v6141_v8 = vadd.f32 %v2083_v3, %v1495_v1  ;;  %v5266_v46 = vld [vmem:[#allocation8 + $0xa0] ss:$16 sps:$4 sm:$0xff]   ;;  %v5287_v17 = vld [vmem:[#allocation8 + $0x48] ss:$16 sps:$4 sm:$0xff]   ;;  %v5301_v56 = vld [vmem:[#allocation8 + $0xc] ss:$16 sps:$4 sm:$0xff]  }
 0x1b8   : > { %v1498_v23 = vpop.f32.mrf.mxu0  ;;  %3666 = vmatpush1.bf16.msra.mxu1 %v5266_v46  ;;  %v5302_v46 = vld [vmem:[#allocation8 + $0x1e0] ss:$16 sps:$4 sm:$0xff]  }
 0x1b9   : > { %v2087_v43 = vpop.f32.mrf.mxu1  ;;  %v1499_v58 = vadd.f32 %v1498_v23, %v6100_v49  ;;  %v6144_v14 = vadd.f32 %v2085_v21, %v1497_v38  ;;  %3739 = vmatpush1.bf16.msra.mxu0 %v5269_v50  ;;  %3667 = vmatprep.subr.bf16.mxu1 %v5274_v4  ;;  %v5292_v21 = vld [vmem:[#allocation8 + $0x24] ss:$16 sps:$4 sm:$0xff]   ;;  %v5293_v23 = vld [vmem:[#allocation8 + $0x28] ss:$16 sps:$4 sm:$0xff]   ;;  %v5313_v4 = vld [vmem:[#allocation8 + $0x1cc] ss:$16 sps:$4 sm:$0xff]  }
 0x1ba   : > { %v1500_v28 = vpop.f32.mrf.mxu0  ;;  %3740 = vmatprep.subr.bf16.mxu0 %v5277_v63  ;;  %v5310_v50 = vld [vmem:[#allocation8 + $0x1c4] ss:$16 sps:$4 sm:$0xff]  }
 0x1bb   : > { %v6148_v18 = vpop.f32.mrf.mxu1  ;;  %v6151_v31 = vadd.f32 %v1500_v28, %v6103_v25  ;;  %v6153_v39 = vadd.f32 %v2087_v43, %v1499_v58  ;;  %v5272_v25 = vld [vmem:[#allocation8 + $0x80] ss:$16 sps:$4 sm:$0xff]   ;;  %v5298_v43 = vld [vmem:[#allocation8 + $0x4] ss:$16 sps:$4 sm:$0xff]   ;;  %v5307_v28 = vld [vmem:[#allocation8 + $0x1ec] ss:$16 sps:$4 sm:$0xff]  }
 0x1bc   : > { %v1504_v49 = vpop.f32.mrf.mxu0  ;;  %3183 = vmatmul.mubr.bf16.gmra.mxu0 %v6092_v42  ;;  %3668 = vmatpush1.bf16.msra.mxu1 %v5272_v25  ;;  %v5296_v58 = vld [vmem:[#allocation8] ss:$16 sps:$4 sm:$0xff]   ;;  %v5316_v63 = vld [vmem:[#allocation8 + $0x1a4] ss:$16 sps:$4 sm:$0xff]  }
 0x1bd   : > { %v2093_v40 = vpop.f32.mrf.mxu1  ;;  %v1505_v10 = vadd.f32 %v1504_v49, %v6105_v57  ;;  %3192 = vmatprep.mubr.bf16.mxu0 %v4523_v26  ;;  %3741 = vmatpush1.bf16.msra.mxu0 %v5275_v11  ;;  %v5304_v26 = vld [vmem:[#allocation8 + $0x1e4] ss:$16 sps:$4 sm:$0xff]   ;;  %v5308_v49 = vld [vmem:[#allocation8 + $0x1c0] ss:$16 sps:$4 sm:$0xff]  }
 0x1be   : > { %v1506_v29 = vpop.f32.mrf.mxu0  ;;  %3669 = vmatprep.subr.bf16.mxu1 %v5280_v30  ;;  %3742 = vmatprep.subr.bf16.mxu0 %v5283_v47  ;;  %v5322_v25 = vld [vmem:[#allocation8 + $0x184] ss:$16 sps:$4 sm:$0xff]   ;;  %v5320_v11 = vld [vmem:[#allocation8 + $0x180] ss:$16 sps:$4 sm:$0xff]   ;;  %v5323_v30 = vld [vmem:[#allocation8 + $0x188] ss:$16 sps:$4 sm:$0xff]  }
 0x1bf   : > { %v2095_v24 = vpop.f32.mrf.mxu1  ;;  %v1507_v45 = vadd.f32 %v1506_v29, %v6107_v6  ;;  %v6158_v59 = vadd.f32 %v2093_v40, %v1505_v10  ;;  %v5311_v40 = vld [vmem:[#allocation8 + $0x1c8] ss:$16 sps:$4 sm:$0xff]   ;;  %v5319_v10 = vld [vmem:[#allocation8 + $0x1ac] ss:$16 sps:$4 sm:$0xff]   ;;  %v5314_v29 = vld [vmem:[#allocation8 + $0x1a0] ss:$16 sps:$4 sm:$0xff]  }
 0x1c0   : > { %v1508_v61 = vpop.f32.mrf.mxu0  ;;  %3670 = vmatpush1.bf16.msra.mxu1 %v5278_v27  ;;  %v5326_v47 = vld [vmem:[#allocation8 + $0x160] ss:$16 sps:$4 sm:$0xff]  }
 0x1c1   : > { %v2097_v42 = vpop.f32.mrf.mxu1  ;;  %v1509_v52 = vadd.f32 %v1508_v61, %v6109_v9  ;;  %v6161_v57 = vadd.f32 %v2095_v24, %v1507_v45  ;;  %3743 = vmatpush1.bf16.msra.mxu0 %v5281_v19  ;;  %3671 = vmatprep.subr.bf16.mxu1 %v5286_v37  ;;  %v5317_v24 = vld [vmem:[#allocation8 + $0x1a8] ss:$16 sps:$4 sm:$0xff]   ;;  %v5325_v45 = vld [vmem:[#allocation8 + $0x18c] ss:$16 sps:$4 sm:$0xff]   ;;  %v5328_v61 = vld [vmem:[#allocation8 + $0x164] ss:$16 sps:$4 sm:$0xff]  }
 0x1c2   : > { %v1510_v53 = vpop.f32.mrf.mxu0  ;;  %3744 = vmatprep.subr.bf16.mxu0 %v5289_v12  ;;  %v5334_v37 = vld [vmem:[#allocation8 + $0x144] ss:$16 sps:$4 sm:$0xff]   ;;  %v5332_v12 = vld [vmem:[#allocation8 + $0x140] ss:$16 sps:$4 sm:$0xff]  }
 0x1c3   : > { %v6163_v54 = vpop.f32.mrf.mxu1  ;;  %v6166_v6 = vadd.f32 %v1510_v53, %v6111_v48  ;;  %v6168_v34 = vadd.f32 %v2097_v42, %v1509_v52  ;;  %v5284_v48 = vld [vmem:[#allocation8 + $0x40] ss:$16 sps:$4 sm:$0xff]   ;;  %v5331_v42 = vld [vmem:[#allocation8 + $0x16c] ss:$16 sps:$4 sm:$0xff]   ;;  %v5329_v52 = vld [vmem:[#allocation8 + $0x168] ss:$16 sps:$4 sm:$0xff]  }
 0x1c4   : > { %v1514_v5 = vpop.f32.mrf.mxu0  ;;  %3193 = vmatmul.mubr.bf16.gmra.mxu0 %v4522_v35  ;;  %3672 = vmatpush1.bf16.msra.mxu1 %v5284_v48  ;;  %v5340_v48 = vld [vmem:[#allocation8 + $0x124] ss:$16 sps:$4 sm:$0xff]  }
 0x1c5   : > { %v2103_v9 = vpop.f32.mrf.mxu1  ;;  %v1515_v3 = vadd.f32 %v1514_v5, %v6113_v22  ;;  %3745 = vmatpush1.bf16.msra.mxu0 %v5287_v17  ;;  %3673 = vmatprep.subr.bf16.mxu1 %v5292_v21  ;;  %v5337_v5 = vld [vmem:[#allocation8 + $0x14c] ss:$16 sps:$4 sm:$0xff]   ;;  %v5338_v17 = vld [vmem:[#allocation8 + $0x120] ss:$16 sps:$4 sm:$0xff]   ;;  %v5341_v21 = vld [vmem:[#allocation8 + $0x128] ss:$16 sps:$4 sm:$0xff]  }
 0x1c6   : > { %v1516_v51 = vpop.f32.mrf.mxu0  ;;  %3746 = vmatprep.subr.bf16.mxu0 %v5295_v20  ;;  %v5346_v20 = vld [vmem:[#allocation8 + $0x104] ss:$16 sps:$4 sm:$0xff]  }
 0x1c7   : > { %v2105_v13 = vpop.f32.mrf.mxu1  ;;  %v1517_v1 = vadd.f32 %v1516_v51, %v6115_v16  ;;  %v6175_v33 = vadd.f32 %v2103_v9, %v1515_v3  ;;  %v5335_v3 = vld [vmem:[#allocation8 + $0x148] ss:$16 sps:$4 sm:$0xff]  }
 0x1c8   : > { %v1518_v41 = vpop.f32.mrf.mxu0  ;;  %3674 = vmatpush1.bf16.msra.mxu1 %v5290_v32  ;;  %v5347_v32 = vld [vmem:[#allocation8 + $0x108] ss:$16 sps:$4 sm:$0xff]  }
 0x1c9   : > { %v2107_v55 = vpop.f32.mrf.mxu1  ;;  %v1519_v35 = vadd.f32 %v1518_v41, %v6117_v36  ;;  %v6178_v38 = vadd.f32 %v2105_v13, %v1517_v1  ;;  %3747 = vmatpush1.bf16.msra.mxu0 %v5293_v23  ;;  %3675 = vmatprep.subr.bf16.mxu1 %v5298_v43  ;;  %v5299_v36 = vld [vmem:[#allocation8 + $0x8] ss:$16 sps:$4 sm:$0xff]   ;;  %v5343_v1 = vld [vmem:[#allocation8 + $0x12c] ss:$16 sps:$4 sm:$0xff]  }
 0x1ca   : > { %v1520_v22 = vpop.f32.mrf.mxu0  ;;  %3748 = vmatprep.subr.bf16.mxu0 %v5301_v56 }
 0x1cb   : > { %v6181_v15 = vadd.f32 %v1520_v22, %v6119_v44  ;;  %v6183_v16 = vadd.f32 %v2107_v55, %v1519_v35  ;;  %v5305_v44 = vld [vmem:[#allocation8 + $0x1e8] ss:$16 sps:$4 sm:$0xff]   ;;  %v5344_v22 = vld [vmem:[#allocation8 + $0x100] ss:$16 sps:$4 sm:$0xff]  }
 0x1cc   : > { %3676 = vmatpush1.bf16.msra.mxu1 %v5296_v58 }
 0x1cd   : > { %6602 = vst [vmem:[#allocation16_spill] sm:$0xff] %v6181_v15  ;;  %3749 = vmatpush1.bf16.msra.mxu0 %v5299_v36  ;;  %3677 = vmatprep.subr.bf16.mxu1 %v5304_v26 }
 0x1ce   : > { %3750 = vmatprep.subr.bf16.mxu0 %v5307_v28 }
 0x1d0   : > { %3678 = vmatpush2.bf16.msra.mxu1 %v5302_v46 }
 0x1d1   : > { %3751 = vmatpush2.bf16.msra.mxu0 %v5305_v44  ;;  %3679 = vmatprep.subr.bf16.mxu1 %v5310_v50 }
 0x1d2   : > { %3752 = vmatprep.subr.bf16.mxu0 %v5313_v4 }
 0x1d4   : > { %3680 = vmatpush2.bf16.msra.mxu1 %v5308_v49 }
 0x1d5   : > { %3753 = vmatpush2.bf16.msra.mxu0 %v5311_v40  ;;  %3681 = vmatprep.subr.bf16.mxu1 %v5316_v63 }
 0x1d6   : > { %3754 = vmatprep.subr.bf16.mxu0 %v5319_v10 }
 0x1d8   : > { %3682 = vmatpush2.bf16.msra.mxu1 %v5314_v29 }
 0x1d9   : > { %3755 = vmatpush2.bf16.msra.mxu0 %v5317_v24  ;;  %3683 = vmatprep.subr.bf16.mxu1 %v5322_v25 }
 0x1da   : > { %3756 = vmatprep.subr.bf16.mxu0 %v5325_v45 }
 0x1dc   : > { %3684 = vmatpush2.bf16.msra.mxu1 %v5320_v11 }
 0x1dd   : > { %3757 = vmatpush2.bf16.msra.mxu0 %v5323_v30  ;;  %3685 = vmatprep.subr.bf16.mxu1 %v5328_v61 }
 0x1de   : > { %3758 = vmatprep.subr.bf16.mxu0 %v5331_v42 }
 0x1e0   : > { %3686 = vmatpush2.bf16.msra.mxu1 %v5326_v47 }
 0x1e1   : > { %3759 = vmatpush2.bf16.msra.mxu0 %v5329_v52  ;;  %3687 = vmatprep.subr.bf16.mxu1 %v5334_v37 }
 0x1e2   : > { %3760 = vmatprep.subr.bf16.mxu0 %v5337_v5 }
 0x1e4   : > { %3688 = vmatpush2.bf16.msra.mxu1 %v5332_v12 }
 0x1e5   : > { %3761 = vmatpush2.bf16.msra.mxu0 %v5335_v3  ;;  %3689 = vmatprep.subr.bf16.mxu1 %v5340_v48 }
 0x1e6   : > { %3762 = vmatprep.subr.bf16.mxu0 %v5343_v1 }
 0x1e8   : > { %3690 = vmatpush2.bf16.msra.mxu1 %v5338_v17 }
 0x1e9   : > { %3763 = vmatpush2.bf16.msra.mxu0 %v5341_v21  ;;  %3691 = vmatprep.subr.bf16.mxu1 %v5346_v20 }
 0x1ec   : > { %v2146_v53 = vpop.f32.mrf.mxu0  ;;  %3692 = vmatpush2.bf16.msra.mxu1 %v5344_v22 }
 0x1ed   : > { %v6186_v27 = vadd.f32 %v2146_v53, %v6125_v0 }
 0x1ee   : > { %v2148_v19 = vpop.f32.mrf.mxu0 }
 0x1ef   : > { %v6189_v9 = vadd.f32 %v2148_v19, %v6128_v62 }
 0x1f0   : > { %v2150_v51 = vpop.f32.mrf.mxu0 }
 0x1f1   : > { %v6192_v13 = vadd.f32 %v2150_v51, %v6135_v2  ;;  %v5349_v2 = vld [vmem:[#allocation8 + $0x10c] ss:$16 sps:$4 sm:$0xff]  }
 0x1f2   : > { %v6194_v0 = vpop.f32.mrf.mxu0  ;;  %3764 = vmatprep.subr.bf16.mxu0 %v5349_v2 }
 0x1f3   : > { %3765 = vmatpush2.bf16.msra.mxu0 %v5347_v32 }
 0x1f4   : > { %v2156_v41 = vpop.f32.mrf.mxu0 }
 0x1f5   : > { %v6197_v62 = vadd.f32 %v2156_v41, %v6141_v8 }
 0x1f6   : > { %v2158_v55 = vpop.f32.mrf.mxu0 }
 0x1f7   : > { %v6200_v35 = vadd.f32 %v2158_v55, %v6144_v14 }
 0x1f8   : > { %v2160_v23 = vpop.f32.mrf.mxu0 }
 0x1f9   : > { %v6203_v43 = vadd.f32 %v2160_v23, %v6153_v39 }
 0x1fa   : > { %v6205_v8 = vpop.f32.mrf.mxu0 }
 0x1fc   : > { %v2166_v56 = vpop.f32.mrf.mxu0 }
 0x1fd   : > { %v6208_v58 = vadd.f32 %v2166_v56, %v6158_v59 }
 0x1fe   : > { %v2168_v36 = vpop.f32.mrf.mxu0 }
 0x1ff   : > { %6603 = vst [vmem:[#allocation17_spill] sm:$0xff] %v6208_v58  ;;  %v6211_v14 = vadd.f32 %v2168_v36, %v6161_v57  ;;  %v6227_v57 = vpop.f32.mrf.mxu1 }
 0x200   : > { %v2170_v26 = vpop.f32.mrf.mxu0  ;;  %6607 = vst [vmem:[#allocation21_spill] sm:$0xff] %v6227_v57 }
 0x201   : > { %v6214_v28 = vadd.f32 %v2170_v26, %v6168_v34  ;;  %v2219_v40 = vpop.f32.mrf.mxu1 }
 0x202   : > { %v6216_v46 = vpop.f32.mrf.mxu0 }
 0x203   : > { %v2221_v63 = vpop.f32.mrf.mxu1 }
 0x204   : > { %v2176_v39 = vpop.f32.mrf.mxu0 }
 0x205   : > { %v6219_v44 = vadd.f32 %v2176_v39, %v6175_v33  ;;  %v2223_v34 = vpop.f32.mrf.mxu1 }
 0x206   : > { %v2178_v50 = vpop.f32.mrf.mxu0  ;;  %v2224_v58 = vadd.f32 %v2223_v34, %v6192_v13 }
 0x207   : > { %6604 = vst [vmem:[#allocation18_spill] sm:$0xff] %v6219_v44  ;;  %v6222_v4 = vadd.f32 %v2178_v50, %v6178_v38  ;;  %v6229_v10 = vpop.f32.mrf.mxu1 }
 0x208   : > { %v2180_v59 = vpop.f32.mrf.mxu0 }
 0x209   : > { %6605 = vst [vmem:[#allocation19_spill] sm:$0xff] %v6222_v4  ;;  %v6225_v49 = vadd.f32 %v2180_v59, %v6183_v16  ;;  %v6231_v29 = vpop.f32.mrf.mxu1  ;;  %v3221_v59 = vlaneseq }
 0x20a   : > { %v6241_v45 = vpop.f32.mrf.mxu0 }
 0x20b   : > { %6606 = vst [vmem:[#allocation20_spill] sm:$0xff] %v6225_v49  ;;  %v6233_v24 = vpop.f32.mrf.mxu1  ;;  %6609 = vst [vmem:[#allocation23_spill] sm:$0xff] %v6241_v45  ;;  %v2080_v49 = vadd.f32 %v6130_v60, %v6133_v7  ;;  %v3219_v60 = vld [vmem:[%s5751_s13] sm:$0x3]  ;;  %s5580_s13 = smov [#allocation11]  }
 0x20c   : > { %s5501_s28 = sshll.u32 %s5580_s13, 4  ;;  %s5502_s28 = int_to_ptr.vmem [resolvable:$false] %s5501_s28 }
 0x20d   : > { %v6235_v33 = vpop.f32.mrf.mxu1  ;;  %s5503_s30 = scalar_lea.vmem %s5502_s28, 4096  ;;  %p5504_p2 = scmp.lt.s32.totalorder %s6528_s15, %s5502_s28 }
 0x20e   : > { %p5505_p3 = scmp.lt.s32.totalorder %s5503_s30, %s5497_s12 }
 0x20f   : > { %v6237_v25 = vpop.f32.mrf.mxu1 }
 0x210   : > { %p5506_p9 = por %p5505_p3, %p5504_p2 }
 0x211   : > { %v6239_v38 = vpop.f32.mrf.mxu1 }
 0x212   : > { %6608 = vst [vmem:[#allocation22_spill] sm:$0xff] %v6239_v38  ;;  %p5507_p13 = pnand %p5506_p9, %p5500_p1 }
 0x213   : > { %v6243_v11 = vpop.f32.mrf.mxu1 }
 0x215   : > { %v6245_v61 = vpop.f32.mrf.mxu1 }
 0x217   : > { %v6247_v47 = vpop.f32.mrf.mxu1 }
 0x218   : > { %6610 = vst [vmem:[#allocation24_spill] sm:$0xff] %v6247_v47 }
 0x219   : > { %v6249_v53 = vpop.f32.mrf.mxu1 }
 0x21a   : > { %6611 = vst [vmem:[#allocation25_spill] sm:$0xff] %v6249_v53 }
 0x21b   : > { %v6251_v37 = vpop.f32.mrf.mxu1 }
 0x21c   : > { %6612 = vst [vmem:[#allocation26_spill] sm:$0xff] %v6251_v37 }
 0x21d   : > { %v6253_v12 = vpop.f32.mrf.mxu1 }
 0x21e   : > { %6613 = vst [vmem:[#allocation27_spill] sm:$0xff] %v6253_v12  ;;  %v6277_v12 = vshrl.u32 %v3221_v59, 7  ;;  %v2222_v59 = vadd.f32 %v2221_v63, %v6189_v9  ;;  %v2090_v9 = vadd.f32 %v6148_v18, %v6151_v31 }
 0x21f   : > { %v6255_v51 = vpop.f32.mrf.mxu1 }
 0x220   : > { %6614 = vst [vmem:[#allocation28_spill] sm:$0xff] %v6255_v51  ;;  %v2163_v34 = vadd.f32 %v6205_v8, %v2090_v9 }
 0x22c   : > { %v3018_v16 = vpop.f32.mrf.mxu0 }
 0x22d   : > { %v3091_v1 = vpop.f32.mrf.mxu1 }
 0x22e   : > { %v3020_v30 = vpop.f32.mrf.mxu0  ;;  %v3092_v4 = vadd.f32 %v3091_v1, %v3018_v16  ;;  %v2220_v16 = vadd.f32 %v2219_v40, %v6186_v27 }
 0x22f   : > { %v3093_v21 = vpop.f32.mrf.mxu1 }
 0x230   : > { %v3022_v42 = vpop.f32.mrf.mxu0  ;;  %v3094_v37 = vadd.f32 %v3093_v21, %v3020_v30 }
 0x231   : > { %v3095_v55 = vpop.f32.mrf.mxu1 }
 0x232   : > { %v3024_v52 = vpop.f32.mrf.mxu0  ;;  %v3096_v57 = vadd.f32 %v3095_v55, %v3022_v42 }
 0x233   : > { %v3097_v2 = vpop.f32.mrf.mxu1 }
 0x234   : > { %v3028_v19 = vpop.f32.mrf.mxu0 }
 0x235   : > { %v3101_v22 = vpop.f32.mrf.mxu1 }
 0x236   : > { %v3030_v5 = vpop.f32.mrf.mxu0 }
 0x237   : > { %v3103_v23 = vpop.f32.mrf.mxu1 }
 0x238   : > { %v3032_v3 = vpop.f32.mrf.mxu0  ;;  %v3104_v40 = vadd.f32 %v3103_v23, %v3030_v5  ;;  %v2234_v5 = vadd.f32 %v6235_v33, %v6203_v43  ;;  %v2100_v43 = vadd.f32 %v6163_v54, %v6166_v6 }
 0x239   : > { %v3105_v36 = vpop.f32.mrf.mxu1 }
 0x23a   : > { %v6257_v48 = vpop.f32.mrf.mxu0 }
 0x23b   : > { %v3107_v39 = vpop.f32.mrf.mxu1 }
 0x23c   : > { %v6259_v17 = vpop.f32.mrf.mxu0 }
 0x23d   : > { %v6273_v51 = vpop.f32.mrf.mxu1 }
 0x23e   : > { %v6261_v41 = vpop.f32.mrf.mxu0 }
 0x240   : > { %v6263_v20 = vpop.f32.mrf.mxu0 }
 0x242   : > { %v6265_v32 = vpop.f32.mrf.mxu0 }
 0x243   : > { %6615 = vst [vmem:[#allocation29_spill] sm:$0xff] %v6265_v32  ;;  %v3098_v32 = vadd.f32 %v3097_v2, %v3024_v52  ;;  %v2230_v2 = vadd.f32 %v6231_v29, %v6197_v62 }
 0x244   : > { %v6267_v56 = vpop.f32.mrf.mxu0 }
 0x245   : > { %6616 = vst [vmem:[#allocation30_spill] sm:$0xff] %v6267_v56  ;;  %v3113_v56 = vpop.f32.mrf.mxu1 }
 0x246   : > { %v6269_v26 = vpop.f32.mrf.mxu0  ;;  %v3114_v62 = vadd.f32 %v3113_v56, %v6261_v41 }
 0x247   : > { %6617 = vst [vmem:[#allocation31_spill] sm:$0xff] %v6269_v26  ;;  %v3227_v26 = vsub.s32 1, %v6277_v12  ;;  %v3115_v30 = vpop.f32.mrf.mxu1 }
 0x248   : > { %v6271_v50 = vpop.f32.mrf.mxu0 }
 0x249   : > { %6618 = vst [vmem:[#allocation32_spill] sm:$0xff] %v6271_v50  ;;  %v2153_v50 = vadd.f32 %v6194_v0, %v2080_v49  ;;  %v6290_v1 = vrot.slane %v3219_v60, %v3227_v26  ;;  %v3117_v42 = vpop.f32.mrf.mxu1 }
 0x24a   : > { %v6275_v53 = vpop.f32.mrf.mxu0 }
 0x24b   : > { %6619 = vst [vmem:[#allocation33_spill] sm:$0xff] %v6275_v53  ;;  %v3223_v53 = vsub.s32 0, %v6277_v12 }
 0x26c   : > { %v3164_v44 = vpop.f32.mrf.mxu0 }
 0x26d   : > { %v3165_v47 = vadd.f32 %v3164_v44, %v3092_v4  ;;  %v2226_v44 = vadd.f32 %v6229_v10, %v2153_v50 }
 0x26e   : > { %v3166_v45 = vpop.f32.mrf.mxu0 }
 0x26f   : > { %v3167_v15 = vadd.f32 %v3166_v45, %v3094_v37  ;;  %v3203_v13 = vadd.f32 %v3165_v47, %v2220_v16  ;;  %v2232_v47 = vadd.f32 %v6233_v24, %v6200_v35  ;;  %v3121_v35 = vpop.f32.mrf.mxu1  ;;  %v3116_v16 = vadd.f32 %v3115_v30, %v6263_v20 }
 0x270   : > { %v3168_v38 = vpop.f32.mrf.mxu0 }
 0x271   : > { %v3169_v7 = vadd.f32 %v3168_v38, %v3096_v57  ;;  %v3204_v4 = vadd.f32 %v3167_v15, %v2222_v59  ;;  %v6297_v57 = vrot.slane %v3219_v60, %v3223_v53  ;;  %v3102_v38 = vadd.f32 %v3101_v22, %v3028_v19  ;;  %v3123_v59 = vpop.f32.mrf.mxu1 }
 0x272   : > { %v3170_v0 = vpop.f32.mrf.mxu0  ;;  %v2236_v22 = vadd.f32 %v6237_v25, %v2163_v34  ;;  %v2173_v25 = vadd.f32 %v6216_v46, %v2100_v43  ;;  %v2242_v46 = vadd.f32 %v6243_v11, %v6211_v14  ;;  %v6630_v43 = vld [vmem:[#allocation19_spill] sm:$0xff] }
 0x273   : > { %v3205_v49 = vadd.f32 %v3169_v7, %v2224_v58  ;;  %v3171_v45 = vadd.f32 %v3170_v0, %v3098_v32  ;;  %v3106_v58 = vadd.f32 %v3105_v36, %v3032_v3  ;;  %v6304_v52 = vadd.f32 %v6290_v1, %v3204_v4  ;;  %v3125_v14 = vpop.f32.mrf.mxu1 }
 0x274   : > { %v3174_v27 = vpop.f32.mrf.mxu0  ;;  %v6312_v37 = vadd.f32 %v6297_v57, %v3203_v13  ;;  %v3108_v3 = vadd.f32 %v3107_v39, %v6257_v48  ;;  %v3112_v39 = vadd.f32 %v6273_v51, %v6259_v17  ;;  %v2244_v0 = vadd.f32 %v6245_v61, %v6214_v28  ;;  %v6623_v13 = vld [vmem:[#allocation24_spill] sm:$0xff]  ;;  %v6625_v61 = vld [vmem:[#allocation21_spill] sm:$0xff] }
 0x275   : > { %v3206_v63 = vadd.f32 %v3171_v45, %v2226_v44  ;;  %v6301_v10 = vadd.f32 %v6297_v57, %v3205_v49  ;;  %v3175_v8 = vadd.f32 %v3174_v27, %v3102_v38  ;;  %v6620_v44 = vld [vmem:[#allocation29_spill] sm:$0xff]  ;;  %v6622_v45 = vld [vmem:[#allocation22_spill] sm:$0xff]  ;;  %v2246_v27 = vadd.f32 %v6623_v13, %v2173_v25  ;;  %v6624_v28 = vld [vmem:[#allocation16_spill] sm:$0xff] }
 0x276   : > { %v3176_v15 = vpop.f32.mrf.mxu0  ;;  %v3118_v20 = vadd.f32 %v3117_v42, %v6620_v44  ;;  %v6621_v49 = vld [vmem:[#allocation17_spill] sm:$0xff]  ;;  %v2110_v42 = vadd.f32 %v6625_v61, %v6624_v28  ;;  %v6632_v25 = vld [vmem:[#allocation20_spill] sm:$0xff]  ;;  %v3331_v28 = vsub.s32 2, %v6277_v12  ;;  %v6402_v61 = vld [vmem:[#allocation9] sm:$0xf] }
 0x277   : > { %v6307_v18 = vadd.f32 %v6290_v1, %v3206_v63  ;;  %v3177_v31 = vadd.f32 %v3176_v15, %v3104_v40  ;;  %v3247_v24 = vpack.c.bf16 %v6301_v10, %v6312_v37  ;;  %v3207_v33 = vadd.f32 %v3175_v8, %v2230_v2  ;;  %v6637_v44 = vld [vmem:[#allocation28_spill] sm:$0xff] }
 0x278   : > { %v3178_v19 = vpop.f32.mrf.mxu0  ;;  %v2240_v9 = vadd.f32 %v6622_v45, %v6621_v49 }
 0x279   : > { %v3179_v21 = vadd.f32 %v3178_v19, %v3106_v58  ;;  %v3248_v55 = vpack.c.bf16 %v6307_v18, %v6304_v52  ;;  %v3208_v23 = vadd.f32 %v3177_v31, %v2232_v47  ;;  %v6343_v56 = vadd.f32 %v6297_v57, %v3207_v33  ;;  %v6626_v31 = vld [vmem:[#allocation31_spill] sm:$0xff]  ;;  %v6631_v33 = vld [vmem:[#allocation26_spill] sm:$0xff] }
 0x27a   : > { %v3180_v32 = vpop.f32.mrf.mxu0  ;;  %v3124_v47 = vadd.f32 %v3123_v59, %v6626_v31  ;;  %v6627_v19 = vld [vmem:[#allocation23_spill] sm:$0xff] }
 0x27b   : > { %v3209_v36 = vadd.f32 %v3179_v21, %v2234_v5  ;;  %v3181_v50 = vadd.f32 %v3180_v32, %v3108_v3  ;;  %3693 = vmatprep.mubr.bf16.mxu1 %v3248_v55  ;;  %3766 = vmatprep.mubr.bf16.mxu0 %v3248_v55  ;;  %v6335_v54 = vadd.f32 %v6290_v1, %v3208_v23  ;;  %v6628_v3 = vld [vmem:[#allocation30_spill] sm:$0xff]  ;;  %v3127_v55 = vpop.f32.mrf.mxu1 }
 0x27c   : > { %v3184_v48 = vpop.f32.mrf.mxu0  ;;  %3694 = vmatmul.mubr.bf16.vlgmr.msra.gmra.mxu1 %v3247_v24  ;;  %3767 = vmatmul.mubr.bf16.vlgmr.msra.gmra.mxu0 %v3247_v24  ;;  %v2183_v5 = vadd.f32 %v6627_v19, %v2110_v42  ;;  %v3122_v21 = vadd.f32 %v3121_v35, %v6628_v3  ;;  %v6629_v24 = vld [vmem:[#allocation32_spill] sm:$0xff] }
 0x27d   : > { %v3210_v29 = vadd.f32 %v3181_v50, %v2236_v22  ;;  %v6331_v60 = vadd.f32 %v6297_v57, %v3209_v36  ;;  %v3185_v51 = vadd.f32 %v3184_v48, %v3112_v39  ;;  %v3126_v32 = vadd.f32 %v3125_v14, %v6629_v24  ;;  %v6633_v39 = vld [vmem:[#allocation27_spill] sm:$0xff] }
 0x27e   : > { %v3186_v7 = vpop.f32.mrf.mxu0  ;;  %v2252_v48 = vadd.f32 %v6631_v33, %v6630_v43  ;;  %v2254_v59 = vadd.f32 %v6633_v39, %v6632_v25 }
 0x27f   : > { %v6338_v6 = vadd.f32 %v6290_v1, %v3210_v29  ;;  %v3187_v41 = vadd.f32 %v3186_v7, %v3114_v62  ;;  %v3249_v40 = vpack.c.bf16 %v6331_v60, %v6343_v56  ;;  %v3211_v15 = vadd.f32 %v3185_v51, %v2240_v9  ;;  %v6634_v7 = vld [vmem:[#allocation33_spill] sm:$0xff]  ;;  %v6635_v51 = vld [vmem:[#allocation18_spill] sm:$0xff] }
 0x280   : > { %v3188_v17 = vpop.f32.mrf.mxu0 }
 0x281   : > { %v3189_v30 = vadd.f32 %v3188_v17, %v3116_v16  ;;  %v3250_v4 = vpack.c.bf16 %v6338_v6, %v6335_v54  ;;  %v3212_v63 = vadd.f32 %v3187_v41, %v2242_v46  ;;  %v6373_v62 = vadd.f32 %v6297_v57, %v3211_v15  ;;  %v6636_v17 = vld [vmem:[#allocation25_spill] sm:$0xff] }
 0x282   : > { %v3190_v11 = vpop.f32.mrf.mxu0  ;;  %v3128_v16 = vadd.f32 %v3127_v55, %v6634_v7 }
 0x283   : > { %v3213_v34 = vadd.f32 %v3189_v30, %v2244_v0  ;;  %v3191_v38 = vadd.f32 %v3190_v11, %v3118_v20  ;;  %3703 = vmatprep.mubr.bf16.mxu1 %v3250_v4  ;;  %3776 = vmatprep.mubr.bf16.mxu0 %v3250_v4  ;;  %v6365_v23 = vadd.f32 %v6290_v1, %v3212_v63 }
 0x284   : > { %v3194_v58 = vpop.f32.mrf.mxu0  ;;  %3704 = vmatmul.mubr.bf16.gmra.mxu1 %v3249_v40  ;;  %3777 = vmatmul.mubr.bf16.gmra.mxu0 %v3249_v40  ;;  %v2250_v0 = vadd.f32 %v6636_v17, %v6635_v51  ;;  %v2256_v20 = vadd.f32 %v6637_v44, %v2183_v5 }
 0x285   : > { %v3214_v8 = vadd.f32 %v3191_v38, %v2246_v27  ;;  %v6361_v2 = vadd.f32 %v6297_v57, %v3213_v34  ;;  %v3195_v35 = vadd.f32 %v3194_v58, %v3122_v21 }
 0x286   : > { %v3196_v22 = vpop.f32.mrf.mxu0 }
 0x287   : > { %v6368_v36 = vadd.f32 %v6290_v1, %v3214_v8  ;;  %v3197_v50 = vadd.f32 %v3196_v22, %v3124_v47  ;;  %v3251_v4 = vpack.c.bf16 %v6361_v2, %v6373_v62  ;;  %v3215_v13 = vadd.f32 %v3195_v35, %v2250_v0 }
 0x288   : > { %v3198_v29 = vpop.f32.mrf.mxu0 }
 0x289   : > { %v3199_v41 = vadd.f32 %v3198_v29, %v3126_v32  ;;  %v3252_v46 = vpack.c.bf16 %v6368_v36, %v6365_v23  ;;  %v3216_v49 = vadd.f32 %v3197_v50, %v2252_v48  ;;  %v6395_v63 = vadd.f32 %v6297_v57, %v3215_v13 }
 0x28a   : > { %v3200_v30 = vpop.f32.mrf.mxu0 }
 0x28b   : > { %v3217_v45 = vadd.f32 %v3199_v41, %v2254_v59  ;;  %v3201_v9 = vadd.f32 %v3200_v30, %v3128_v16  ;;  %3713 = vmatprep.mubr.bf16.mxu1 %v3252_v46  ;;  %3786 = vmatprep.mubr.bf16.mxu0 %v3252_v46  ;;  %v6389_v11 = vadd.f32 %v6290_v1, %v3216_v49  ;;  %v3335_v16 = vsub.s32 3, %v6277_v12 }
 0x28c   : > { %3714 = vmatmul.mubr.bf16.gmra.mxu1 %v3251_v4  ;;  %3787 = vmatmul.mubr.bf16.gmra.mxu0 %v3251_v4 }
 0x28d   : > { %v3218_v27 = vadd.f32 %v3201_v9, %v2256_v20  ;;  %v6386_v14 = vadd.f32 %v6297_v57, %v3217_v45  ;;  %v6407_v57 = vrot.slane %v6402_v61, %v3331_v28  ;;  %v3336_v17 = vrot.slane %v6402_v61, %v3335_v16 }
 0x28f   : > { %v6392_v40 = vadd.f32 %v6290_v1, %v3218_v27  ;;  %v3253_v38 = vpack.c.bf16 %v6386_v14, %v6395_v63 }
 0x291   : > { %v3254_v34 = vpack.c.bf16 %v6392_v40, %v6389_v11 }
 0x293   : > { %3723 = vmatprep.mubr.bf16.mxu1 %v3254_v34  ;;  %3796 = vmatprep.mubr.bf16.mxu0 %v3254_v34 }
 0x294   : > { %3724 = vmatmul.mubr.bf16.gmra.mxu1 %v3253_v38  ;;  %3797 = vmatmul.mubr.bf16.gmra.mxu0 %v3253_v38 }
 0x33c   : > { %v6404_v42 = vpop.f32.mrf.mxu1  ;;  %v3768_v1 = vpop.f32.mrf.mxu0 }
 0x33d   : > { %v3769_v8 = vadd.f32 %v3768_v1, %v6407_v57 }
 0x33e   : > { %v6409_v15 = vpop.f32.mrf.mxu1  ;;  %v3770_v58 = vpop.f32.mrf.mxu0 }
 0x340   : > { %v6411_v31 = vpop.f32.mrf.mxu1  ;;  %v3772_v47 = vpop.f32.mrf.mxu0 }
 0x341   : > { %v3773_v19 = vadd.f32 %v3772_v47, %v6407_v57 }
 0x342   : > { %v6415_v5 = vpop.f32.mrf.mxu1  ;;  %v3774_v3 = vpop.f32.mrf.mxu0 }
 0x343   : > { %v3815_v21 = vpack.c.bf16 %v3773_v19, %v3769_v8  ;;  %v3775_v47 = vadd.f32 %v3774_v3, %v3336_v17  ;;  %v3771_v19 = vadd.f32 %v3770_v58, %v3336_v17 }
 0x344   : > { %v6417_v55 = vpop.f32.mrf.mxu1  ;;  %v3778_v22 = vpop.f32.mrf.mxu0 }
 0x345   : > { %4711 = vmatprep.mubr.bf16.mxu1 %v3815_v21  ;;  %v3819_v21 = vpack.c.bf16 %v3775_v47, %v3771_v19 }
 0x346   : > { %v3780_v24 = vpop.f32.mrf.mxu0  ;;  %v6419_v32 = vpop.f32.mrf.mxu1 }
 0x347   : > { %v3781_v38 = vadd.f32 %v3780_v24, %v3336_v17  ;;  %v3324_v24 = vrot.slane %v6402_v61, %v3223_v53 }
 0x348   : > { %v3782_v50 = vpop.f32.mrf.mxu0  ;;  %v6421_v33 = vpop.f32.mrf.mxu1 }
 0x349   : > { %v3783_v3 = vadd.f32 %v3782_v50, %v6407_v57 }
 0x34a   : > { %v3784_v43 = vpop.f32.mrf.mxu0  ;;  %v3711_v29 = vpop.f32.mrf.mxu1 }
 0x34b   : > { %v3785_v27 = vadd.f32 %v3784_v43, %v3336_v17 }
 0x34c   : > { %v3788_v48 = vpop.f32.mrf.mxu0  ;;  %v3715_v59 = vpop.f32.mrf.mxu1 }
 0x34d   : > { %v3820_v28 = vpack.c.bf16 %v3785_v27, %v3781_v38 }
 0x34e   : > { %v3790_v35 = vpop.f32.mrf.mxu0  ;;  %v3717_v46 = vpop.f32.mrf.mxu1 }
 0x34f   : > { %v3791_v49 = vadd.f32 %v3790_v35, %v3336_v17  ;;  %v3328_v35 = vrot.slane %v6402_v61, %v3227_v26  ;;  %v3789_v26 = vadd.f32 %v3788_v48, %v6407_v57  ;;  %v3716_v61 = vadd.f32 %v3715_v59, %v3324_v24 }
 0x350   : > { %v3792_v25 = vpop.f32.mrf.mxu0  ;;  %v3719_v4 = vpop.f32.mrf.mxu1 }
 0x351   : > { %v3793_v58 = vadd.f32 %v3792_v25, %v6407_v57  ;;  %v3712_v27 = vadd.f32 %v3711_v29, %v3328_v35  ;;  %v3708_v50 = vadd.f32 %v6419_v32, %v3328_v35  ;;  %v3706_v29 = vadd.f32 %v6417_v55, %v3324_v24 }
 0x352   : > { %v3794_v39 = vpop.f32.mrf.mxu0  ;;  %v3721_v13 = vpop.f32.mrf.mxu1  ;;  %v3698_v59 = vadd.f32 %v6409_v15, %v3328_v35  ;;  %v3700_v32 = vadd.f32 %v6411_v31, %v3324_v24 }
 0x353   : > { %v3795_v44 = vadd.f32 %v3794_v39, %v3336_v17 }
 0x354   : > { %v6423_v7 = vpop.f32.mrf.mxu0  ;;  %v3725_v34 = vpop.f32.mrf.mxu1 }
 0x355   : > { %v3821_v9 = vpack.c.bf16 %v3795_v44, %v3791_v49  ;;  %v3722_v44 = vadd.f32 %v3721_v13, %v3328_v35  ;;  %v3718_v49 = vadd.f32 %v3717_v46, %v3328_v35  ;;  %v3702_v13 = vadd.f32 %v6415_v5, %v3328_v35 }
 0x356   : > { %v3800_v41 = vpop.f32.mrf.mxu0  ;;  %v3727_v1 = vpop.f32.mrf.mxu1  ;;  %v3810_v46 = vpack.c.bf16 %v3712_v27, %v3708_v50 }
 0x357   : > { %v3801_v20 = vadd.f32 %v3800_v41, %v3336_v17  ;;  %v3728_v41 = vadd.f32 %v3727_v1, %v3328_v35  ;;  %v3812_v53 = vpack.c.bf16 %v3722_v44, %v3718_v49  ;;  %v3808_v38 = vpack.c.bf16 %v3702_v13, %v3698_v59 }
 0x358   : > { %v3802_v51 = vpop.f32.mrf.mxu0  ;;  %v3729_v8 = vpop.f32.mrf.mxu1 }
 0x359   : > { %v3803_v25 = vadd.f32 %v3802_v51, %v6407_v57 }
 0x35a   : > { %v3804_v0 = vpop.f32.mrf.mxu0  ;;  %v3731_v39 = vpop.f32.mrf.mxu1 }
 0x35b   : > { %v3805_v30 = vadd.f32 %v3804_v0, %v3336_v17  ;;  %v3732_v16 = vadd.f32 %v3731_v39, %v3328_v35  ;;  %v3730_v17 = vadd.f32 %v3729_v8, %v3324_v24  ;;  %v3779_v0 = vadd.f32 %v3778_v22, %v6407_v57 }
 0x35c   : > { %v3710_v22 = vadd.f32 %v6421_v33, %v3324_v24  ;;  %v3696_v33 = vadd.f32 %v6404_v42, %v3324_v24 }
 0x35d   : > { %v3822_v45 = vpack.c.bf16 %v3805_v30, %v3801_v20  ;;  %v3814_v43 = vpack.c.bf16 %v3732_v16, %v3728_v41  ;;  %v3726_v20 = vadd.f32 %v3725_v34, %v3324_v24  ;;  %v3816_v30 = vpack.c.bf16 %v3783_v3, %v3779_v0 }
 0x35e   : > { %v3809_v51 = vpack.c.bf16 %v3710_v22, %v3706_v29  ;;  %v3807_v5 = vpack.c.bf16 %v3700_v32, %v3696_v33 }
 0x35f   : > { %4703 = vmatprep.subr.bf16.mxu1 %v3822_v45  ;;  %v3813_v12 = vpack.c.bf16 %v3730_v17, %v3726_v20 }
 0x360   : > { %4704 = vmatpush3.bf16.xpose.msra.mxu1 %v3822_v45  ;;  %v3720_v45 = vadd.f32 %v3719_v4, %v3324_v24  ;;  %v3799_v4 = vadd.f32 %v6423_v7, %v6407_v57 }
 0x361   : > { %4705 = vmatprep.subr.bf16.mxu1 %v3821_v9 }
 0x362   : > { %v3811_v48 = vpack.c.bf16 %v3720_v45, %v3716_v61  ;;  %v3818_v34 = vpack.c.bf16 %v3803_v25, %v3799_v4 }
 0x368   : > { %4706 = vmatpush3.bf16.xpose.msra.mxu1 %v3821_v9  ;;  %v3817_v9 = vpack.c.bf16 %v3793_v58, %v3789_v26 }
 0x369   : > { %4707 = vmatprep.subr.bf16.mxu1 %v3820_v28 }
 0x370   : > { %4708 = vmatpush3.bf16.xpose.msra.mxu1 %v3820_v28 }
 0x371   : > { %4709 = vmatprep.subr.bf16.mxu1 %v3819_v21 }
 0x378   : > { %4710 = vmatpush3.bf16.xpose.msra.mxu1 %v3819_v21 }
 0x379   : > { %3985 = vmatprep.subr.bf16.mxu1 %v3814_v43  ;;  %v5579_v43 = vmov 0  }
 0x37f   : > { %4712 = vmatmul.mubr.bf16.vlgmr.msra.gmra.mxu1 %v3816_v30 }
 0x380   : > { %4715 = vmatprep.mubr.bf16.mxu1 %v3817_v9  ;;  %3986 = vmatpush1.bf16.msra.mxu1 %v3813_v12 }
 0x381   : > { %3987 = vmatprep.subr.bf16.mxu1 %v3812_v53 }
 0x384   : > { %3988 = vmatpush1.bf16.msra.mxu1 %v3811_v48 }
 0x385   : > { %3989 = vmatprep.subr.bf16.mxu1 %v3810_v46 }
 0x387   : > { %4716 = vmatmul.mubr.bf16.gmra.mxu1 %v3818_v34 }
 0x388   : > { %3990 = vmatpush1.bf16.msra.mxu1 %v3809_v51  ;;  %4009 = vmatprep.mubr.bf16.mxu1 %v5579_v43 }
 0x389   : > { %3991 = vmatprep.subr.bf16.mxu1 %v3808_v38 }
 0x38c   : > { %3992 = vmatpush1.bf16.msra.mxu1 %v3807_v5 }
 0x43f   : > { %v4713_v57 = vpop.f32.mrf.mxu1 }
 0x440   : > { %v3895_v55 = vsel %vm3888_vm6, %v4713_v57, -inf }
 0x441   : > { %3896 = vmax.xlane.f32.xlu1 %v3895_v55  ;;  %v3857_v7 = vpop.f32.mrf.mxu1 }
 0x442   : > { %v3889_v15 = vsel %vm3888_vm6, %v3857_v7, -inf }
 0x443   : > { %3890 = vmax.xlane.f32.xlu0 %v3889_v15  ;;  %v4714_v28 = vpop.f32.mrf.mxu1 }
 0x444   : > { %v3898_v31 = vsel %vm3888_vm6, %v4714_v28, -inf }
 0x445   : > { %3899 = vmax.xlane.f32.xlu1 %v3898_v31  ;;  %v3860_v1 = vpop.f32.mrf.mxu1 }
 0x446   : > { %v3892_v42 = vsel %vm3888_vm6, %v3860_v1, -inf }
 0x447   : > { %3893 = vmax.xlane.f32.xlu0 %v3892_v42  ;;  %v4717_v47 = vpop.f32.mrf.mxu1 }
 0x448   : > { %v3907_v35 = vsel %vm3888_vm6, %v4717_v47, -inf }
 0x449   : > { %v3873_v8 = vpop.f32.mrf.mxu1 }
 0x44a   : > { %v3901_v19 = vsel %vm3888_vm6, %v3873_v8, -inf }
 0x44b   : > { %3902 = vmax.xlane.f32.xlu0 %v3901_v19  ;;  %v4718_v21 = vpop.f32.mrf.mxu1 }
 0x44c   : > { %v3910_v41 = vsel %vm3888_vm6, %v4718_v21, -inf }
 0x44d   : > { %v3876_v39 = vpop.f32.mrf.mxu1 }
 0x44e   : > { %v3904_v16 = vsel %vm3888_vm6, %v3876_v39, -inf }
 0x44f   : > { %3908 = vmax.xlane.f32.xlu0 %v3907_v35  ;;  %3905 = vmax.xlane.f32.xlu1 %v3904_v16 }
 0x453   : > { %3911 = vmax.xlane.f32.xlu1 %v3910_v41 }
 0x4ca   : > { %v3897_v24 = vpop.xlane.xlu1 %3896 }
 0x4cb   : > { %v3915_v3 = vsub.f32 %v4713_v57, %v3897_v24 }
 0x4cc   : > { %v3891_v58 = vpop.xlane.xlu0 %3890 }
 0x4cd   : > { %v3925_v17 = vmul.f32 1.442695, %v3915_v3  ;;  %v3913_v0 = vsub.f32 %v3857_v7, %v3891_v58 }
 0x4ce   : > { %v3900_v44 = vpop.xlane.xlu1 %3899 }
 0x4cf   : > { %5350 = vpow2.f32 %v3925_v17  ;;  %v3921_v26 = vmul.f32 1.442695, %v3913_v0  ;;  %v3916_v20 = vsub.f32 %v4714_v28, %v3900_v44  ;;  %v6471_v0 = vstv %s4074_s8 }
 0x4d0   : > { %v3894_v30 = vpop.xlane.xlu0 %3893 }
 0x4d1   : > { %5352 = vpow2.f32 %v3921_v26  ;;  %v3927_v49 = vmul.f32 1.442695, %v3916_v20  ;;  %v3914_v45 = vsub.f32 %v3860_v1, %v3894_v30 }
 0x4d3   : > { %5354 = vpow2.f32 %v3927_v49  ;;  %v3923_v9 = vmul.f32 1.442695, %v3914_v45 }
 0x4d4   : > { %v3903_v12 = vpop.xlane.xlu0 %3902 }
 0x4d5   : > { %5356 = vpow2.f32 %v3923_v9  ;;  %v3917_v27 = vsub.f32 %v3873_v8, %v3903_v12 }
 0x4d7   : > { %v3929_v53 = vmul.f32 1.442695, %v3917_v27 }
 0x4d8   : > { %v3909_v61 = vpop.xlane.xlu0 %3908  ;;  %v3906_v50 = vpop.xlane.xlu1 %3905 }
 0x4d9   : > { %5358 = vpow2.f32 %v3929_v53  ;;  %v3919_v25 = vsub.f32 %v4717_v47, %v3909_v61  ;;  %v3918_v22 = vsub.f32 %v3876_v39, %v3906_v50 }
 0x4db   : > { %v3933_v48 = vmul.f32 1.442695, %v3919_v25  ;;  %v3931_v13 = vmul.f32 1.442695, %v3918_v22 }
 0x4dc   : > { %v5351_v46 = vpop.eup %5350  ;;  %v3912_v4 = vpop.xlane.xlu1 %3911 }
 0x4dd   : > { %5360 = vpow2.f32 %v3933_v48  ;;  %v3920_v29 = vsub.f32 %v4718_v21, %v3912_v4  ;;  %v3943_v59 = vsel %vm3888_vm6, %v5351_v46, 0.0 }
 0x4de   : > { %v5353_v34 = vpop.eup %5352  ;;  %5362 = vpow2.f32 %v3931_v13  ;;  %3944 = vadd.xlane.f32.xlu0 %v3943_v59 }
 0x4df   : > { %v3935_v32 = vmul.f32 1.442695, %v3920_v29  ;;  %v3937_v38 = vsel %vm3888_vm6, %v5353_v34, 0.0 }
 0x4e0   : > { %v5355_v51 = vpop.eup %5354 }
 0x4e1   : > { %5364 = vpow2.f32 %v3935_v32  ;;  %v3946_v33 = vsel %vm3888_vm6, %v5355_v51, 0.0  ;;  %v3962_v42 = vpack.c.bf16 %v5355_v51, %v5351_v46 }
 0x4e2   : > { %v5357_v5 = vpop.eup %5356  ;;  %3938 = vadd.xlane.f32.xlu0 %v3937_v38  ;;  %3947 = vadd.xlane.f32.xlu1 %v3946_v33 }
 0x4e3   : > { %v3961_v57 = vpack.c.bf16 %v5357_v5, %v5353_v34  ;;  %v3940_v55 = vsel %vm3888_vm6, %v5357_v5, 0.0 }
 0x4e5   : > { %4684 = vmatmul.mubr.msk.bf16.vlgmr.msra.gmra.mxu1 %vm3888_vm6, %v3961_v57 }
 0x4e6   : > { %v5359_v7 = vpop.eup %5358  ;;  %3941 = vadd.xlane.f32.xlu1 %v3940_v55  ;;  %4019 = vmatprep.mubr.bf16.mxu1 %v5579_v43 }
 0x4e7   : > { %v3949_v15 = vsel %vm3888_vm6, %v5359_v7, 0.0 }
 0x4e8   : > { %3950 = vadd.xlane.f32.xlu0 %v3949_v15 }
 0x4ea   : > { %v5361_v28 = vpop.eup %5360 }
 0x4eb   : > { %v5363_v31 = vpop.eup %5362  ;;  %v3955_v1 = vsel %vm3888_vm6, %v5361_v28, 0.0 }
 0x4ec   : > { %3956 = vadd.xlane.f32.xlu0 %v3955_v1  ;;  %v3952_v47 = vsel %vm3888_vm6, %v5363_v31, 0.0  ;;  %v3963_v21 = vpack.c.bf16 %v5363_v31, %v5359_v7 }
 0x4ed   : > { %3953 = vadd.xlane.f32.xlu1 %v3952_v47  ;;  %4685 = vmatmul.mubr.msk.bf16.gmra.mxu1 %vm3888_vm6, %v3962_v42 }
 0x4ee   : > { %v5365_v8 = vpop.eup %5364  ;;  %4029 = vmatprep.mubr.bf16.mxu1 %v5579_v43 }
 0x4ef   : > { %v3958_v19 = vsel %vm3888_vm6, %v5365_v8, 0.0  ;;  %v3964_v39 = vpack.c.bf16 %v5365_v8, %v5361_v28 }
 0x4f1   : > { %3959 = vadd.xlane.f32.xlu1 %v3958_v19 }
 0x4f5   : > { %4686 = vmatmul.mubr.msk.bf16.gmra.mxu1 %vm3888_vm6, %v3963_v21 }
 0x4f6   : > { %4039 = vmatprep.mubr.bf16.mxu1 %v5579_v43 }
 0x4fd   : > { %4687 = vmatmul.mubr.msk.bf16.gmra.mxu1 %vm3888_vm6, %v3964_v39 }
 0x567   : > { %v3945_v35 = vpop.xlane.xlu0 %3944 }
 0x56b   : > { %v3948_v16 = vpop.xlane.xlu1 %3947  ;;  %v3939_v41 = vpop.xlane.xlu0 %3938 }
 0x56c   : > { %5366 = vrcp.f32 %v3939_v41 }
 0x56f   : > { %v3942_v24 = vpop.xlane.xlu1 %3941 }
 0x570   : > { %5368 = vrcp.f32 %v3942_v24 }
 0x571   : > { %5370 = vrcp.f32 %v3945_v35  ;;  %v3951_v58 = vpop.xlane.xlu0 %3950 }
 0x572   : > { %5372 = vrcp.f32 %v3948_v16 }
 0x573   : > { %5374 = vrcp.f32 %v3951_v58 }
 0x575   : > { %v3957_v48 = vpop.xlane.xlu0 %3956 }
 0x576   : > { %v3954_v49 = vpop.xlane.xlu1 %3953 }
 0x577   : > { %5376 = vrcp.f32 %v3954_v49 }
 0x578   : > { %5378 = vrcp.f32 %v3957_v48 }
 0x579   : > { %v5367_v3 = vpop.eup %5366 }
 0x57a   : > { %v3960_v51 = vpop.xlane.xlu1 %3959 }
 0x57b   : > { %5380 = vrcp.f32 %v3960_v51 }
 0x57d   : > { %v5369_v30 = vpop.eup %5368 }
 0x57e   : > { %v5371_v22 = vpop.eup %5370 }
 0x57f   : > { %v5373_v32 = vpop.eup %5372 }
 0x580   : > { %v5375_v15 = vpop.eup %5374 }
 0x584   : > { %v5377_v19 = vpop.eup %5376 }
 0x5a5   : > { %v4011_v17 = vpop.f32.mrf.mxu1 }
 0x5a6   : > { %v4058_v43 = vmul.f32 %v5367_v3, %v4011_v17 }
 0x5a7   : > { %v4013_v44 = vpop.f32.mrf.mxu1 }
 0x5a8   : > { %v4076_v26 = vmul.f32 %v6471_v0, %v4058_v43  ;;  %v4059_v20 = vmul.f32 %v5367_v3, %v4013_v44  ;;  %v5379_v3 = vpop.eup %5378 }
 0x5a9   : > { %v4015_v45 = vpop.f32.mrf.mxu1 }
 0x5aa   : > { %v4092_v9 = vadd.f32 %v4076_v26, %v6312_v37  ;;  %v4077_v12 = vmul.f32 %v6471_v0, %v4059_v20  ;;  %v4060_v27 = vmul.f32 %v5369_v30, %v4015_v45 }
 0x5ab   : > { %v4017_v53 = vpop.f32.mrf.mxu1 }
 0x5ac   : > { %4108 = vst [vmem:[%s6477_s17] sm:$0xff] %v4092_v9  ;;  %v4093_v61 = vadd.f32 %v4077_v12, %v6304_v52  ;;  %v4078_v50 = vmul.f32 %v6471_v0, %v4060_v27  ;;  %v4061_v25 = vmul.f32 %v5369_v30, %v4017_v53  ;;  %v5381_v30 = vpop.eup %5380 }
 0x5ad   : > { %v4021_v37 = vpop.f32.mrf.mxu1 }
 0x5ae   : > { %4109 = vst [vmem:[%s6477_s17 + $0x8] sm:$0xff] %v4093_v61  ;;  %v4094_v13 = vadd.f32 %v4078_v50, %v6301_v10  ;;  %v4079_v46 = vmul.f32 %v6471_v0, %v4061_v25  ;;  %v4062_v4 = vmul.f32 %v5371_v22, %v4021_v37 }
 0x5af   : > { %v4023_v29 = vpop.f32.mrf.mxu1 }
 0x5b0   : > { %4110 = vst [vmem:[%s6477_s17 + $0x10] sm:$0xff] %v4094_v13  ;;  %v4095_v59 = vadd.f32 %v4079_v46, %v6307_v18  ;;  %v4080_v52 = vmul.f32 %v6471_v0, %v4062_v4  ;;  %v4063_v34 = vmul.f32 %v5371_v22, %v4023_v29 }
 0x5b1   : > { %v4025_v38 = vpop.f32.mrf.mxu1 }
 0x5b2   : > { %4111 = vst [vmem:[%s6477_s17 + $0x18] sm:$0xff] %v4095_v59  ;;  %v4096_v33 = vadd.f32 %v4080_v52, %v6343_v56  ;;  %v4081_v10 = vmul.f32 %v6471_v0, %v4063_v34  ;;  %v4064_v5 = vmul.f32 %v5373_v32, %v4025_v38 }
 0x5b3   : > { %v4027_v57 = vpop.f32.mrf.mxu1 }
 0x5b4   : > { %4112 = vst [vmem:[%s6477_s17 + $0x20] sm:$0xff] %v4096_v33  ;;  %v4097_v55 = vadd.f32 %v4081_v10, %v6335_v54  ;;  %v4082_v18 = vmul.f32 %v6471_v0, %v4064_v5  ;;  %v4065_v7 = vmul.f32 %v5373_v32, %v4027_v57 }
 0x5b5   : > { %v4031_v28 = vpop.f32.mrf.mxu1 }
 0x5b6   : > { %4113 = vst [vmem:[%s6477_s17 + $0x28] sm:$0xff] %v4097_v55  ;;  %v4098_v31 = vadd.f32 %v4082_v18, %v6331_v60  ;;  %v4083_v56 = vmul.f32 %v6471_v0, %v4065_v7  ;;  %v4066_v1 = vmul.f32 %v5375_v15, %v4031_v28 }
 0x5b7   : > { %v4033_v42 = vpop.f32.mrf.mxu1 }
 0x5b8   : > { %4114 = vst [vmem:[%s6477_s17 + $0x30] sm:$0xff] %v4098_v31  ;;  %v4099_v47 = vadd.f32 %v4083_v56, %v6338_v6  ;;  %v4084_v54 = vmul.f32 %v6471_v0, %v4066_v1  ;;  %v4067_v8 = vmul.f32 %v5375_v15, %v4033_v42 }
 0x5b9   : > { %v4035_v21 = vpop.f32.mrf.mxu1 }
 0x5ba   : > { %4115 = vst [vmem:[%s6477_s17 + $0x38] sm:$0xff] %v4099_v47  ;;  %v4100_v39 = vadd.f32 %v4084_v54, %v6373_v62  ;;  %v4085_v35 = vmul.f32 %v6471_v0, %v4067_v8  ;;  %v4068_v60 = vmul.f32 %v5377_v19, %v4035_v21 }
 0x5bb   : > { %v4037_v16 = vpop.f32.mrf.mxu1 }
 0x5bc   : > { %4116 = vst [vmem:[%s6477_s17 + $0x40] sm:$0xff] %v4100_v39  ;;  %v4101_v41 = vadd.f32 %v4085_v35, %v6365_v23  ;;  %v4086_v6 = vmul.f32 %v6471_v0, %v4068_v60  ;;  %v4069_v24 = vmul.f32 %v5377_v19, %v4037_v16 }
 0x5bd   : > { %v4041_v58 = vpop.f32.mrf.mxu1 }
 0x5be   : > { %4117 = vst [vmem:[%s6477_s17 + $0x48] sm:$0xff] %v4101_v41  ;;  %v4102_v17 = vadd.f32 %v4086_v6, %v6361_v2  ;;  %v4087_v43 = vmul.f32 %v6471_v0, %v4069_v24  ;;  %v4070_v62 = vmul.f32 %v5379_v3, %v4041_v58 }
 0x5bf   : > { %v4043_v44 = vpop.f32.mrf.mxu1 }
 0x5c0   : > { %4118 = vst [vmem:[%s6477_s17 + $0x50] sm:$0xff] %v4102_v17  ;;  %v4103_v26 = vadd.f32 %v4087_v43, %v6368_v36  ;;  %v4088_v23 = vmul.f32 %v6471_v0, %v4070_v62  ;;  %v4071_v20 = vmul.f32 %v5379_v3, %v4043_v44 }
 0x5c1   : > { %v4045_v49 = vpop.f32.mrf.mxu1 }
 0x5c2   : > { %4119 = vst [vmem:[%s6477_s17 + $0x58] sm:$0xff] %v4103_v26  ;;  %v4104_v45 = vadd.f32 %v4088_v23, %v6395_v63  ;;  %v4089_v2 = vmul.f32 %v6471_v0, %v4071_v20  ;;  %v4072_v9 = vmul.f32 %v5381_v30, %v4045_v49 }
 0x5c3   : > { %v4047_v12 = vpop.f32.mrf.mxu1 }
 0x5c4   : > { %4120 = vst [vmem:[%s6477_s17 + $0x60] sm:$0xff] %v4104_v45  ;;  %v4105_v27 = vadd.f32 %v4089_v2, %v6389_v11  ;;  %v4090_v36 = vmul.f32 %v6471_v0, %v4072_v9  ;;  %v4073_v53 = vmul.f32 %v5381_v30, %v4047_v12 }
 0x5c6   : > { %4121 = vst [vmem:[%s6477_s17 + $0x68] sm:$0xff] %v4105_v27  ;;  %v4106_v61 = vadd.f32 %v4090_v36, %v6386_v14  ;;  %v4091_v63 = vmul.f32 %v6471_v0, %v4073_v53 }
 0x5c8   : > { %4122 = vst [vmem:[%s6477_s17 + $0x70] sm:$0xff] %v4106_v61  ;;  %v4107_v11 = vadd.f32 %v4091_v63, %v6392_v40 }
 0x5ca   : > { %4123 = vst [vmem:[%s6477_s17 + $0x78] sm:$0xff] %v4107_v11 }
 0x5cb   : > { %5510 = shalt.err (!%p5507_p13)
}
 0x5cc   : > { %s5511_s20 = scalar_lea.hbm %s6526_s11, 2048  ;;  %s5515_s8 = scalar_lea.hbm %s6580_s6, 4096 }
 0x5cd   : > { %p5512_p7 = scmp.ne.s32.totalorder %s6526_s11, %s5511_s20  ;;  %p5516_p6 = scmp.lt.s32.totalorder %s6526_s11, %s6580_s6 }
 0x5ce   : > { %p5517_p11 = scmp.lt.s32.totalorder %s5515_s8, %s5511_s20 }
 0x5cf   : > { %p5513_p4 = pnand %p5512_p7, %p6638_p5 }
 0x5d0   : > { %p5518_p12 = por %p5517_p11, %p5516_p6 }
 0x5d1   : > { %p5514_p8 = pneg %p5513_p4 }
 0x5d3   : > { %p5519_p0 = pnand %p5518_p12, %p5514_p8 }
 0x5d5   : > { %5522 = shalt.err (!%p5519_p0)
}
 0x5d6   : > { %s5581_s18 = smov 256   ;;  %s5582_s19 = smov 16  }
 0x5d7   : > { %4734 = dma.vmem_to_hbm [thread:$0]  (%p6638_p5), %s6528_s15, 2048, %s6526_s11, %s4125_s5, %s5581_s18, %s5581_s18, %s5582_s19  }
 0x5d8 PF: > { %s4153_s21 = sand.u32 1, %s5557_s23   ;;  %p6639_p10 = scmp.ne.s32.totalorder %s6586_s29, 0 }
 0x5d9   : > { %p6640_p1 = scmp.ge.s32.totalorder %s5569_s26, 2  ;;  %s4154_s12 = scalar_lea.sflag [#allocation5], %s4153_s21 }
 0x5db   : > { %p4751_p2 = pnand %p6640_p1, %p6639_p10 }
 0x5dd   : > { %p4752_p3 = pneg %p4751_p2 }
 0x5df   : > { %5552 = dma.done.wait (%p4752_p3), %s4154_s12, 2048  }
 0x5e0   : > { %5554 = vsyncadd (%p4752_p3), %s4154_s12, 4294965248  ;;  %p22_p9 = scmp.ge.s32.totalorder %s5693_s7, 4   ;;  %s6641_s23 = smov %s5561_s24 }
 0x5e1   : > { %s6642_s24 = smov %s5565_s25  ;;  %s6643_s25 = smov %s5711_s9 }
 0x5e2   : > { %s6644_s26 = smov %s5693_s7  ;;  %24 = sbr.rel (!%p22_p9) target bundleno = 9 (0x9), region = 106 }
 0x5e7   :  { %4159 = vsyncpa [#allocation4], 1 }
 0x5e8   :  { %4161 = vsyncpa [#allocation4 + $0x1], 1 }
 0x5e9   :  { %4162 = vsyncpa [#allocation7], 1 }
 0x5ea   :  { %4163 = vsyncpa [#allocation10], 1 }
 0x5eb   :  { %4164 = vsyncpa [#allocation5], 1 }
 0x5ec   :  { %4166 = vsyncpa [#allocation5 + $0x1], 1 }

</bundles_post_ra>
